<compile_context>
chip_gen: v7x
topology: tpu7x:2x2x1
jax: 0.10.0
libtpu: 0.0.40
codegen_flags: <defaults>
</compile_context>

<pallas_src>
import jax
import jax.numpy as jnp
from jax import lax
from jax.experimental import pallas as pl
from jax.experimental.pallas import tpu as pltpu

# Matmul operand dtype for the MXU (bf16 halves VMEM/DMA bytes; f32 accumulate).
MXU_DTYPE = jnp.bfloat16
BN_EPS = 1e-5

# Geometry implied by Linear(2*4*32) / Unflatten(32, 4, 2): input is (B, 1, 16, 12).
IMG_C, IMG_H, IMG_W = 1, 16, 12


def _round_up(n, m=128):
    return ((n + m - 1) // m) * m


# ----------------------------------------------------------------------------
# Pallas kernel factory: the entire ConvAE forward, VMEM-resident.
# `meta` holds only static Python ints (bank offsets / widths), closed over so
# every ref slice below is static.
# ----------------------------------------------------------------------------
def _make_kernel(meta):
    w_meta = meta["w"]            # name -> (row_offset, K, N) into the bf16 weight bank
    v_meta = meta["v"]            # name -> (row, N)           into the f32 vector bank
    hw16 = meta["bn16_hw"]        # spatial size of the C=16 BatchNorms (24)
    hw8 = meta["bn8_hw"]          # spatial size of the C=8  BatchNorm  (48)

    def kernel(x_ref, w_ref, v_ref, o_ref):
        def mm(a, name):
            off, k, n = w_meta[name]
            w = w_ref[off:off + k, 0:n]                    # static VMEM slice (free)
            return jnp.dot(a.astype(w.dtype), w,
                           preferred_element_type=jnp.float32)

        def vec(name):
            r, n = v_meta[name]
            return v_ref[r:r + 1, 0:n]                     # (1, n) f32 row

        def bias_relu(h, name):
            return jnp.maximum(h + vec(name), 0.0)

        def bn_relu(h, proj, hw, g_name, b_name):
            # Training-mode BatchNorm2d over the flat (c, h, w) layout.
            # One bf16 MXU pass: project [sum(h); sum(h*h)] through the 0/1
            # channel-indicator matrix; the 1/(B*HW) scale stays in f32.
            n = h.shape[1]
            s1 = jnp.sum(h, axis=0, keepdims=True)         # (1, n) f32
            s2 = jnp.sum(h * h, axis=0, keepdims=True)     # (1, n) f32
            rows = lax.broadcasted_iota(jnp.int32, (2, n), 0)
            stats = jnp.where(rows == 0,
                              jnp.broadcast_to(s1, (2, n)),
                              jnp.broadcast_to(s2, (2, n)))            # (2, n)
            off, k, np_ = w_meta[proj]
            p = w_ref[off:off + k, 0:np_]                  # bf16 0/1 indicator
            mom = jnp.dot(stats.astype(p.dtype), p,
                          preferred_element_type=jnp.float32)
            mom = mom * (1.0 / (h.shape[0] * hw))          # f32 scale -> [E[x]; E[x^2]]
            mu = mom[0:1, :]
            var = jnp.maximum(mom[1:2, :] - mu * mu, 0.0)  # biased var, guard cancellation
            y = (h - mu) * lax.rsqrt(var + BN_EPS) * vec(g_name) + vec(b_name)
            return jnp.maximum(y, 0.0)

        x = x_ref[...]                                                # (B, 192) f32
        # ---- encoder ----
        h = bias_relu(mm(x, "c1"), "c1_b")                            # Conv2d(1->8,s2,p1)+ReLU
        h = mm(h, "c2") + vec("c2_b")                                 # Conv2d(8->16)
        h = bn_relu(h, "p16", hw16, "bn_e_g", "bn_e_b")               # BatchNorm2d(16)+ReLU
        h = bias_relu(mm(h, "c3"), "c3_b")                            # Conv2d(16->32)+ReLU
        h = bias_relu(mm(h, "f1"), "f1_b")                            # Flatten+Linear(256->128)+ReLU
        code = mm(h, "f2") + vec("f2_b")                              # Linear(128->code)
        # ---- decoder ----
        h = bias_relu(mm(code, "g1"), "g1_b")                         # Linear(code->128)+ReLU
        h = bias_relu(mm(h, "g2"), "g2_b")                            # Linear(128->256)+ReLU
        h = mm(h, "t1") + vec("t1_b")                                 # Unflatten+ConvT(32->16)
        h = bn_relu(h, "p16", hw16, "bd1_g", "bd1_b")                 # BatchNorm2d(16)+ReLU
        h = mm(h, "t2") + vec("t2_b")                                 # ConvT(16->8)
        h = bn_relu(h, "p8", hw8, "bd2_g", "bd2_b")                   # BatchNorm2d(8)+ReLU
        o_ref[...] = mm(h, "t3") + vec("t3_b")                        # ConvT(8->1,s2,p1,op1)

    return kernel


# ----------------------------------------------------------------------------
# Forward factory: single pallas_call, whole-array VMEM blocks, 3 input DMAs.
# ----------------------------------------------------------------------------
def make_forward(meta):
    kernel = _make_kernel(meta)
    d_out = meta["out_real"]                 # 192 real output lanes
    n_out = meta["w"]["t3"][2]               # 256 lane-dense output store
    d_in = meta["w"]["c1"][1]                # 192 input lanes (no wrapper pad)

    def forward(banks, x):
        B = x.shape[0]
        x_flat = x.reshape(B, -1).astype(jnp.float32)   # NCHW flatten == (c,h,w) order
        assert x_flat.shape[1] == d_in
        operands = [x_flat, banks["wbank"], banks["vbank"]]
        out = pl.pallas_call(
            kernel,
            out_shape=jax.ShapeDtypeStruct((B, n_out), jnp.float32),
            grid=(1,),
            in_specs=[pl.BlockSpec(a.shape, lambda i: (0, 0)) for a in operands],
            out_specs=pl.BlockSpec((B, n_out), lambda i: (0, 0)),
            compiler_params=pltpu.CompilerParams(
                dimension_semantics=("arbitrary",),
                # ~6 MB actually used; budgeted against v7x's 64 MiB VMEM.
                vmem_limit_bytes=32 * 1024 * 1024,
            ),
        )(*operands)
        return out[:, :d_out].reshape(B, IMG_C, IMG_H, IMG_W)

    return forward


# ----------------------------------------------------------------------------
# Init-time weight folding: conv / conv-transpose -> dense operators,
# then pack everything into one bf16 weight bank + one f32 vector bank.
# ----------------------------------------------------------------------------
def _conv_operator(w, hw_in, stride, padding):
    """Dense M (Cin*H*W, Cout*Ho*Wo) s.t. x_flat @ M == Conv2d(x) flattened (NCHW order)."""
    Cout, Cin, k, _ = w.shape
    H, W = hw_in
    d_in = Cin * H * W
    basis = jnp.eye(d_in, dtype=jnp.float32).reshape(d_in, Cin, H, W)
    out = lax.conv_general_dilated(
        basis, w.astype(jnp.float32), window_strides=(stride, stride),
        padding=[(padding, padding), (padding, padding)],
        dimension_numbers=("NCHW", "OIHW", "NCHW"))
    _, _, Ho, Wo = out.shape
    return out.reshape(d_in, Cout * Ho * Wo), (Ho, Wo)


def _convT_operator(w, hw_in, stride, padding, output_padding):
    """Dense operator for ConvTranspose2d (PyTorch weight layout (Cin, Cout, k, k))."""
    Cin, Cout, k, _ = w.shape
    H, W = hw_in
    # Equivalent forward conv: flip kernel spatially, swap channel axes,
    # dilate input by `stride`, pad by (k-1-p, k-1-p+output_padding).
    w_conv = jnp.flip(w, axis=(2, 3)).transpose(1, 0, 2, 3)        # (Cout, Cin, k, k)
    d_in = Cin * H * W
    basis = jnp.eye(d_in, dtype=jnp.float32).reshape(d_in, Cin, H, W)
    lo = k - 1 - padding
    hi = k - 1 - padding + output_padding
    out = lax.conv_general_dilated(
        basis, w_conv.astype(jnp.float32), window_strides=(1, 1),
        padding=[(lo, hi), (lo, hi)], lhs_dilation=(stride, stride),
        dimension_numbers=("NCHW", "OIHW", "NCHW"))
    _, _, Ho, Wo = out.shape
    return out.reshape(d_in, Cout * Ho * Wo), (Ho, Wo)


def _bn_indicator(C, HW):
    """(C*HW, C*HW) 0/1 channel-block indicator (I_C ⊗ 1_{HW x HW}); exact in bf16."""
    return jnp.kron(jnp.eye(C, dtype=jnp.float32),
                    jnp.ones((HW, HW), jnp.float32))


def pack_params(params):
    """One-time folding of ConvAE params into two packed, lane-padded operands."""
    w_blocks = []        # (name, (K, N_pad) f32 matrix)
    v_rows = []          # (name, (N_pad,)   f32 vector)
    width = IMG_C * IMG_H * IMG_W            # current activation lane-width (192)

    def add_vec(name, v, n_pad):
        v = v.astype(jnp.float32)
        v_rows.append((name, jnp.pad(v, (0, n_pad - v.shape[0]))))   # zero lane-pad

    def add_op(name, m, b):
        nonlocal width
        k_real, n_real = m.shape
        assert k_real <= width
        n_pad = _round_up(n_real)
        # rows padded (zeros) to match incoming activation width; cols zero-padded
        # to the next lane multiple -- keeps the "padded lanes are exactly zero"
        # invariant downstream.
        m = jnp.pad(m.astype(jnp.float32),
                    ((0, width - k_real), (0, n_pad - n_real)))
        w_blocks.append((name, m))
        add_vec(name + "_b", b, n_pad)
        width = n_pad

    def add_bn(g_name, b_name, gk, bk, hw):
        n = hw[0] * hw[1]
        add_vec(g_name, jnp.repeat(params[gk], n), width)
        add_vec(b_name, jnp.repeat(params[bk], n), width)

    def conv(wk, bk, hw, stride, padding):
        m, hw_out = _conv_operator(params[wk], hw, stride, padding)
        return m, jnp.repeat(params[bk], hw_out[0] * hw_out[1]), hw_out

    def convT(wk, bk, hw, stride, padding, outp):
        m, hw_out = _convT_operator(params[wk], hw, stride, padding, outp)
        return m, jnp.repeat(params[bk], hw_out[0] * hw_out[1]), hw_out

    # ---- encoder ----
    hw = (IMG_H, IMG_W)                                               # (16, 12)
    m, b, hw = conv("e_c1_w", "e_c1_b", hw, 2, 1); add_op("c1", m, b)  # -> (8,6),  C=8
    m, b, hw = conv("e_c2_w", "e_c2_b", hw, 1, 0); add_op("c2", m, b)  # -> (6,4),  C=16
    hw_bn16 = hw
    add_bn("bn_e_g", "bn_e_b", "e_bn_g", "e_bn_b", hw)
    m, b, hw = conv("e_c3_w", "e_c3_b", hw, 1, 0); add_op("c3", m, b)  # -> (4,2),  C=32
    add_op("f1", params["e_l1_w"], params["e_l1_b"])
    add_op("f2", params["e_l2_w"], params["e_l2_b"])
    # ---- decoder ----
    add_op("g1", params["d_l1_w"], params["d_l1_b"])
    add_op("g2", params["d_l2_w"], params["d_l2_b"])
    hw = (4, 2)
    m, b, hw = convT("d_ct1_w", "d_ct1_b", hw, 1, 0, 0); add_op("t1", m, b)  # -> (6,4),  C=16
    add_bn("bd1_g", "bd1_b", "d_bn1_g", "d_bn1_b", hw)
    m, b, hw = convT("d_ct2_w", "d_ct2_b", hw, 1, 0, 0); add_op("t2", m, b)  # -> (8,6),  C=8
    hw_bn8 = hw
    add_bn("bd2_g", "bd2_b", "d_bn2_g", "d_bn2_b", hw)
    m, b, hw = convT("d_ct3_w", "d_ct3_b", hw, 2, 1, 1); add_op("t3", m, b)  # -> (16,12), C=1

    # BatchNorm projectors: bf16 0/1 indicators (exact); 1/(B*HW) scale applied
    # in-kernel in f32.  p16 is shared by both C=16 BatchNorms.
    w_blocks.append(("p16", _bn_indicator(16, hw_bn16[0] * hw_bn16[1])))
    w_blocks.append(("p8", _bn_indicator(8, hw_bn8[0] * hw_bn8[1])))

    # ---- pack: one bf16 weight bank + one f32 vector bank (3 input DMAs total)
    bank_n = max(blk.shape[1] for _, blk in w_blocks)                 # 384
    meta_w, rows, off = {}, [], 0
    for name, blk in w_blocks:
        k, n = blk.shape
        k_pad = -(-k // 16) * 16                                      # bf16 sublane tile
        rows.append(jnp.pad(blk, ((0, k_pad - k), (0, bank_n - n))))
        meta_w[name] = (off, k, n)                                    # static ints
        off += k_pad
    wbank = jnp.concatenate(rows, axis=0).astype(MXU_DTYPE)

    meta_v, vrows = {}, []
    for i, (name, v) in enumerate(v_rows):
        meta_v[name] = (i, v.shape[0])
        vrows.append(jnp.pad(v, (0, bank_n - v.shape[0]))[None, :])
    pad_rows = -(-len(vrows) // 8) * 8 - len(vrows)                   # f32 sublane tile
    vrows.append(jnp.zeros((pad_rows, bank_n), jnp.float32))
    vbank = jnp.concatenate(vrows, axis=0)

    banks = {"wbank": wbank, "vbank": vbank}
    meta = {"w": meta_w, "v": meta_v,
            "bn16_hw": hw_bn16[0] * hw_bn16[1],
            "bn8_hw": hw_bn8[0] * hw_bn8[1],
            "out_real": IMG_C * IMG_H * IMG_W}
    return banks, meta


# ----------------------------------------------------------------------------
# Parameters (deterministic, synthetic — shapes from ConvAE.__init__)
# ----------------------------------------------------------------------------
def _uniform(key, shape, fan_in):
    bound = float(1.0 / (fan_in ** 0.5))
    return jax.random.uniform(key, shape, jnp.float32, -bound, bound)


def init_params(key, code_size=32):
    ks = iter(jax.random.split(key, 24))
    p = {}

    def conv(name, cout, cin, k):
        fan = cin * k * k
        p[name + "_w"] = _uniform(next(ks), (cout, cin, k, k), fan)
        p[name + "_b"] = _uniform(next(ks), (cout,), fan)

    def convT(name, cin, cout, k):
        fan = cout * k * k
        p[name + "_w"] = _uniform(next(ks), (cin, cout, k, k), fan)
        p[name + "_b"] = _uniform(next(ks), (cout,), fan)

    def linear(name, din, dout):
        p[name + "_w"] = _uniform(next(ks), (din, dout), din)      # stored as (in, out)
        p[name + "_b"] = _uniform(next(ks), (dout,), din)

    def bn(name, c):
        p[name + "_g"] = jnp.ones((c,), jnp.float32)
        p[name + "_b"] = jnp.zeros((c,), jnp.float32)

    # encoder
    conv("e_c1", 8, 1, 3)
    conv("e_c2", 16, 8, 3)
    bn("e_bn", 16)
    conv("e_c3", 32, 16, 3)
    linear("e_l1", 2 * 4 * 32, 128)
    linear("e_l2", 128, code_size)
    # decoder
    linear("d_l1", code_size, 128)
    linear("d_l2", 128, 2 * 4 * 32)
    convT("d_ct1", 32, 16, 3)
    bn("d_bn1", 16)
    convT("d_ct2", 16, 8, 3)
    bn("d_bn2", 8)
    convT("d_ct3", 8, 1, 3)
    return p


if __name__ == "__main__":
    key = jax.random.PRNGKey(0)
    k_param, k_x = jax.random.split(key)
    params = init_params(k_param, code_size=32)
    banks, meta = pack_params(params)      # hoisted: one-time weight folding / packing

    # Input spatial size consistent with Flatten->Linear(2*4*32) / Unflatten(32,4,2):
    # (B, 1, 16, 12) -> encoder -> (B, 32, 4, 2) -> decoder -> (B, 1, 16, 12)
    x = jax.random.normal(k_x, (2, 1, 16, 12), jnp.float32)

    fwd = jax.jit(make_forward(meta))      # meta (static ints) closed over, not traced
    out = jax.block_until_ready(fwd(banks, x))
    assert out.shape == (2, 1, 16, 12), out.shape
    assert out.dtype == jnp.float32
    assert bool(jnp.all(jnp.isfinite(out)))
    print("KERNEL_OK")
</pallas_src>

<mosaic_0001>
module attributes {stable_mosaic.version = 11 : i64} {
  func.func @kernel(%arg0: i32, %arg1: memref<2x192xf32, #tpu.memory_space<vmem>>, %arg2: memref<3392x384xbf16, #tpu.memory_space<vmem>>, %arg3: memref<16x384xf32, #tpu.memory_space<vmem>>, %arg4: memref<2x256xf32, #tpu.memory_space<vmem>>) attributes {dimension_semantics = [#tpu.dimension_semantics<arbitrary>], iteration_bounds = array<i64: 1>, scalar_prefetch = 0 : i64, scratch_operands = 0 : i64, tpu.core_type = #tpu.core_type<tc>, window_params = [{pipeline_mode = #tpu.pipeline_mode<synchronous>, transform_indices = @transform_0, window_bounds = array<i64: 2, 192>}, {pipeline_mode = #tpu.pipeline_mode<synchronous>, transform_indices = @transform_1, window_bounds = array<i64: 3392, 384>}, {pipeline_mode = #tpu.pipeline_mode<synchronous>, transform_indices = @transform_2, window_bounds = array<i64: 16, 384>}, {pipeline_mode = #tpu.pipeline_mode<synchronous>, transform_indices = @transform_3, window_bounds = array<i64: 2, 256>}]} {
    %c0 = arith.constant 0 : index
    %c0_0 = arith.constant 0 : index
    %0 = vector.load %arg1[%c0, %c0_0] : memref<2x192xf32, #tpu.memory_space<vmem>>, vector<2x192xf32>
    %c0_1 = arith.constant 0 : index
    %c0_2 = arith.constant 0 : index
    %1 = vector.load %arg2[%c0_1, %c0_2] : memref<3392x384xbf16, #tpu.memory_space<vmem>>, vector<192x384xbf16>
    %2 = arith.truncf %0 : vector<2x192xf32> to vector<2x192xbf16>
    %cst = arith.constant dense<0.000000e+00> : vector<2x384xf32>
    %3 = tpu.matmul %2, %1, %cst {dimension_numbers = #tpu.dot_dimension_numbers<[1], [0], [0], [1], [0, 0, 1, 1], [], []>} : vector<2x192xbf16>, vector<192x384xbf16>, vector<2x384xf32> -> vector<2x384xf32>
    %c0_3 = arith.constant 0 : index
    %c0_4 = arith.constant 0 : index
    %4 = vector.load %arg3[%c0_3, %c0_4] : memref<16x384xf32, #tpu.memory_space<vmem>>, vector<1x384xf32>
    %5 = vector.broadcast %4 : vector<1x384xf32> to vector<2x384xf32>
    %6 = arith.addf %3, %5 : vector<2x384xf32>
    %cst_5 = arith.constant 0.000000e+00 : f32
    %7 = vector.broadcast %cst_5 : f32 to vector<2x384xf32>
    %8 = arith.maximumf %6, %7 : vector<2x384xf32>
    %c192 = arith.constant 192 : index
    %c0_6 = arith.constant 0 : index
    %9 = vector.load %arg2[%c192, %c0_6] : memref<3392x384xbf16, #tpu.memory_space<vmem>>, vector<384x384xbf16>
    %10 = arith.truncf %8 : vector<2x384xf32> to vector<2x384xbf16>
    %cst_7 = arith.constant dense<0.000000e+00> : vector<2x384xf32>
    %11 = tpu.matmul %10, %9, %cst_7 {dimension_numbers = #tpu.dot_dimension_numbers<[1], [0], [0], [1], [0, 0, 1, 1], [], []>} : vector<2x384xbf16>, vector<384x384xbf16>, vector<2x384xf32> -> vector<2x384xf32>
    %c1 = arith.constant 1 : index
    %c0_8 = arith.constant 0 : index
    %12 = vector.load %arg3[%c1, %c0_8] : memref<16x384xf32, #tpu.memory_space<vmem>>, vector<1x384xf32>
    %13 = vector.broadcast %12 : vector<1x384xf32> to vector<2x384xf32>
    %14 = arith.addf %11, %13 : vector<2x384xf32>
    %cst_9 = arith.constant dense<0.000000e+00> : vector<384xf32>
    %15 = vector.multi_reduction <add>, %14, %cst_9 [0] : vector<2x384xf32> to vector<384xf32>
    %16 = vector.shape_cast %15 : vector<384xf32> to vector<1x384xf32>
    %17 = arith.mulf %14, %14 : vector<2x384xf32>
    %cst_10 = arith.constant dense<0.000000e+00> : vector<384xf32>
    %18 = vector.multi_reduction <add>, %17, %cst_10 [0] : vector<2x384xf32> to vector<384xf32>
    %19 = vector.shape_cast %18 : vector<384xf32> to vector<1x384xf32>
    %20 = tpu.iota {dimensions = array<i32: 0>} : vector<2x384xi32>
    %c0_i32 = arith.constant 0 : i32
    %21 = vector.broadcast %c0_i32 : i32 to vector<2x384xi32>
    %22 = arith.cmpi eq, %20, %21 : vector<2x384xi32>
    %23 = vector.shape_cast %16 : vector<1x384xf32> to vector<1x384xf32>
    %24 = vector.broadcast %23 : vector<1x384xf32> to vector<2x384xf32>
    %25 = vector.shape_cast %19 : vector<1x384xf32> to vector<1x384xf32>
    %26 = vector.broadcast %25 : vector<1x384xf32> to vector<2x384xf32>
    %27 = arith.select %22, %24, %26 : vector<2x384xi1>, vector<2x384xf32>
    %c2624 = arith.constant 2624 : index
    %c0_11 = arith.constant 0 : index
    %28 = vector.load %arg2[%c2624, %c0_11] : memref<3392x384xbf16, #tpu.memory_space<vmem>>, vector<384x384xbf16>
    %29 = arith.truncf %27 : vector<2x384xf32> to vector<2x384xbf16>
    %cst_12 = arith.constant dense<0.000000e+00> : vector<2x384xf32>
    %30 = tpu.matmul %29, %28, %cst_12 {dimension_numbers = #tpu.dot_dimension_numbers<[1], [0], [0], [1], [0, 0, 1, 1], [], []>} : vector<2x384xbf16>, vector<384x384xbf16>, vector<2x384xf32> -> vector<2x384xf32>
    %cst_13 = arith.constant 0.020833334 : f32
    %31 = vector.broadcast %cst_13 : f32 to vector<2x384xf32>
    %32 = arith.mulf %30, %31 : vector<2x384xf32>
    %33 = vector.extract_strided_slice %32 {offsets = [0, 0], sizes = [1, 384], strides = [1, 1]} : vector<2x384xf32> to vector<1x384xf32>
    %34 = vector.extract_strided_slice %32 {offsets = [1, 0], sizes = [1, 384], strides = [1, 1]} : vector<2x384xf32> to vector<1x384xf32>
    %35 = arith.mulf %33, %33 : vector<1x384xf32>
    %36 = arith.subf %34, %35 : vector<1x384xf32>
    %cst_14 = arith.constant 0.000000e+00 : f32
    %37 = vector.broadcast %cst_14 : f32 to vector<1x384xf32>
    %38 = arith.maximumf %36, %37 : vector<1x384xf32>
    %39 = vector.broadcast %33 : vector<1x384xf32> to vector<2x384xf32>
    %40 = arith.subf %14, %39 : vector<2x384xf32>
    %cst_15 = arith.constant 9.99999974E-6 : f32
    %41 = vector.broadcast %cst_15 : f32 to vector<1x384xf32>
    %42 = arith.addf %38, %41 : vector<1x384xf32>
    %43 = math.rsqrt %42 : vector<1x384xf32>
    %44 = vector.broadcast %43 : vector<1x384xf32> to vector<2x384xf32>
    %45 = arith.mulf %40, %44 : vector<2x384xf32>
    %c2 = arith.constant 2 : index
    %c0_16 = arith.constant 0 : index
    %46 = vector.load %arg3[%c2, %c0_16] : memref<16x384xf32, #tpu.memory_space<vmem>>, vector<1x384xf32>
    %47 = vector.broadcast %46 : vector<1x384xf32> to vector<2x384xf32>
    %48 = arith.mulf %45, %47 : vector<2x384xf32>
    %c3 = arith.constant 3 : index
    %c0_17 = arith.constant 0 : index
    %49 = vector.load %arg3[%c3, %c0_17] : memref<16x384xf32, #tpu.memory_space<vmem>>, vector<1x384xf32>
    %50 = vector.broadcast %49 : vector<1x384xf32> to vector<2x384xf32>
    %51 = arith.addf %48, %50 : vector<2x384xf32>
    %cst_18 = arith.constant 0.000000e+00 : f32
    %52 = vector.broadcast %cst_18 : f32 to vector<2x384xf32>
    %53 = arith.maximumf %51, %52 : vector<2x384xf32>
    %c576 = arith.constant 576 : index
    %c0_19 = arith.constant 0 : index
    %54 = vector.load %arg2[%c576, %c0_19] : memref<3392x384xbf16, #tpu.memory_space<vmem>>, vector<384x256xbf16>
    %55 = arith.truncf %53 : vector<2x384xf32> to vector<2x384xbf16>
    %cst_20 = arith.constant dense<0.000000e+00> : vector<2x256xf32>
    %56 = tpu.matmul %55, %54, %cst_20 {dimension_numbers = #tpu.dot_dimension_numbers<[1], [0], [0], [1], [0, 0, 1, 1], [], []>} : vector<2x384xbf16>, vector<384x256xbf16>, vector<2x256xf32> -> vector<2x256xf32>
    %c4 = arith.constant 4 : index
    %c0_21 = arith.constant 0 : index
    %57 = vector.load %arg3[%c4, %c0_21] : memref<16x384xf32, #tpu.memory_space<vmem>>, vector<1x256xf32>
    %58 = vector.broadcast %57 : vector<1x256xf32> to vector<2x256xf32>
    %59 = arith.addf %56, %58 : vector<2x256xf32>
    %cst_22 = arith.constant 0.000000e+00 : f32
    %60 = vector.broadcast %cst_22 : f32 to vector<2x256xf32>
    %61 = arith.maximumf %59, %60 : vector<2x256xf32>
    %c960 = arith.constant 960 : index
    %c0_23 = arith.constant 0 : index
    %62 = vector.load %arg2[%c960, %c0_23] : memref<3392x384xbf16, #tpu.memory_space<vmem>>, vector<256x128xbf16>
    %63 = arith.truncf %61 : vector<2x256xf32> to vector<2x256xbf16>
    %cst_24 = arith.constant dense<0.000000e+00> : vector<2x128xf32>
    %64 = tpu.matmul %63, %62, %cst_24 {dimension_numbers = #tpu.dot_dimension_numbers<[1], [0], [0], [1], [0, 0, 1, 1], [], []>} : vector<2x256xbf16>, vector<256x128xbf16>, vector<2x128xf32> -> vector<2x128xf32>
    %c5 = arith.constant 5 : index
    %c0_25 = arith.constant 0 : index
    %65 = vector.load %arg3[%c5, %c0_25] : memref<16x384xf32, #tpu.memory_space<vmem>>, vector<1x128xf32>
    %66 = vector.broadcast %65 : vector<1x128xf32> to vector<2x128xf32>
    %67 = arith.addf %64, %66 : vector<2x128xf32>
    %cst_26 = arith.constant 0.000000e+00 : f32
    %68 = vector.broadcast %cst_26 : f32 to vector<2x128xf32>
    %69 = arith.maximumf %67, %68 : vector<2x128xf32>
    %c1216 = arith.constant 1216 : index
    %c0_27 = arith.constant 0 : index
    %70 = vector.load %arg2[%c1216, %c0_27] : memref<3392x384xbf16, #tpu.memory_space<vmem>>, vector<128x128xbf16>
    %71 = arith.truncf %69 : vector<2x128xf32> to vector<2x128xbf16>
    %cst_28 = arith.constant dense<0.000000e+00> : vector<2x128xf32>
    %72 = tpu.matmul %71, %70, %cst_28 {dimension_numbers = #tpu.dot_dimension_numbers<[1], [0], [0], [1], [0, 0, 1, 1], [], []>} : vector<2x128xbf16>, vector<128x128xbf16>, vector<2x128xf32> -> vector<2x128xf32>
    %c6 = arith.constant 6 : index
    %c0_29 = arith.constant 0 : index
    %73 = vector.load %arg3[%c6, %c0_29] : memref<16x384xf32, #tpu.memory_space<vmem>>, vector<1x128xf32>
    %74 = vector.broadcast %73 : vector<1x128xf32> to vector<2x128xf32>
    %75 = arith.addf %72, %74 : vector<2x128xf32>
    %c1344 = arith.constant 1344 : index
    %c0_30 = arith.constant 0 : index
    %76 = vector.load %arg2[%c1344, %c0_30] : memref<3392x384xbf16, #tpu.memory_space<vmem>>, vector<128x128xbf16>
    %77 = arith.truncf %75 : vector<2x128xf32> to vector<2x128xbf16>
    %cst_31 = arith.constant dense<0.000000e+00> : vector<2x128xf32>
    %78 = tpu.matmul %77, %76, %cst_31 {dimension_numbers = #tpu.dot_dimension_numbers<[1], [0], [0], [1], [0, 0, 1, 1], [], []>} : vector<2x128xbf16>, vector<128x128xbf16>, vector<2x128xf32> -> vector<2x128xf32>
    %c7 = arith.constant 7 : index
    %c0_32 = arith.constant 0 : index
    %79 = vector.load %arg3[%c7, %c0_32] : memref<16x384xf32, #tpu.memory_space<vmem>>, vector<1x128xf32>
    %80 = vector.broadcast %79 : vector<1x128xf32> to vector<2x128xf32>
    %81 = arith.addf %78, %80 : vector<2x128xf32>
    %cst_33 = arith.constant 0.000000e+00 : f32
    %82 = vector.broadcast %cst_33 : f32 to vector<2x128xf32>
    %83 = arith.maximumf %81, %82 : vector<2x128xf32>
    %c1472 = arith.constant 1472 : index
    %c0_34 = arith.constant 0 : index
    %84 = vector.load %arg2[%c1472, %c0_34] : memref<3392x384xbf16, #tpu.memory_space<vmem>>, vector<128x256xbf16>
    %85 = arith.truncf %83 : vector<2x128xf32> to vector<2x128xbf16>
    %cst_35 = arith.constant dense<0.000000e+00> : vector<2x256xf32>
    %86 = tpu.matmul %85, %84, %cst_35 {dimension_numbers = #tpu.dot_dimension_numbers<[1], [0], [0], [1], [0, 0, 1, 1], [], []>} : vector<2x128xbf16>, vector<128x256xbf16>, vector<2x256xf32> -> vector<2x256xf32>
    %c8 = arith.constant 8 : index
    %c0_36 = arith.constant 0 : index
    %87 = vector.load %arg3[%c8, %c0_36] : memref<16x384xf32, #tpu.memory_space<vmem>>, vector<1x256xf32>
    %88 = vector.broadcast %87 : vector<1x256xf32> to vector<2x256xf32>
    %89 = arith.addf %86, %88 : vector<2x256xf32>
    %cst_37 = arith.constant 0.000000e+00 : f32
    %90 = vector.broadcast %cst_37 : f32 to vector<2x256xf32>
    %91 = arith.maximumf %89, %90 : vector<2x256xf32>
    %c1600 = arith.constant 1600 : index
    %c0_38 = arith.constant 0 : index
    %92 = vector.load %arg2[%c1600, %c0_38] : memref<3392x384xbf16, #tpu.memory_space<vmem>>, vector<256x384xbf16>
    %93 = arith.truncf %91 : vector<2x256xf32> to vector<2x256xbf16>
    %cst_39 = arith.constant dense<0.000000e+00> : vector<2x384xf32>
    %94 = tpu.matmul %93, %92, %cst_39 {dimension_numbers = #tpu.dot_dimension_numbers<[1], [0], [0], [1], [0, 0, 1, 1], [], []>} : vector<2x256xbf16>, vector<256x384xbf16>, vector<2x384xf32> -> vector<2x384xf32>
    %c9 = arith.constant 9 : index
    %c0_40 = arith.constant 0 : index
    %95 = vector.load %arg3[%c9, %c0_40] : memref<16x384xf32, #tpu.memory_space<vmem>>, vector<1x384xf32>
    %96 = vector.broadcast %95 : vector<1x384xf32> to vector<2x384xf32>
    %97 = arith.addf %94, %96 : vector<2x384xf32>
    %cst_41 = arith.constant dense<0.000000e+00> : vector<384xf32>
    %98 = vector.multi_reduction <add>, %97, %cst_41 [0] : vector<2x384xf32> to vector<384xf32>
    %99 = vector.shape_cast %98 : vector<384xf32> to vector<1x384xf32>
    %100 = arith.mulf %97, %97 : vector<2x384xf32>
    %cst_42 = arith.constant dense<0.000000e+00> : vector<384xf32>
    %101 = vector.multi_reduction <add>, %100, %cst_42 [0] : vector<2x384xf32> to vector<384xf32>
    %102 = vector.shape_cast %101 : vector<384xf32> to vector<1x384xf32>
    %103 = tpu.iota {dimensions = array<i32: 0>} : vector<2x384xi32>
    %c0_i32_43 = arith.constant 0 : i32
    %104 = vector.broadcast %c0_i32_43 : i32 to vector<2x384xi32>
    %105 = arith.cmpi eq, %103, %104 : vector<2x384xi32>
    %106 = vector.shape_cast %99 : vector<1x384xf32> to vector<1x384xf32>
    %107 = vector.broadcast %106 : vector<1x384xf32> to vector<2x384xf32>
    %108 = vector.shape_cast %102 : vector<1x384xf32> to vector<1x384xf32>
    %109 = vector.broadcast %108 : vector<1x384xf32> to vector<2x384xf32>
    %110 = arith.select %105, %107, %109 : vector<2x384xi1>, vector<2x384xf32>
    %c2624_44 = arith.constant 2624 : index
    %c0_45 = arith.constant 0 : index
    %111 = vector.load %arg2[%c2624_44, %c0_45] : memref<3392x384xbf16, #tpu.memory_space<vmem>>, vector<384x384xbf16>
    %112 = arith.truncf %110 : vector<2x384xf32> to vector<2x384xbf16>
    %cst_46 = arith.constant dense<0.000000e+00> : vector<2x384xf32>
    %113 = tpu.matmul %112, %111, %cst_46 {dimension_numbers = #tpu.dot_dimension_numbers<[1], [0], [0], [1], [0, 0, 1, 1], [], []>} : vector<2x384xbf16>, vector<384x384xbf16>, vector<2x384xf32> -> vector<2x384xf32>
    %cst_47 = arith.constant 0.020833334 : f32
    %114 = vector.broadcast %cst_47 : f32 to vector<2x384xf32>
    %115 = arith.mulf %113, %114 : vector<2x384xf32>
    %116 = vector.extract_strided_slice %115 {offsets = [0, 0], sizes = [1, 384], strides = [1, 1]} : vector<2x384xf32> to vector<1x384xf32>
    %117 = vector.extract_strided_slice %115 {offsets = [1, 0], sizes = [1, 384], strides = [1, 1]} : vector<2x384xf32> to vector<1x384xf32>
    %118 = arith.mulf %116, %116 : vector<1x384xf32>
    %119 = arith.subf %117, %118 : vector<1x384xf32>
    %cst_48 = arith.constant 0.000000e+00 : f32
    %120 = vector.broadcast %cst_48 : f32 to vector<1x384xf32>
    %121 = arith.maximumf %119, %120 : vector<1x384xf32>
    %122 = vector.broadcast %116 : vector<1x384xf32> to vector<2x384xf32>
    %123 = arith.subf %97, %122 : vector<2x384xf32>
    %cst_49 = arith.constant 9.99999974E-6 : f32
    %124 = vector.broadcast %cst_49 : f32 to vector<1x384xf32>
    %125 = arith.addf %121, %124 : vector<1x384xf32>
    %126 = math.rsqrt %125 : vector<1x384xf32>
    %127 = vector.broadcast %126 : vector<1x384xf32> to vector<2x384xf32>
    %128 = arith.mulf %123, %127 : vector<2x384xf32>
    %c10 = arith.constant 10 : index
    %c0_50 = arith.constant 0 : index
    %129 = vector.load %arg3[%c10, %c0_50] : memref<16x384xf32, #tpu.memory_space<vmem>>, vector<1x384xf32>
    %130 = vector.broadcast %129 : vector<1x384xf32> to vector<2x384xf32>
    %131 = arith.mulf %128, %130 : vector<2x384xf32>
    %c11 = arith.constant 11 : index
    %c0_51 = arith.constant 0 : index
    %132 = vector.load %arg3[%c11, %c0_51] : memref<16x384xf32, #tpu.memory_space<vmem>>, vector<1x384xf32>
    %133 = vector.broadcast %132 : vector<1x384xf32> to vector<2x384xf32>
    %134 = arith.addf %131, %133 : vector<2x384xf32>
    %cst_52 = arith.constant 0.000000e+00 : f32
    %135 = vector.broadcast %cst_52 : f32 to vector<2x384xf32>
    %136 = arith.maximumf %134, %135 : vector<2x384xf32>
    %c1856 = arith.constant 1856 : index
    %c0_53 = arith.constant 0 : index
    %137 = vector.load %arg2[%c1856, %c0_53] : memref<3392x384xbf16, #tpu.memory_space<vmem>>, vector<384x384xbf16>
    %138 = arith.truncf %136 : vector<2x384xf32> to vector<2x384xbf16>
    %cst_54 = arith.constant dense<0.000000e+00> : vector<2x384xf32>
    %139 = tpu.matmul %138, %137, %cst_54 {dimension_numbers = #tpu.dot_dimension_numbers<[1], [0], [0], [1], [0, 0, 1, 1], [], []>} : vector<2x384xbf16>, vector<384x384xbf16>, vector<2x384xf32> -> vector<2x384xf32>
    %c12 = arith.constant 12 : index
    %c0_55 = arith.constant 0 : index
    %140 = vector.load %arg3[%c12, %c0_55] : memref<16x384xf32, #tpu.memory_space<vmem>>, vector<1x384xf32>
    %141 = vector.broadcast %140 : vector<1x384xf32> to vector<2x384xf32>
    %142 = arith.addf %139, %141 : vector<2x384xf32>
    %cst_56 = arith.constant dense<0.000000e+00> : vector<384xf32>
    %143 = vector.multi_reduction <add>, %142, %cst_56 [0] : vector<2x384xf32> to vector<384xf32>
    %144 = vector.shape_cast %143 : vector<384xf32> to vector<1x384xf32>
    %145 = arith.mulf %142, %142 : vector<2x384xf32>
    %cst_57 = arith.constant dense<0.000000e+00> : vector<384xf32>
    %146 = vector.multi_reduction <add>, %145, %cst_57 [0] : vector<2x384xf32> to vector<384xf32>
    %147 = vector.shape_cast %146 : vector<384xf32> to vector<1x384xf32>
    %148 = tpu.iota {dimensions = array<i32: 0>} : vector<2x384xi32>
    %c0_i32_58 = arith.constant 0 : i32
    %149 = vector.broadcast %c0_i32_58 : i32 to vector<2x384xi32>
    %150 = arith.cmpi eq, %148, %149 : vector<2x384xi32>
    %151 = vector.shape_cast %144 : vector<1x384xf32> to vector<1x384xf32>
    %152 = vector.broadcast %151 : vector<1x384xf32> to vector<2x384xf32>
    %153 = vector.shape_cast %147 : vector<1x384xf32> to vector<1x384xf32>
    %154 = vector.broadcast %153 : vector<1x384xf32> to vector<2x384xf32>
    %155 = arith.select %150, %152, %154 : vector<2x384xi1>, vector<2x384xf32>
    %c3008 = arith.constant 3008 : index
    %c0_59 = arith.constant 0 : index
    %156 = vector.load %arg2[%c3008, %c0_59] : memref<3392x384xbf16, #tpu.memory_space<vmem>>, vector<384x384xbf16>
    %157 = arith.truncf %155 : vector<2x384xf32> to vector<2x384xbf16>
    %cst_60 = arith.constant dense<0.000000e+00> : vector<2x384xf32>
    %158 = tpu.matmul %157, %156, %cst_60 {dimension_numbers = #tpu.dot_dimension_numbers<[1], [0], [0], [1], [0, 0, 1, 1], [], []>} : vector<2x384xbf16>, vector<384x384xbf16>, vector<2x384xf32> -> vector<2x384xf32>
    %cst_61 = arith.constant 0.010416667 : f32
    %159 = vector.broadcast %cst_61 : f32 to vector<2x384xf32>
    %160 = arith.mulf %158, %159 : vector<2x384xf32>
    %161 = vector.extract_strided_slice %160 {offsets = [0, 0], sizes = [1, 384], strides = [1, 1]} : vector<2x384xf32> to vector<1x384xf32>
    %162 = vector.extract_strided_slice %160 {offsets = [1, 0], sizes = [1, 384], strides = [1, 1]} : vector<2x384xf32> to vector<1x384xf32>
    %163 = arith.mulf %161, %161 : vector<1x384xf32>
    %164 = arith.subf %162, %163 : vector<1x384xf32>
    %cst_62 = arith.constant 0.000000e+00 : f32
    %165 = vector.broadcast %cst_62 : f32 to vector<1x384xf32>
    %166 = arith.maximumf %164, %165 : vector<1x384xf32>
    %167 = vector.broadcast %161 : vector<1x384xf32> to vector<2x384xf32>
    %168 = arith.subf %142, %167 : vector<2x384xf32>
    %cst_63 = arith.constant 9.99999974E-6 : f32
    %169 = vector.broadcast %cst_63 : f32 to vector<1x384xf32>
    %170 = arith.addf %166, %169 : vector<1x384xf32>
    %171 = math.rsqrt %170 : vector<1x384xf32>
    %172 = vector.broadcast %171 : vector<1x384xf32> to vector<2x384xf32>
    %173 = arith.mulf %168, %172 : vector<2x384xf32>
    %c13 = arith.constant 13 : index
    %c0_64 = arith.constant 0 : index
    %174 = vector.load %arg3[%c13, %c0_64] : memref<16x384xf32, #tpu.memory_space<vmem>>, vector<1x384xf32>
    %175 = vector.broadcast %174 : vector<1x384xf32> to vector<2x384xf32>
    %176 = arith.mulf %173, %175 : vector<2x384xf32>
    %c14 = arith.constant 14 : index
    %c0_65 = arith.constant 0 : index
    %177 = vector.load %arg3[%c14, %c0_65] : memref<16x384xf32, #tpu.memory_space<vmem>>, vector<1x384xf32>
    %178 = vector.broadcast %177 : vector<1x384xf32> to vector<2x384xf32>
    %179 = arith.addf %176, %178 : vector<2x384xf32>
    %cst_66 = arith.constant 0.000000e+00 : f32
    %180 = vector.broadcast %cst_66 : f32 to vector<2x384xf32>
    %181 = arith.maximumf %179, %180 : vector<2x384xf32>
    %c2240 = arith.constant 2240 : index
    %c0_67 = arith.constant 0 : index
    %182 = vector.load %arg2[%c2240, %c0_67] : memref<3392x384xbf16, #tpu.memory_space<vmem>>, vector<384x256xbf16>
    %183 = arith.truncf %181 : vector<2x384xf32> to vector<2x384xbf16>
    %cst_68 = arith.constant dense<0.000000e+00> : vector<2x256xf32>
    %184 = tpu.matmul %183, %182, %cst_68 {dimension_numbers = #tpu.dot_dimension_numbers<[1], [0], [0], [1], [0, 0, 1, 1], [], []>} : vector<2x384xbf16>, vector<384x256xbf16>, vector<2x256xf32> -> vector<2x256xf32>
    %c15 = arith.constant 15 : index
    %c0_69 = arith.constant 0 : index
    %185 = vector.load %arg3[%c15, %c0_69] : memref<16x384xf32, #tpu.memory_space<vmem>>, vector<1x256xf32>
    %186 = vector.broadcast %185 : vector<1x256xf32> to vector<2x256xf32>
    %187 = arith.addf %184, %186 : vector<2x256xf32>
    %c0_70 = arith.constant 0 : index
    %c0_71 = arith.constant 0 : index
    %188 = vector.load %arg4[%c0_70, %c0_71] : memref<2x256xf32, #tpu.memory_space<vmem>>, vector<2x256xf32>
    tpu.vector_store %arg4[%c0_70, %c0_71], %187 {strides = array<i32>} : memref<2x256xf32, #tpu.memory_space<vmem>>, vector<2x256xf32>,
    return
  }
  func.func @transform_0(%arg0: i32) -> (i32, i32) {
    %c0_i32 = arith.constant 0 : i32
    %c0_i32_0 = arith.constant 0 : i32
    %c0_i32_1 = arith.constant 0 : i32
    return %c0_i32, %c0_i32_0 : i32, i32
  }
  func.func @transform_1(%arg0: i32) -> (i32, i32) {
    %c0_i32 = arith.constant 0 : i32
    %c0_i32_0 = arith.constant 0 : i32
    %c0_i32_1 = arith.constant 0 : i32
    return %c0_i32, %c0_i32_0 : i32, i32
  }
  func.func @transform_2(%arg0: i32) -> (i32, i32) {
    %c0_i32 = arith.constant 0 : i32
    %c0_i32_0 = arith.constant 0 : i32
    %c0_i32_1 = arith.constant 0 : i32
    return %c0_i32, %c0_i32_0 : i32, i32
  }
  func.func @transform_3(%arg0: i32) -> (i32, i32) {
    %c0_i32 = arith.constant 0 : i32
    %c0_i32_0 = arith.constant 0 : i32
    %c0_i32_1 = arith.constant 0 : i32
    return %c0_i32, %c0_i32_0 : i32, i32
  }
}

</mosaic_0001>

<bundles_post_ra>
// kernel: forward.1
= control target key start
LH: loop header
LB: loop body
LE: loop exit
PB: predicated region body
PF: predicated region fallthrough
CT: control target
= control target key end

     0   :  { %8 = vsyncpa [#allocation3], 0  ;;  %s7481_s0 = inlined_call_operand.vmem [shape: f32[2,192], index: 0, kind: input, shape index: {}]   ;;  %s7482_s1 = inlined_call_operand.hbm [shape: bf16[3392,384], index: 1, kind: input, shape index: {}]   ;;  %s7483_s2 = inlined_call_operand.hbm [shape: f32[16,384], index: 2, kind: input, shape index: {}]   ;;  %s7484_s3 = inlined_call_operand.vmem [shape: f32[2,256], index: 3, kind: output, shape index: {}]  }
   0x1   :  { %9 = vsyncpa [#allocation5], 0  ;;  %s7144_s12 = smov [#allocation2]   ;;  %s7096_s16 = scalar_lea.hbm %s7482_s1, 81408 }
   0x2   :  { %s17_s13 = sshll.u32 %s7144_s12, 4  ;;  %p7097_p0 = scmp.ne.s32.totalorder %s7482_s1, %s7096_s16  ;;  %s18_s13 = int_to_ptr.vmem [resolvable:$true] %s17_s13 }
   0x3   :  { %p7100_p1 = scmp.lt.u32.totalorder %s7096_s16, %s7482_s1 }
   0x5   :  { %p7102_p2 = pnand %p7100_p1, %p7097_p0 }
   0x7   :  { %7105 = shalt.err (!%p7102_p2)
}
   0x8   :  { %s7106_s21 = scalar_lea.vmem %s18_s13, 81408  ;;  %p7111_p4 = scmp.lt.s32.totalorder %s18_s13, %s18_s13 }
   0x9   :  { %p7107_p3 = scmp.ne.s32.totalorder %s18_s13, %s7106_s21  ;;  %p7112_p5 = scmp.lt.s32.totalorder %s7106_s21, %s7106_s21 }
   0xb   :  { %p7113_p6 = por %p7112_p5, %p7111_p4 }
   0xd   :  { %p7114_p7 = pnand %p7113_p6, %p7107_p3 }
   0xf   :  { %7117 = shalt.err (!%p7114_p7)
}
  0x10   :  { %s7145_s22 = smov 192   ;;  %s7146_s23 = smov 12  }
  0x11   :  { %23 = dma.hbm_to_vmem [thread:$0]  %s7482_s1, 81408, %s18_s13, [#allocation3], %s7145_s22, %s7145_s22, %s7146_s23  }
  0x12   :  { %s7147_s26 = smov [#allocation4]   ;;  %s7118_s30 = scalar_lea.hbm %s7483_s2, 768 }
  0x13   :  { %s29_s27 = sshll.u32 %s7147_s26, 4  ;;  %p7119_p8 = scmp.ne.s32.totalorder %s7483_s2, %s7118_s30  ;;  %s30_s27 = int_to_ptr.vmem [resolvable:$true] %s29_s27 }
  0x14   :  { %p7122_p9 = scmp.lt.u32.totalorder %s7118_s30, %s7483_s2 }
  0x16   :  { %p7124_p10 = pnand %p7122_p9, %p7119_p8 }
  0x18   :  { %7127 = shalt.err (!%p7124_p10)
}
  0x19   :  { %s7128_s8 = scalar_lea.vmem %s30_s27, 768  ;;  %p7133_p12 = scmp.lt.s32.totalorder %s30_s27, %s30_s27 }
  0x1a   :  { %p7129_p11 = scmp.ne.s32.totalorder %s30_s27, %s7128_s8  ;;  %p7134_p13 = scmp.lt.s32.totalorder %s7128_s8, %s7128_s8 }
  0x1c   :  { %p7135_p0 = por %p7134_p13, %p7133_p12 }
  0x1e   :  { %p7136_p1 = pnand %p7135_p0, %p7129_p11 }
  0x20   :  { %7139 = shalt.err (!%p7136_p1)
}
  0x21   :  { %s7148_s1 = smov 384   ;;  %s7149_s9 = smov 24  }
  0x22   :  { %35 = dma.hbm_to_vmem [thread:$0]  %s7483_s2, 768, %s30_s27, [#allocation5], %s7148_s1, %s7148_s1, %s7149_s9  }
  0x23   :  { %7140 = dma.done.wait [#allocation3], 81408  }
  0x24   :  { %7141 = vsyncadd [#allocation3], 4294885888 }
  0x25   :  { %7142 = dma.done.wait [#allocation5], 768  }
  0x26   :  { %7143 = vsyncadd [#allocation5], 4294966528  ;;  %v7150_v0 = vmov 0   ;;  %v6310_v1 = vld [vmem:[#allocation2 + $0x4] ss:$12 sps:$4 sm:$0xff]   ;;  %vm314_vm0 = vcmask 523264  }
  0x27   :  { %359 = vmatprep.subr.bf16.mxu1 %v7150_v0  ;;  %v6312_v2 = vld [vmem:[#allocation2] ss:$12 sps:$4 sm:$0xff]   ;;  %318 = vmatprep.subr.bf16.mxu0 %v6310_v1  ;;  %v6313_v3 = vld [vmem:[#allocation2 + $0x1c] ss:$12 sps:$4 sm:$0xff]   ;;  %v6315_v4 = vld [vmem:[#allocation2 + $0x18] ss:$12 sps:$4 sm:$0xff]  }
  0x28   :  { %319 = vmatpush1.bf16.msra.mxu0 %v6312_v2  ;;  %v6316_v5 = vld [vmem:[#allocation2 + $0x34] ss:$12 sps:$4 sm:$0xff]   ;;  %v6318_v6 = vld [vmem:[#allocation2 + $0x30] ss:$12 sps:$4 sm:$0xff]   ;;  %v6319_v7 = vld [vmem:[#allocation2 + $0x4c] ss:$12 sps:$4 sm:$0xff]  }
  0x29   :  { %320 = vmatprep.subr.bf16.mxu0 %v6313_v3  ;;  %v6321_v8 = vld [vmem:[#allocation2 + $0x48] ss:$12 sps:$4 sm:$0xff]   ;;  %v6322_v9 = vld [vmem:[#allocation2 + $0x64] ss:$12 sps:$4 sm:$0xff]   ;;  %v6340_v11 = vld [vmem:[#allocation2 + $0x20] ss:$12 sps:$4 sm:$0xff]  }
  0x2a   :  { %v6336_v10 = vld [vmem:[#allocation2 + $0x8] ss:$12 sps:$4 sm:$0xff]   ;;  %v6324_v12 = vld [vmem:[#allocation2 + $0x60] ss:$12 sps:$4 sm:$0xff]   ;;  %v6344_v14 = vld [vmem:[#allocation2 + $0x38] ss:$12 sps:$4 sm:$0xff]  }
  0x2b   :  { %360 = vmatpush1.bf16.msra.mxu1 %v6336_v10  ;;  %v6325_v13 = vld [vmem:[#allocation2 + $0x7c] ss:$12 sps:$4 sm:$0xff]   ;;  %v6327_v15 = vld [vmem:[#allocation2 + $0x78] ss:$12 sps:$4 sm:$0xff]   ;;  %v6328_v16 = vld [vmem:[#allocation2 + $0x94] ss:$12 sps:$4 sm:$0xff]  }
  0x2c   :  { %321 = vmatpush1.bf16.msra.mxu0 %v6315_v4  ;;  %361 = vmatprep.subr.bf16.mxu1 %v7150_v0  ;;  %v5388_v17 = vld.sshfl [vmem:[%s7481_s0] sm:$0x33 pattern:$0x76325410]  ;;  %v6348_v19 = vld [vmem:[#allocation2 + $0x50] ss:$12 sps:$4 sm:$0xff]  }
  0x2d   :  { %322 = vmatprep.subr.bf16.mxu0 %v6316_v5  ;;  %v100_v18 = vcombine.high %v5388_v17, %v5388_v17  ;;  %v6330_v20 = vld [vmem:[#allocation2 + $0x90] ss:$12 sps:$4 sm:$0xff]   ;;  %v6331_v22 = vld [vmem:[#allocation2 + $0xac] ss:$12 sps:$4 sm:$0xff]   ;;  %v6350_v23 = vld [vmem:[#allocation2 + $0x68] ss:$12 sps:$4 sm:$0xff]   ;;  %v103_v38 = vpack.c.bf16 %v5388_v17, %v5388_v17 }
  0x2e   :  { %v6333_v24 = vld [vmem:[#allocation2 + $0xa8] ss:$12 sps:$4 sm:$0xff]   ;;  %v6334_v25 = vld [vmem:[#allocation2 + $0xc4] ss:$12 sps:$4 sm:$0xff]   ;;  %v6351_v26 = vld [vmem:[#allocation2 + $0x80] ss:$12 sps:$4 sm:$0xff]  }
  0x2f   :  { %362 = vmatpush1.bf16.msra.mxu1 %v6340_v11  ;;  %v104_v21 = vpack.c.bf16 %v100_v18, %v100_v18  ;;  %v6337_v27 = vld [vmem:[#allocation2 + $0xc0] ss:$12 sps:$4 sm:$0xff]   ;;  %v6338_v28 = vld [vmem:[#allocation2 + $0xdc] ss:$12 sps:$4 sm:$0xff]   ;;  %v6352_v29 = vld [vmem:[#allocation2 + $0x98] ss:$12 sps:$4 sm:$0xff]  }
  0x30   :  { %323 = vmatpush1.bf16.msra.mxu0 %v6318_v6  ;;  %363 = vmatprep.subr.bf16.mxu1 %v7150_v0  ;;  %v6341_v30 = vld [vmem:[#allocation2 + $0xd8] ss:$12 sps:$4 sm:$0xff]   ;;  %v6342_v31 = vld [vmem:[#allocation2 + $0xf4] ss:$12 sps:$4 sm:$0xff]   ;;  %v6353_v32 = vld [vmem:[#allocation2 + $0xb0] ss:$12 sps:$4 sm:$0xff]  }
  0x31   :  { %324 = vmatprep.subr.bf16.mxu0 %v6319_v7  ;;  %5425 = vmatprep.mubr.msk.bf16.mxu0 %vm314_vm0, %v104_v21  ;;  %v6345_v33 = vld [vmem:[#allocation2 + $0xf0] ss:$12 sps:$4 sm:$0xff]   ;;  %v6346_v34 = vld [vmem:[#allocation2 + $0x10c] ss:$12 sps:$4 sm:$0xff]   ;;  %v6354_v35 = vld [vmem:[#allocation2 + $0xc8] ss:$12 sps:$4 sm:$0xff]  }
  0x32   :  { %5426 = vmatprep.mubr.msk.bf16.mxu1 %vm314_vm0, %v104_v21  ;;  %v6349_v36 = vld [vmem:[#allocation2 + $0x108] ss:$12 sps:$4 sm:$0xff]   ;;  %v6360_v37 = vld [vmem:[#allocation2 + $0x124] ss:$12 sps:$4 sm:$0xff]   ;;  %v6355_v39 = vld [vmem:[#allocation2 + $0xe0] ss:$12 sps:$4 sm:$0xff]   ;;  %v107_v21 = vlaneseq }
  0x33   :  { %364 = vmatpush1.bf16.msra.mxu1 %v6344_v14  ;;  %v6358_v40 = vld [vmem:[#allocation2 + $0x120] ss:$12 sps:$4 sm:$0xff]   ;;  %v6363_v41 = vld [vmem:[#allocation2 + $0x13c] ss:$12 sps:$4 sm:$0xff]   ;;  %v6356_v42 = vld [vmem:[#allocation2 + $0xf8] ss:$12 sps:$4 sm:$0xff]  }
  0x34   :  { %325 = vmatpush1.bf16.msra.mxu0 %v6321_v8  ;;  %365 = vmatprep.subr.bf16.mxu1 %v7150_v0  ;;  %v6361_v43 = vld [vmem:[#allocation2 + $0x138] ss:$12 sps:$4 sm:$0xff]   ;;  %v6366_v44 = vld [vmem:[#allocation2 + $0x154] ss:$12 sps:$4 sm:$0xff]   ;;  %v6357_v45 = vld [vmem:[#allocation2 + $0x110] ss:$12 sps:$4 sm:$0xff]  }
  0x35   :  { %326 = vmatprep.subr.bf16.mxu0 %v6322_v9  ;;  %v6364_v46 = vld [vmem:[#allocation2 + $0x150] ss:$12 sps:$4 sm:$0xff]   ;;  %v6369_v47 = vld [vmem:[#allocation2 + $0x16c] ss:$12 sps:$4 sm:$0xff]   ;;  %v6367_v48 = vld [vmem:[#allocation2 + $0x168] ss:$12 sps:$4 sm:$0xff]  }
  0x36   :  { %v6372_v49 = vld [vmem:[#allocation2 + $0x184] ss:$12 sps:$4 sm:$0xff]   ;;  %v6370_v50 = vld [vmem:[#allocation2 + $0x180] ss:$12 sps:$4 sm:$0xff]   ;;  %v6375_v51 = vld [vmem:[#allocation2 + $0x19c] ss:$12 sps:$4 sm:$0xff]  }
  0x37   :  { %366 = vmatpush1.bf16.msra.mxu1 %v6348_v19  ;;  %v6373_v52 = vld [vmem:[#allocation2 + $0x198] ss:$12 sps:$4 sm:$0xff]   ;;  %v6378_v53 = vld [vmem:[#allocation2 + $0x1b4] ss:$12 sps:$4 sm:$0xff]   ;;  %v6376_v54 = vld [vmem:[#allocation2 + $0x1b0] ss:$12 sps:$4 sm:$0xff]  }
  0x38   :  { %327 = vmatpush1.bf16.msra.mxu0 %v6324_v12  ;;  %367 = vmatprep.subr.bf16.mxu1 %v7150_v0  ;;  %v6381_v55 = vld [vmem:[#allocation2 + $0x1cc] ss:$12 sps:$4 sm:$0xff]   ;;  %v6379_v56 = vld [vmem:[#allocation2 + $0x1c8] ss:$12 sps:$4 sm:$0xff]   ;;  %v6384_v57 = vld [vmem:[#allocation2 + $0x1e4] ss:$12 sps:$4 sm:$0xff]  }
  0x39   :  { %328 = vmatprep.subr.bf16.mxu0 %v6325_v13  ;;  %v6382_v58 = vld [vmem:[#allocation2 + $0x1e0] ss:$12 sps:$4 sm:$0xff]   ;;  %v6387_v59 = vld [vmem:[#allocation2 + $0x1fc] ss:$12 sps:$4 sm:$0xff]   ;;  %v6385_v60 = vld [vmem:[#allocation2 + $0x1f8] ss:$12 sps:$4 sm:$0xff]  }
  0x3a   :  { %v6390_v61 = vld [vmem:[#allocation2 + $0x214] ss:$12 sps:$4 sm:$0xff]   ;;  %v6388_v62 = vld [vmem:[#allocation2 + $0x210] ss:$12 sps:$4 sm:$0xff]   ;;  %v6393_v63 = vld [vmem:[#allocation2 + $0x22c] ss:$12 sps:$4 sm:$0xff]  }
  0x3b   :  { %368 = vmatpush1.bf16.msra.mxu1 %v6350_v23  ;;  %v6391_v1 = vld [vmem:[#allocation2 + $0x228] ss:$12 sps:$4 sm:$0xff]   ;;  %v6396_v2 = vld [vmem:[#allocation2 + $0x244] ss:$12 sps:$4 sm:$0xff]   ;;  %v6394_v3 = vld [vmem:[#allocation2 + $0x240] ss:$12 sps:$4 sm:$0xff]  }
  0x3c   :  { %329 = vmatpush1.bf16.msra.mxu0 %v6327_v15  ;;  %369 = vmatprep.subr.bf16.mxu1 %v7150_v0  ;;  %v6399_v4 = vld [vmem:[#allocation2 + $0x25c] ss:$12 sps:$4 sm:$0xff]   ;;  %v6397_v5 = vld [vmem:[#allocation2 + $0x258] ss:$12 sps:$4 sm:$0xff]   ;;  %v6402_v6 = vld [vmem:[#allocation2 + $0x274] ss:$12 sps:$4 sm:$0xff]  }
  0x3d   :  { %330 = vmatprep.subr.bf16.mxu0 %v6328_v16  ;;  %v6400_v7 = vld [vmem:[#allocation2 + $0x270] ss:$12 sps:$4 sm:$0xff]   ;;  %v6405_v8 = vld [vmem:[#allocation2 + $0x28c] ss:$12 sps:$4 sm:$0xff]   ;;  %v6403_v9 = vld [vmem:[#allocation2 + $0x288] ss:$12 sps:$4 sm:$0xff]  }
  0x3e   :  { %v6406_v10 = vld [vmem:[#allocation2 + $0x2a8] ss:$12 sps:$4 sm:$0xff]   ;;  %v7151_v11 = vmov 0.0   ;;  %v6409_v12 = vld [vmem:[#allocation2 + $0x2a4] ss:$12 sps:$4 sm:$0xff]   ;;  %vm7152_vm1 = vmmov 0  }
  0x3f   :  { %370 = vmatpush1.bf16.msra.mxu1 %v6351_v26  ;;  %v6410_v13 = vld [vmem:[#allocation2 + $0x2c0] ss:$12 sps:$4 sm:$0xff]   ;;  %v6414_v14 = vld [vmem:[#allocation2 + $0x2d8] ss:$12 sps:$4 sm:$0xff]   ;;  %v6418_v15 = vld [vmem:[#allocation2 + $0x2f0] ss:$12 sps:$4 sm:$0xff]  }
  0x40   :  { %331 = vmatpush1.bf16.msra.mxu0 %v6330_v20  ;;  %371 = vmatprep.subr.bf16.mxu1 %v7150_v0  ;;  %v6422_v16 = vld [vmem:[#allocation2 + $0x308] ss:$12 sps:$4 sm:$0xff]   ;;  %v6426_v17 = vld [vmem:[#allocation2 + $0x320] ss:$12 sps:$4 sm:$0xff]   ;;  %v6430_v18 = vld [vmem:[#allocation2 + $0x338] ss:$12 sps:$4 sm:$0xff]  }
  0x41   :  { %332 = vmatprep.subr.bf16.mxu0 %v6331_v22  ;;  %v6434_v19 = vld [vmem:[#allocation2 + $0x350] ss:$12 sps:$4 sm:$0xff]   ;;  %v7222_v22 = vshrl.u32 %v107_v21, 7  ;;  %v6443_v21 = vld [vmem:[#allocation2 + $0x158] ss:$12 sps:$4 sm:$0xff]   ;;  %vm1065_vm2 = vcmask 1041408  }
  0x42   :  { %v6456_v20 = vld [vmem:[#allocation2 + $0xf64] ss:$12 sps:$4 sm:$0xff]  }
  0x43   :  { %372 = vmatpush1.bf16.msra.mxu1 %v6352_v29  ;;  %v105_v23 = vld [vmem:[#allocation4] ss:$8 sm:$0x7]  ;;  %vm1113_vm3 = vcmp.eq.s32.totalorder %v7222_v22, 0 }
  0x44   :  { %333 = vmatpush1.bf16.msra.mxu0 %v6333_v24  ;;  %373 = vmatprep.subr.bf16.mxu1 %v7150_v0  ;;  %v7225_v24 = vsub.s32 0, %v7222_v22 }
  0x45   :  { %334 = vmatprep.subr.bf16.mxu0 %v6334_v25  ;;  %v7228_v25 = vsub.s32 1, %v7222_v22 }
  0x46   :  { %v110_v26 = vrot.slane %v105_v23, %v7225_v24 }
  0x47   :  { %374 = vmatpush1.bf16.msra.mxu1 %v6353_v32 }
  0x48   :  { %335 = vmatpush1.bf16.msra.mxu0 %v6337_v27  ;;  %375 = vmatprep.subr.bf16.mxu1 %v7150_v0  ;;  %v114_v27 = vrot.slane %v105_v23, %v7228_v25 }
  0x49   :  { %336 = vmatprep.subr.bf16.mxu0 %v6338_v28 }
  0x4b   :  { %376 = vmatpush1.bf16.msra.mxu1 %v6354_v35 }
  0x4c   :  { %337 = vmatpush1.bf16.msra.mxu0 %v6341_v30  ;;  %377 = vmatprep.subr.bf16.mxu1 %v7150_v0 }
  0x4d   :  { %338 = vmatprep.subr.bf16.mxu0 %v6342_v31 }
  0x4f   :  { %378 = vmatpush1.bf16.msra.mxu1 %v6355_v39 }
  0x50   :  { %339 = vmatpush1.bf16.msra.mxu0 %v6345_v33  ;;  %379 = vmatprep.subr.bf16.mxu1 %v7150_v0 }
  0x51   :  { %340 = vmatprep.subr.bf16.mxu0 %v6346_v34 }
  0x53   :  { %380 = vmatpush1.bf16.msra.mxu1 %v6356_v42  ;;  %v6411_v42 = vld [vmem:[#allocation2 + $0x2b8] ss:$12 sps:$4 sm:$0xff]  }
  0x54   :  { %341 = vmatpush1.bf16.msra.mxu0 %v6349_v36  ;;  %381 = vmatprep.subr.bf16.mxu1 %v7150_v0  ;;  %v6407_v36 = vld [vmem:[#allocation2 + $0x2a0] ss:$12 sps:$4 sm:$0xff]  }
  0x55   :  { %903 = vmatprep.subr.bf16.mxu0 %v6360_v37  ;;  %v7233_v37 = vsub.s32 2, %v7222_v22  ;;  %v6943_v22 = vld [vmem:[#allocation2 + $0xd68] ss:$12 sps:$4 sm:$0xff]  }
  0x57   :  { %351 = vmatmul.mubr.bf16.vlgmr.msra.gmra.mrb[0].mxu0 %v103_v38  ;;  %382 = vmatpush1.bf16.msra.mxu1 %v6357_v45 }
  0x58   :  { %904 = vmatpush1.bf16.msra.mxu0 %v6358_v40  ;;  %6125 = vmatprep.subr.bf16.mxu1 %v7151_v11 }
  0x59   :  { %905 = vmatprep.subr.bf16.mxu0 %v6363_v41  ;;  %v118_v41 = vrot.slane %v105_v23, %v7233_v37  ;;  %v6444_v23 = vld [vmem:[#allocation2 + $0x230] ss:$12 sps:$4 sm:$0xff]  }
  0x5a   :  { %392 = vmatmul.mubr.bf16.vlgmr.msra.gmra.mrb[0].mxu1 %v103_v38  ;;  %v6413_v38 = vld [vmem:[#allocation2 + $0x2bc] ss:$12 sps:$4 sm:$0xff]  }
  0x5b   :  { %6126 = vmatpush3.bf16.msra.mxu1 %v6406_v10  ;;  %6141 = vmatprep.mubr.msk.bf16.mxu1 %vm7152_vm1, %v7151_v11  ;;  %v6469_v10 = vld [vmem:[#allocation2 + $0xfd8] ss:$12 sps:$4 sm:$0xff]  }
  0x5c   :  { %906 = vmatpush1.bf16.msra.mxu0 %v6361_v43  ;;  %6127 = vmatprep.subr.bf16.mxu1 %v7151_v11  ;;  %v6417_v43 = vld [vmem:[#allocation2 + $0x2d4] ss:$12 sps:$4 sm:$0xff]  }
  0x5d   :  { %907 = vmatprep.subr.bf16.mxu0 %v6366_v44 }
  0x5f   :  { %6128 = vmatpush3.bf16.msra.mxu1 %v6410_v13  ;;  %v6439_v13 = vld [vmem:[#allocation2 + $0x128] ss:$12 sps:$4 sm:$0xff]  }
  0x60   :  { %908 = vmatpush1.bf16.msra.mxu0 %v6364_v46  ;;  %6129 = vmatprep.subr.bf16.mxu1 %v7151_v11 }
  0x61   :  { %909 = vmatprep.subr.bf16.mxu0 %v6369_v47 }
  0x63   :  { %6130 = vmatpush3.bf16.msra.mxu1 %v6414_v14  ;;  %v6440_v14 = vld [vmem:[#allocation2 + $0x200] ss:$12 sps:$4 sm:$0xff]  }
  0x64   :  { %910 = vmatpush1.bf16.msra.mxu0 %v6367_v48  ;;  %6131 = vmatprep.subr.bf16.mxu1 %v7151_v11  ;;  %v6415_v48 = vld [vmem:[#allocation2 + $0x2d0] ss:$12 sps:$4 sm:$0xff]  }
  0x65   :  { %911 = vmatprep.subr.bf16.mxu0 %v6372_v49 }
  0x67   :  { %6132 = vmatpush3.bf16.msra.mxu1 %v6418_v15  ;;  %v6472_v15 = vld [vmem:[#allocation2 + $0xff0] ss:$12 sps:$4 sm:$0xff]  }
  0x68   :  { %912 = vmatpush1.bf16.msra.mxu0 %v6370_v50  ;;  %6133 = vmatprep.subr.bf16.mxu1 %v7151_v11 }
  0x69   :  { %913 = vmatprep.subr.bf16.mxu0 %v6375_v51  ;;  %v6421_v51 = vld [vmem:[#allocation2 + $0x2ec] ss:$12 sps:$4 sm:$0xff]  }
  0x6b   :  { %6134 = vmatpush3.bf16.msra.mxu1 %v6422_v16  ;;  %v6477_v16 = vld [vmem:[#allocation2 + $0x100c] ss:$12 sps:$4 sm:$0xff]  }
  0x6c   :  { %914 = vmatpush1.bf16.msra.mxu0 %v6373_v52  ;;  %6135 = vmatprep.subr.bf16.mxu1 %v7151_v11  ;;  %v6454_v52 = vld [vmem:[#allocation2 + $0xf60] ss:$12 sps:$4 sm:$0xff]  }
  0x6d   :  { %915 = vmatprep.subr.bf16.mxu0 %v6378_v53 }
  0x6f   :  { %6136 = vmatpush3.bf16.msra.mxu1 %v6426_v17  ;;  %v6441_v17 = vld [vmem:[#allocation2 + $0x140] ss:$12 sps:$4 sm:$0xff]  }
  0x70   :  { %916 = vmatpush1.bf16.msra.mxu0 %v6376_v54  ;;  %6137 = vmatprep.subr.bf16.mxu1 %v7151_v11  ;;  %v6459_v54 = vld [vmem:[#allocation2 + $0xf7c] ss:$12 sps:$4 sm:$0xff]  }
  0x71   :  { %917 = vmatprep.subr.bf16.mxu0 %v6381_v55  ;;  %v6419_v55 = vld [vmem:[#allocation2 + $0x2e8] ss:$12 sps:$4 sm:$0xff]  }
  0x73   :  { %6138 = vmatpush3.bf16.msra.mxu1 %v6430_v18  ;;  %v6442_v18 = vld [vmem:[#allocation2 + $0x218] ss:$12 sps:$4 sm:$0xff]  }
  0x74   :  { %918 = vmatpush1.bf16.msra.mxu0 %v6379_v56  ;;  %6139 = vmatprep.subr.bf16.mxu1 %v7151_v11  ;;  %v6425_v56 = vld [vmem:[#allocation2 + $0x304] ss:$12 sps:$4 sm:$0xff]  }
  0x75   :  { %919 = vmatprep.subr.bf16.mxu0 %v6384_v57  ;;  %v6457_v57 = vld [vmem:[#allocation2 + $0xf78] ss:$12 sps:$4 sm:$0xff]  }
  0x77   :  { %6140 = vmatpush3.bf16.msra.mxu1 %v6434_v19  ;;  %v6475_v19 = vld [vmem:[#allocation2 + $0x1008] ss:$12 sps:$4 sm:$0xff]  }
  0x78   :  { %920 = vmatpush1.bf16.msra.mxu0 %v6382_v58  ;;  %1600 = vmatprep.subr.bf16.mxu1 %v6456_v20  ;;  %v6462_v58 = vld [vmem:[#allocation2 + $0xf94] ss:$12 sps:$4 sm:$0xff]   ;;  %v6480_v20 = vld [vmem:[#allocation2 + $0x1024] ss:$12 sps:$4 sm:$0xff]  }
  0x79   :  { %921 = vmatprep.subr.bf16.mxu0 %v6387_v59  ;;  %v6423_v59 = vld [vmem:[#allocation2 + $0x300] ss:$12 sps:$4 sm:$0xff]  }
  0x7c   :  { %922 = vmatpush1.bf16.msra.mxu0 %v6385_v60  ;;  %v6429_v60 = vld [vmem:[#allocation2 + $0x31c] ss:$12 sps:$4 sm:$0xff]  }
  0x7d   :  { %923 = vmatprep.subr.bf16.mxu0 %v6390_v61  ;;  %v6460_v61 = vld [vmem:[#allocation2 + $0xf90] ss:$12 sps:$4 sm:$0xff]  }
  0x80   :  { %924 = vmatpush1.bf16.msra.mxu0 %v6388_v62  ;;  %v6465_v62 = vld [vmem:[#allocation2 + $0xfac] ss:$12 sps:$4 sm:$0xff]  }
  0x81   :  { %925 = vmatprep.subr.bf16.mxu0 %v6393_v63  ;;  %v6427_v63 = vld [vmem:[#allocation2 + $0x318] ss:$12 sps:$4 sm:$0xff]  }
  0x84   :  { %926 = vmatpush1.bf16.msra.mxu0 %v6391_v1  ;;  %v6433_v1 = vld [vmem:[#allocation2 + $0x334] ss:$12 sps:$4 sm:$0xff]  }
  0x85   :  { %927 = vmatprep.subr.bf16.mxu0 %v6396_v2  ;;  %v6463_v2 = vld [vmem:[#allocation2 + $0xfa8] ss:$12 sps:$4 sm:$0xff]  }
  0x88   :  { %928 = vmatpush1.bf16.msra.mxu0 %v6394_v3  ;;  %v6468_v3 = vld [vmem:[#allocation2 + $0xfc4] ss:$12 sps:$4 sm:$0xff]  }
  0x89   :  { %929 = vmatprep.subr.bf16.mxu0 %v6399_v4  ;;  %v6431_v4 = vld [vmem:[#allocation2 + $0x330] ss:$12 sps:$4 sm:$0xff]  }
  0x8c   :  { %930 = vmatpush1.bf16.msra.mxu0 %v6397_v5  ;;  %v6437_v5 = vld [vmem:[#allocation2 + $0x34c] ss:$12 sps:$4 sm:$0xff]  }
  0x8d   :  { %931 = vmatprep.subr.bf16.mxu0 %v6402_v6  ;;  %v6466_v6 = vld [vmem:[#allocation2 + $0xfc0] ss:$12 sps:$4 sm:$0xff]  }
  0x90   :  { %932 = vmatpush1.bf16.msra.mxu0 %v6400_v7  ;;  %v6471_v7 = vld [vmem:[#allocation2 + $0xfdc] ss:$12 sps:$4 sm:$0xff]  }
  0x91   :  { %933 = vmatprep.subr.bf16.mxu0 %v6405_v8  ;;  %v6435_v8 = vld [vmem:[#allocation2 + $0x348] ss:$12 sps:$4 sm:$0xff]  }
  0x94   :  { %934 = vmatpush1.bf16.msra.mxu0 %v6403_v9  ;;  %v6438_v9 = vld [vmem:[#allocation2 + $0x1e8] ss:$12 sps:$4 sm:$0xff]  }
  0x95   :  { %944 = vmatprep.subr.bf16.mxu0 %v6409_v12  ;;  %v6474_v12 = vld [vmem:[#allocation2 + $0xff4] ss:$12 sps:$4 sm:$0xff]  }
 0x12a   :  { %v352_v28 = vpop.f32.mrb[0].mxu0 }
 0x12b   :  { %v353_v29 = vadd.f32 %v352_v28, %v110_v26  ;;  %v354_v30 = vpop.f32.mrb[1].mxu0  ;;  %v6478_v26 = vld [vmem:[#allocation2 + $0x1020] ss:$12 sps:$4 sm:$0xff]   ;;  %v6445_v28 = vld [vmem:[#allocation2 + $0x170] ss:$12 sps:$4 sm:$0xff]  }
 0x12c   :  { %v355_v31 = vadd.f32 %v354_v30, %v114_v27  ;;  %v356_v32 = vpop.f32.mrb[2].mxu0  ;;  %v6485_v27 = vld [vmem:[#allocation2 + $0x103c] ss:$12 sps:$4 sm:$0xff]   ;;  %v6483_v30 = vld [vmem:[#allocation2 + $0x1038] ss:$12 sps:$4 sm:$0xff]  }
 0x12d   :  { %v399_v33 = vmax.f32 %v353_v29, 0.0  ;;  %v357_v34 = vpop.f32.mrb[3].mxu0  ;;  %v393_v44 = vpop.f32.mrb[0].mxu1  ;;  %v6446_v29 = vld [vmem:[#allocation2 + $0x248] ss:$12 sps:$4 sm:$0xff]  }
 0x12e   :  { %v400_v35 = vmax.f32 %v355_v31, 0.0  ;;  %v394_v45 = vadd.f32 %v393_v44, %v118_v41  ;;  %v395_v46 = vpop.f32.mrb[1].mxu1  ;;  %v6447_v31 = vld [vmem:[#allocation2 + $0x188] ss:$12 sps:$4 sm:$0xff]   ;;  %v6448_v32 = vld [vmem:[#allocation2 + $0x260] ss:$12 sps:$4 sm:$0xff]  }
 0x12f   :  { %v7237_v40 = vpack.c.bf16 %v399_v33, %v399_v33  ;;  %v396_v47 = vpop.f32.mrb[2].mxu1  ;;  %v6449_v33 = vld [vmem:[#allocation2 + $0x1a0] ss:$12 sps:$4 sm:$0xff]   ;;  %v6450_v34 = vld [vmem:[#allocation2 + $0x278] ss:$12 sps:$4 sm:$0xff]  }
 0x130   :  { %v7235_v39 = vpack.c.bf16 %v400_v35, %v400_v35  ;;  %v401_v49 = vmax.f32 %v394_v45, 0.0  ;;  %v397_v50 = vpop.f32.mrb[3].mxu1  ;;  %v6451_v35 = vld [vmem:[#allocation2 + $0x1b8] ss:$12 sps:$4 sm:$0xff]   ;;  %v6482_v41 = vld [vmem:[#allocation2 + $0xf68] ss:$12 sps:$4 sm:$0xff]  }
 0x131   :  { %v6488_v44 = vld [vmem:[#allocation2 + $0x1050] ss:$12 sps:$4 sm:$0xff]   ;;  %v6490_v45 = vld [vmem:[#allocation2 + $0x1054] ss:$12 sps:$4 sm:$0xff]   ;;  %v6491_v46 = vld [vmem:[#allocation2 + $0x1058] ss:$12 sps:$4 sm:$0xff]  }
 0x132   :  { %935 = vmatprep.mubr.bf16.mxu0 %v7235_v39  ;;  %v500_v53 = vpack.c.bf16 %v401_v49, %v401_v49  ;;  %v6492_v47 = vld [vmem:[#allocation2 + $0xf98] ss:$12 sps:$4 sm:$0xff]   ;;  %v6496_v49 = vld [vmem:[#allocation2 + $0x1070] ss:$12 sps:$4 sm:$0xff]   ;;  %v6493_v50 = vld [vmem:[#allocation2 + $0x1068] ss:$12 sps:$4 sm:$0xff]  }
 0x133   :  { %936 = vmatmul.mubr.bf16.vlgmr.msra.gmra.mrb[4].mxu0 %v7237_v40 }
 0x134   :  { %945 = vmatpush1.bf16.msra.mxu0 %v6407_v36  ;;  %976 = vmatprep.mubr.bf16.mxu0 %v7150_v0  ;;  %v6452_v36 = vld [vmem:[#allocation2 + $0x290] ss:$12 sps:$4 sm:$0xff]  }
 0x135   :  { %946 = vmatprep.subr.bf16.mxu0 %v6413_v38  ;;  %6142 = vmatmul.mubr.bf16.vlgmr.msra.gmra.mrb[4].mxu1 %v500_v53  ;;  %v6453_v38 = vld [vmem:[#allocation2 + $0x1d0] ss:$12 sps:$4 sm:$0xff]  }
 0x136   :  { %1601 = vmatpush1.bf16.msra.mxu1 %v6454_v52  ;;  %v6501_v52 = vld [vmem:[#allocation2 + $0x1088] ss:$12 sps:$4 sm:$0xff]  }
 0x137   :  { %1602 = vmatprep.subr.bf16.mxu1 %v6459_v54  ;;  %v6502_v54 = vld [vmem:[#allocation2 + $0xfc8] ss:$12 sps:$4 sm:$0xff]  }
 0x138   :  { %947 = vmatpush1.bf16.msra.mxu0 %v6411_v42  ;;  %v6486_v42 = vld [vmem:[#allocation2 + $0x1040] ss:$12 sps:$4 sm:$0xff]  }
 0x139   :  { %948 = vmatprep.subr.bf16.mxu0 %v6417_v43  ;;  %v6487_v43 = vld [vmem:[#allocation2 + $0xf80] ss:$12 sps:$4 sm:$0xff]  }
 0x13a   :  { %1603 = vmatpush1.bf16.msra.mxu1 %v6457_v57  ;;  %v6503_v57 = vld [vmem:[#allocation2 + $0x1098] ss:$12 sps:$4 sm:$0xff]  }
 0x13b   :  { %1604 = vmatprep.subr.bf16.mxu1 %v6462_v58  ;;  %v6507_v58 = vld [vmem:[#allocation2 + $0xfe0] ss:$12 sps:$4 sm:$0xff]  }
 0x13c   :  { %949 = vmatpush1.bf16.msra.mxu0 %v6415_v48  ;;  %v6495_v48 = vld [vmem:[#allocation2 + $0x106c] ss:$12 sps:$4 sm:$0xff]  }
 0x13d   :  { %950 = vmatprep.subr.bf16.mxu0 %v6421_v51  ;;  %v6497_v51 = vld [vmem:[#allocation2 + $0xfb0] ss:$12 sps:$4 sm:$0xff]  }
 0x13e   :  { %1605 = vmatpush1.bf16.msra.mxu1 %v6460_v61  ;;  %v6508_v61 = vld [vmem:[#allocation2 + $0x10b0] ss:$12 sps:$4 sm:$0xff]  }
 0x13f   :  { %1606 = vmatprep.subr.bf16.mxu1 %v6465_v62  ;;  %v6512_v62 = vld [vmem:[#allocation2 + $0xff8] ss:$12 sps:$4 sm:$0xff]  }
 0x140   :  { %951 = vmatpush1.bf16.msra.mxu0 %v6419_v55  ;;  %v6505_v55 = vld [vmem:[#allocation2 + $0x109c] ss:$12 sps:$4 sm:$0xff]  }
 0x141   :  { %952 = vmatprep.subr.bf16.mxu0 %v6425_v56  ;;  %v6506_v56 = vld [vmem:[#allocation2 + $0x10a0] ss:$12 sps:$4 sm:$0xff]  }
 0x142   :  { %1607 = vmatpush1.bf16.msra.mxu1 %v6463_v2  ;;  %v6516_v2 = vld [vmem:[#allocation2 + $0x10d0] ss:$12 sps:$4 sm:$0xff]  }
 0x143   :  { %1608 = vmatprep.subr.bf16.mxu1 %v6468_v3  ;;  %v6517_v3 = vld [vmem:[#allocation2 + $0x1010] ss:$12 sps:$4 sm:$0xff]  }
 0x144   :  { %953 = vmatpush1.bf16.msra.mxu0 %v6423_v59  ;;  %v6510_v59 = vld [vmem:[#allocation2 + $0x10b4] ss:$12 sps:$4 sm:$0xff]  }
 0x145   :  { %954 = vmatprep.subr.bf16.mxu0 %v6429_v60  ;;  %v6511_v60 = vld [vmem:[#allocation2 + $0x10b8] ss:$12 sps:$4 sm:$0xff]  }
 0x146   :  { %1609 = vmatpush1.bf16.msra.mxu1 %v6466_v6 }
 0x147   :  { %1610 = vmatprep.subr.bf16.mxu1 %v6471_v7 }
 0x148   :  { %955 = vmatpush1.bf16.msra.mxu0 %v6427_v63  ;;  %v6513_v63 = vld [vmem:[#allocation2 + $0x10c8] ss:$12 sps:$4 sm:$0xff]  }
 0x149   :  { %956 = vmatprep.subr.bf16.mxu0 %v6433_v1  ;;  %v6515_v1 = vld [vmem:[#allocation2 + $0x10cc] ss:$12 sps:$4 sm:$0xff]  }
 0x14a   :  { %1611 = vmatpush1.bf16.msra.mxu1 %v6469_v10 }
 0x14b   :  { %1612 = vmatprep.subr.bf16.mxu1 %v6474_v12 }
 0x14c   :  { %957 = vmatpush1.bf16.msra.mxu0 %v6431_v4  ;;  %v6520_v4 = vld [vmem:[#allocation2 + $0x10e4] ss:$12 sps:$4 sm:$0xff]  }
 0x14d   :  { %958 = vmatprep.subr.bf16.mxu0 %v6437_v5 }
 0x14e   :  { %1613 = vmatpush1.bf16.msra.mxu1 %v6472_v15 }
 0x14f   :  { %1614 = vmatprep.subr.bf16.mxu1 %v6477_v16 }
 0x150   :  { %959 = vmatpush1.bf16.msra.mxu0 %v6435_v8 }
 0x151   :  { %5908 = vmatprep.subr.bf16.mxu0 %v6438_v9  ;;  %v7248_v9 = vld [vmem:[#allocation4 + $0x1] ss:$8 sm:$0x7] }
 0x152   :  { %1615 = vmatpush1.bf16.msra.mxu1 %v6475_v19  ;;  %v507_v10 = vrot.slane %v7248_v9, %v7225_v24  ;;  %v511_v12 = vrot.slane %v7248_v9, %v7228_v25 }
 0x153   :  { %977 = vmatmul.mubr.bf16.vlgmr.msra.gmra.mrb[4].mxu0 %v500_v53  ;;  %1616 = vmatprep.subr.bf16.mxu1 %v6480_v20  ;;  %v6498_v53 = vld [vmem:[#allocation2 + $0x1080] ss:$12 sps:$4 sm:$0xff]  }
 0x154   :  { %5909 = vmatpush3.bf16.msra.mxu0 %v6439_v13  ;;  %1017 = vmatprep.mubr.bf16.mxu0 %v7235_v39  ;;  %v6481_v39 = vld [vmem:[#allocation2 + $0x1028] ss:$12 sps:$4 sm:$0xff]  }
 0x155   :  { %5910 = vmatprep.subr.bf16.mxu0 %v6440_v14 }
 0x156   :  { %1617 = vmatpush1.bf16.msra.mxu1 %v6478_v26 }
 0x157   :  { %1618 = vmatprep.subr.bf16.mxu1 %v6485_v27 }
 0x158   :  { %5911 = vmatpush3.bf16.msra.mxu0 %v6441_v17 }
 0x159   :  { %5912 = vmatprep.subr.bf16.mxu0 %v6442_v18 }
 0x15a   :  { %1619 = vmatpush1.bf16.msra.mxu1 %v6483_v30 }
 0x15b   :  { %1620 = vmatprep.subr.bf16.mxu1 %v6490_v45 }
 0x15c   :  { %5913 = vmatpush3.bf16.msra.mxu0 %v6443_v21 }
 0x15d   :  { %5914 = vmatprep.subr.bf16.mxu0 %v6444_v23 }
 0x15e   :  { %1621 = vmatpush1.bf16.msra.mxu1 %v6488_v44 }
 0x15f   :  { %1622 = vmatprep.subr.bf16.mxu1 %v6495_v48 }
 0x160   :  { %5915 = vmatpush3.bf16.msra.mxu0 %v6445_v28 }
 0x161   :  { %5916 = vmatprep.subr.bf16.mxu0 %v6446_v29 }
 0x162   :  { %1623 = vmatpush1.bf16.msra.mxu1 %v6493_v50 }
 0x164   :  { %5917 = vmatpush3.bf16.msra.mxu0 %v6447_v31 }
 0x165   :  { %5918 = vmatprep.subr.bf16.mxu0 %v6448_v32 }
 0x168   :  { %5919 = vmatpush3.bf16.msra.mxu0 %v6449_v33 }
 0x169   :  { %5920 = vmatprep.subr.bf16.mxu0 %v6450_v34 }
 0x16c   :  { %5921 = vmatpush3.bf16.msra.mxu0 %v6451_v35 }
 0x16d   :  { %5922 = vmatprep.subr.bf16.mxu0 %v6452_v36 }
 0x170   :  { %5923 = vmatpush3.bf16.msra.mxu0 %v6453_v38 }
 0x171   :  { %5939 = vmatprep.subr.bf16.mxu0 %v6481_v39 }
 0x173   :  { %1018 = vmatmul.mubr.bf16.vlgmr.msra.gmra.mrb[8].mxu0 %v7237_v40  ;;  %v6500_v40 = vld [vmem:[#allocation2 + $0x1084] ss:$12 sps:$4 sm:$0xff]  }
 0x174   :  { %5940 = vmatpush3.bf16.msra.mxu0 %v6482_v41  ;;  %1624 = vmatprep.subr.bf16.mxu1 %v6500_v40 }
 0x175   :  { %5941 = vmatprep.subr.bf16.mxu0 %v6486_v42  ;;  %1625 = vmatpush1.bf16.msra.mxu1 %v6498_v53 }
 0x176   :  { %1626 = vmatprep.subr.bf16.mxu1 %v6505_v55 }
 0x178   :  { %5942 = vmatpush3.bf16.msra.mxu0 %v6487_v43 }
 0x179   :  { %5943 = vmatprep.subr.bf16.mxu0 %v6491_v46  ;;  %1627 = vmatpush1.bf16.msra.mxu1 %v6503_v57  ;;  %v6521_v57 = vld [vmem:[#allocation2 + $0x10e8] ss:$12 sps:$4 sm:$0xff]  }
 0x17a   :  { %1628 = vmatprep.subr.bf16.mxu1 %v6510_v59  ;;  %v6524_v59 = vld [vmem:[#allocation2 + $0x10fc] ss:$12 sps:$4 sm:$0xff]  }
 0x17c   :  { %5944 = vmatpush3.bf16.msra.mxu0 %v6492_v47 }
 0x17d   :  { %5945 = vmatprep.subr.bf16.mxu0 %v6496_v49  ;;  %1629 = vmatpush1.bf16.msra.mxu1 %v6508_v61  ;;  %v6525_v61 = vld [vmem:[#allocation2 + $0x1100] ss:$12 sps:$4 sm:$0xff]  }
 0x17e   :  { %1630 = vmatprep.subr.bf16.mxu1 %v6515_v1  ;;  %v6529_v1 = vld [vmem:[#allocation2 + $0x1118] ss:$12 sps:$4 sm:$0xff]  }
 0x180   :  { %5946 = vmatpush3.bf16.msra.mxu0 %v6497_v51 }
 0x181   :  { %5947 = vmatprep.subr.bf16.mxu0 %v6501_v52  ;;  %1631 = vmatpush1.bf16.msra.mxu1 %v6513_v63  ;;  %v6526_v63 = vld [vmem:[#allocation2 + $0x1110] ss:$12 sps:$4 sm:$0xff]  }
 0x182   :  { %1641 = vmatprep.subr.bf16.mxu1 %v6520_v4  ;;  %v515_v4 = vrot.slane %v7248_v9, %v7233_v37  ;;  %v6540_v9 = vld [vmem:[#allocation2 + $0x115c] ss:$12 sps:$4 sm:$0xff]  }
 0x184   :  { %5948 = vmatpush3.bf16.msra.mxu0 %v6502_v54 }
 0x185   :  { %5949 = vmatprep.subr.bf16.mxu0 %v6506_v56  ;;  %v6518_v56 = vld [vmem:[#allocation2 + $0x10e0] ss:$12 sps:$4 sm:$0xff]  }
 0x188   :  { %5950 = vmatpush3.bf16.msra.mxu0 %v6507_v58 }
 0x189   :  { %5951 = vmatprep.subr.bf16.mxu0 %v6511_v60  ;;  %v6522_v60 = vld [vmem:[#allocation2 + $0x10f8] ss:$12 sps:$4 sm:$0xff]  }
 0x18c   :  { %5952 = vmatpush3.bf16.msra.mxu0 %v6512_v62  ;;  %v6528_v62 = vld [vmem:[#allocation2 + $0x1114] ss:$12 sps:$4 sm:$0xff]  }
 0x18d   :  { %5953 = vmatprep.subr.bf16.mxu0 %v6516_v2  ;;  %v6532_v2 = vld [vmem:[#allocation2 + $0x112c] ss:$12 sps:$4 sm:$0xff]  }
 0x190   :  { %5954 = vmatpush3.bf16.msra.mxu0 %v6517_v3 }
 0x191   :  { %6145 = vmatprep.subr.bf16.mxu0 %v7151_v11 }
 0x208   :  { %v7246_v5 = vpop.f32.mrb[4].mxu1 }
 0x209   :  { %v6143_v6 = vpop.f32.mrb[5].mxu1 }
 0x20a   :  { %v1062_v7 = vpop.f32.mrb[6].mxu1  ;;  %v6530_v6 = vld [vmem:[#allocation2 + $0x1128] ss:$12 sps:$4 sm:$0xff]  }
 0x20b   :  { %v6144_v8 = vpop.f32.mrb[7].mxu1  ;;  %v6533_v7 = vld [vmem:[#allocation2 + $0x1130] ss:$12 sps:$4 sm:$0xff]  }
 0x226   :  { %v978_v13 = vpop.f32.mrb[4].mxu0 }
 0x227   :  { %v7254_v14 = vadd.f32 %v978_v13, %v507_v10  ;;  %v980_v15 = vpop.f32.mrb[5].mxu0  ;;  %v6536_v10 = vld [vmem:[#allocation2 + $0x1144] ss:$12 sps:$4 sm:$0xff]  }
 0x228   :  { %v7256_v16 = vadd.f32 %v980_v15, %v511_v12  ;;  %v982_v17 = vpop.f32.mrb[6].mxu0 }
 0x229   :  { %v1066_v18 = vsel %vm1065_vm2, %v7254_v14, 0.0  ;;  %v1087_v19 = vmul.f32 %v7254_v14, %v7254_v14  ;;  %v983_v20 = vpop.f32.mrb[7].mxu0 }
 0x22a   :  { %v1067_v21 = vrot.slane %v1066_v18, 4  ;;  %v1073_v23 = vsel %vm1065_vm2, %v7256_v16, 0.0  ;;  %v1088_v26 = vmul.f32 %v7256_v16, %v7256_v16 }
 0x22b   :  { %v1090_v27 = vsel %vm1065_vm2, %v1087_v19, 0.0  ;;  %v1074_v28 = vrot.slane %v1073_v23, 4  ;;  %v6537_v19 = vld [vmem:[#allocation2 + $0x1148] ss:$12 sps:$4 sm:$0xff]  }
 0x22c   :  { %v1068_v29 = vadd.f32 %v1067_v21, %v1066_v18  ;;  %v1091_v30 = vrot.slane %v1090_v27, 4  ;;  %v1097_v31 = vsel %vm1065_vm2, %v1088_v26, 0.0  ;;  %v6534_v18 = vld [vmem:[#allocation2 + $0x1140] ss:$12 sps:$4 sm:$0xff]   ;;  %v6538_v26 = vld [vmem:[#allocation2 + $0x1158] ss:$12 sps:$4 sm:$0xff]  }
 0x22d   :  { %v1075_v32 = vadd.f32 %v1074_v28, %v1073_v23  ;;  %v1098_v33 = vrot.slane %v1097_v31, 4 }
 0x22e   :  { %v1069_v34 = vrot.slane %v1068_v29, 2  ;;  %v1092_v35 = vadd.f32 %v1091_v30, %v1090_v27  ;;  %v6541_v27 = vld [vmem:[#allocation2 + $0x1160] ss:$12 sps:$4 sm:$0xff]  }
 0x22f   :  { %v1076_v36 = vrot.slane %v1075_v32, 2  ;;  %v1099_v38 = vadd.f32 %v1098_v33, %v1097_v31  ;;  %v6545_v33 = vld [vmem:[#allocation2 + $0x1178] ss:$12 sps:$4 sm:$0xff]  }
 0x230   :  { %v1070_v39 = vadd.f32 %v1069_v34, %v1068_v29  ;;  %v1093_v41 = vrot.slane %v1092_v35, 2  ;;  %v6544_v29 = vld [vmem:[#allocation2 + $0x1174] ss:$12 sps:$4 sm:$0xff]  }
 0x231   :  { %v1077_v42 = vadd.f32 %v1076_v36, %v1075_v32  ;;  %v1100_v43 = vrot.slane %v1099_v38, 2  ;;  %v6542_v32 = vld [vmem:[#allocation2 + $0x1170] ss:$12 sps:$4 sm:$0xff]   ;;  %v6548_v36 = vld [vmem:[#allocation2 + $0x118c] ss:$12 sps:$4 sm:$0xff]  }
 0x232   :  { %v1071_v44 = vrot.slane %v1070_v39, 1  ;;  %v1094_v45 = vadd.f32 %v1093_v41, %v1092_v35  ;;  %v6546_v41 = vld [vmem:[#allocation2 + $0x1188] ss:$12 sps:$4 sm:$0xff]  }
 0x233   :  { %v1078_v46 = vrot.slane %v1077_v42, 1  ;;  %v1101_v47 = vadd.f32 %v1100_v43, %v1099_v38 }
 0x234   :  { %v1095_v48 = vrot.slane %v1094_v45, 1  ;;  %v1072_v50 = vadd.f32 %v1071_v44, %v1070_v39 }
 0x235   :  { %v1102_v49 = vrot.slane %v1101_v47, 1  ;;  %v1079_v40 = vadd.f32 %v1078_v46, %v1077_v42  ;;  %v6549_v42 = vld [vmem:[#allocation2 + $0x1190] ss:$12 sps:$4 sm:$0xff]  }
 0x236   :  { %v1096_v51 = vadd.f32 %v1095_v48, %v1094_v45 }
 0x237   :  { %v1103_v52 = vadd.f32 %v1102_v49, %v1101_v47 }
 0x238   :  { %v1114_v53 = vsel %vm1113_vm3, %v1072_v50, %v1096_v51  ;;  %v6550_v50 = vld [vmem:[#allocation2 + $0x360] ss:$12 sps:$4 sm:$0xff]   ;;  %v6552_v51 = vld [vmem:[#allocation2 + $0x364] ss:$12 sps:$4 sm:$0xff]  }
 0x239   :  { %v1115_v54 = vsel %vm1113_vm3, %v1079_v40, %v1103_v52  ;;  %v1213_v58 = vpack.c.bf16 %v1114_v53, %v1114_v53  ;;  %v6555_v40 = vld [vmem:[#allocation2 + $0x37c] ss:$12 sps:$4 sm:$0xff]   ;;  %v6553_v52 = vld [vmem:[#allocation2 + $0x378] ss:$12 sps:$4 sm:$0xff]   ;;  %v6558_v53 = vld [vmem:[#allocation2 + $0x394] ss:$12 sps:$4 sm:$0xff]  }
 0x23a   :  { %v1214_v55 = vpack.c.bf16 %v1115_v54, %v1115_v54  ;;  %v6556_v54 = vld [vmem:[#allocation2 + $0x390] ss:$12 sps:$4 sm:$0xff]  }
 0x23c   :  { %1632 = vmatprep.mubr.bf16.mxu1 %v1214_v55  ;;  %1714 = vmatprep.mubr.bf16.mxu0 %v1214_v55  ;;  %v6561_v55 = vld [vmem:[#allocation2 + $0x3ac] ss:$12 sps:$4 sm:$0xff]  }
 0x23d   :  { %1633 = vmatmul.mubr.bf16.vlgmr.msra.gmra.mrb[8].mxu1 %v1213_v58  ;;  %1715 = vmatmul.mubr.bf16.vlgmr.msra.gmra.mrb[12].mxu0 %v1213_v58  ;;  %v6562_v58 = vld [vmem:[#allocation2 + $0x3c0] ss:$12 sps:$4 sm:$0xff]  }
 0x23e   :  { %1642 = vmatpush1.bf16.msra.mxu1 %v6518_v56  ;;  %6146 = vmatpush3.bf16.msra.mxu0 %v6521_v57  ;;  %v6559_v56 = vld [vmem:[#allocation2 + $0x3a8] ss:$12 sps:$4 sm:$0xff]   ;;  %v6564_v57 = vld [vmem:[#allocation2 + $0x3c4] ss:$12 sps:$4 sm:$0xff]  }
 0x23f   :  { %1643 = vmatprep.subr.bf16.mxu1 %v6524_v59  ;;  %6147 = vmatprep.subr.bf16.mxu0 %v7151_v11  ;;  %v6567_v59 = vld [vmem:[#allocation2 + $0x3dc] ss:$12 sps:$4 sm:$0xff]  }
 0x240   :  { %1673 = vmatprep.mubr.bf16.mxu1 %v7150_v0  ;;  %6161 = vmatprep.mubr.msk.bf16.mxu0 %vm7152_vm1, %v7151_v11 }
 0x242   :  { %1644 = vmatpush1.bf16.msra.mxu1 %v6522_v60  ;;  %6148 = vmatpush3.bf16.msra.mxu0 %v6525_v61  ;;  %v6565_v60 = vld [vmem:[#allocation2 + $0x3d8] ss:$12 sps:$4 sm:$0xff]   ;;  %v6570_v61 = vld [vmem:[#allocation2 + $0x3f4] ss:$12 sps:$4 sm:$0xff]  }
 0x243   :  { %1645 = vmatprep.subr.bf16.mxu1 %v6528_v62  ;;  %6149 = vmatprep.subr.bf16.mxu0 %v7151_v11  ;;  %v6568_v62 = vld [vmem:[#allocation2 + $0x3f0] ss:$12 sps:$4 sm:$0xff]  }
 0x246   :  { %v5924_v3 = vpop.f32.mrb[8].mxu0  ;;  %1646 = vmatpush1.bf16.msra.mxu1 %v6526_v63  ;;  %6150 = vmatpush3.bf16.msra.mxu0 %v6529_v1  ;;  %v6573_v63 = vld [vmem:[#allocation2 + $0x40c] ss:$12 sps:$4 sm:$0xff]   ;;  %v6571_v1 = vld [vmem:[#allocation2 + $0x408] ss:$12 sps:$4 sm:$0xff]  }
 0x247   :  { %v5925_v8 = vpop.f32.mrb[9].mxu0  ;;  %1647 = vmatprep.subr.bf16.mxu1 %v6532_v2  ;;  %6151 = vmatprep.subr.bf16.mxu0 %v7151_v11  ;;  %v6576_v2 = vld [vmem:[#allocation2 + $0x424] ss:$12 sps:$4 sm:$0xff]  }
 0x248   :  { %v5926_v12 = vadd.f32 %v5925_v8, %v5924_v3  ;;  %v5927_v13 = vpop.f32.mrb[10].mxu0  ;;  %v6574_v3 = vld [vmem:[#allocation2 + $0x420] ss:$12 sps:$4 sm:$0xff]   ;;  %v6580_v8 = vld [vmem:[#allocation2 + $0x450] ss:$12 sps:$4 sm:$0xff]  }
 0x249   :  { %v5928_v15 = vpop.f32.mrb[11].mxu0  ;;  %v6588_v13 = vld [vmem:[#allocation2 + $0x484] ss:$12 sps:$4 sm:$0xff]  }
 0x24a   :  { %v1020_v17 = vadd.f32 %v5926_v12, %v515_v4  ;;  %1648 = vmatpush1.bf16.msra.mxu1 %v6530_v6  ;;  %6152 = vmatpush3.bf16.msra.mxu0 %v6533_v7  ;;  %v6579_v4 = vld [vmem:[#allocation2 + $0x43c] ss:$12 sps:$4 sm:$0xff]   ;;  %v6577_v6 = vld [vmem:[#allocation2 + $0x438] ss:$12 sps:$4 sm:$0xff]   ;;  %v6582_v7 = vld [vmem:[#allocation2 + $0x454] ss:$12 sps:$4 sm:$0xff]  }
 0x24b   :  { %1649 = vmatprep.subr.bf16.mxu1 %v6536_v10  ;;  %6153 = vmatprep.subr.bf16.mxu0 %v7151_v11  ;;  %v6585_v10 = vld [vmem:[#allocation2 + $0x46c] ss:$12 sps:$4 sm:$0xff]   ;;  %v6583_v12 = vld [vmem:[#allocation2 + $0x468] ss:$12 sps:$4 sm:$0xff]  }
 0x24c   :  { %v7283_v20 = vadd.f32 %v7246_v5, %v1020_v17  ;;  %v6586_v15 = vld [vmem:[#allocation2 + $0x480] ss:$12 sps:$4 sm:$0xff]   ;;  %v6591_v17 = vld [vmem:[#allocation2 + $0x49c] ss:$12 sps:$4 sm:$0xff]  }
 0x24e   :  { %v1080_v21 = vsel %vm1065_vm2, %v7283_v20, 0.0  ;;  %v1089_v23 = vmul.f32 %v7283_v20, %v7283_v20  ;;  %1650 = vmatpush1.bf16.msra.mxu1 %v6534_v18  ;;  %6154 = vmatpush3.bf16.msra.mxu0 %v6537_v19  ;;  %v6589_v18 = vld [vmem:[#allocation2 + $0x498] ss:$12 sps:$4 sm:$0xff]   ;;  %v6594_v19 = vld [vmem:[#allocation2 + $0x4b4] ss:$12 sps:$4 sm:$0xff]  }
 0x24f   :  { %v1081_v28 = vrot.slane %v1080_v21, 4  ;;  %1651 = vmatprep.subr.bf16.mxu1 %v6540_v9  ;;  %6155 = vmatprep.subr.bf16.mxu0 %v7151_v11  ;;  %v6592_v9 = vld [vmem:[#allocation2 + $0x4b0] ss:$12 sps:$4 sm:$0xff]  }
 0x250   :  { %v1104_v30 = vsel %vm1065_vm2, %v1089_v23, 0.0  ;;  %v6595_v23 = vld [vmem:[#allocation2 + $0x4c8] ss:$12 sps:$4 sm:$0xff]  }
 0x251   :  { %v1082_v31 = vadd.f32 %v1081_v28, %v1080_v21  ;;  %v1105_v5 = vrot.slane %v1104_v30, 4  ;;  %v6597_v21 = vld [vmem:[#allocation2 + $0x4cc] ss:$12 sps:$4 sm:$0xff]  }
 0x252   :  { %1652 = vmatpush1.bf16.msra.mxu1 %v6538_v26  ;;  %6156 = vmatpush3.bf16.msra.mxu0 %v6541_v27  ;;  %v6600_v26 = vld [vmem:[#allocation2 + $0x4e4] ss:$12 sps:$4 sm:$0xff]   ;;  %v6622_v27 = vld [vmem:[#allocation2 + $0x660] ss:$12 sps:$4 sm:$0xff]  }
 0x253   :  { %v1083_v34 = vrot.slane %v1082_v31, 2  ;;  %v1106_v35 = vadd.f32 %v1105_v5, %v1104_v30  ;;  %1653 = vmatprep.subr.bf16.mxu1 %v6544_v29  ;;  %6157 = vmatprep.subr.bf16.mxu0 %v7151_v11  ;;  %v6623_v28 = vld [vmem:[#allocation2 + $0x5a0] ss:$12 sps:$4 sm:$0xff]   ;;  %v6624_v29 = vld [vmem:[#allocation2 + $0x678] ss:$12 sps:$4 sm:$0xff]  }
 0x254   :  { %v6625_v30 = vld [vmem:[#allocation2 + $0x5b8] ss:$12 sps:$4 sm:$0xff]   ;;  %v6627_v5 = vld [vmem:[#allocation2 + $0x5d0] ss:$12 sps:$4 sm:$0xff]  }
 0x255   :  { %v1084_v38 = vadd.f32 %v1083_v34, %v1082_v31  ;;  %v1107_v39 = vrot.slane %v1106_v35, 2  ;;  %v6626_v31 = vld [vmem:[#allocation2 + $0x690] ss:$12 sps:$4 sm:$0xff]   ;;  %v6630_v34 = vld [vmem:[#allocation2 + $0x6c0] ss:$12 sps:$4 sm:$0xff]  }
 0x256   :  { %1654 = vmatpush1.bf16.msra.mxu1 %v6542_v32  ;;  %6158 = vmatpush3.bf16.msra.mxu0 %v6545_v33  ;;  %v6628_v32 = vld [vmem:[#allocation2 + $0x6a8] ss:$12 sps:$4 sm:$0xff]  }
 0x257   :  { %v1085_v43 = vrot.slane %v1084_v38, 1  ;;  %v1108_v44 = vadd.f32 %v1107_v39, %v1106_v35  ;;  %1655 = vmatprep.subr.bf16.mxu1 %v6548_v36  ;;  %6159 = vmatprep.subr.bf16.mxu0 %v7151_v11  ;;  %v6629_v33 = vld [vmem:[#allocation2 + $0x5e8] ss:$12 sps:$4 sm:$0xff]   ;;  %v6631_v35 = vld [vmem:[#allocation2 + $0x600] ss:$12 sps:$4 sm:$0xff]  }
 0x258   :  { %v6632_v36 = vld [vmem:[#allocation2 + $0x6d8] ss:$12 sps:$4 sm:$0xff]  }
 0x259   :  { %v1109_v45 = vrot.slane %v1108_v44, 1  ;;  %v1086_v46 = vadd.f32 %v1085_v43, %v1084_v38  ;;  %v6633_v38 = vld [vmem:[#allocation2 + $0x618] ss:$12 sps:$4 sm:$0xff]  }
 0x25a   :  { %1656 = vmatpush1.bf16.msra.mxu1 %v6546_v41  ;;  %6160 = vmatpush3.bf16.msra.mxu0 %v6549_v42 }
 0x25b   :  { %v1110_v47 = vadd.f32 %v1109_v45, %v1108_v44  ;;  %2168 = vmatprep.subr.bf16.mxu0 %v6552_v51  ;;  %5970 = vmatprep.subr.bf16.mxu1 %v6622_v27 }
 0x25d   :  { %v1116_v48 = vsel %vm1113_vm3, %v1086_v46, %v1110_v47 }
 0x25e   :  { %v1215_v49 = vpack.c.bf16 %v1116_v48, %v1116_v48 }
 0x260   :  { %1674 = vmatmul.mubr.bf16.vlgmr.msra.gmra.mrb[8].mxu1 %v1215_v49  ;;  %6162 = vmatmul.mubr.bf16.vlgmr.msra.gmra.mrb[16].mxu0 %v1215_v49 }
 0x261   :  { %2169 = vmatpush1.bf16.msra.mxu0 %v6550_v50  ;;  %5971 = vmatpush3.bf16.msra.mxu1 %v6623_v28 }
 0x262   :  { %2170 = vmatprep.subr.bf16.mxu0 %v6555_v40  ;;  %5972 = vmatprep.subr.bf16.mxu1 %v6624_v29 }
 0x265   :  { %2171 = vmatpush1.bf16.msra.mxu0 %v6553_v52  ;;  %5973 = vmatpush3.bf16.msra.mxu1 %v6625_v30 }
 0x266   :  { %2172 = vmatprep.subr.bf16.mxu0 %v6558_v53  ;;  %5974 = vmatprep.subr.bf16.mxu1 %v6626_v31 }
 0x269   :  { %2173 = vmatpush1.bf16.msra.mxu0 %v6556_v54  ;;  %5975 = vmatpush3.bf16.msra.mxu1 %v6627_v5 }
 0x26a   :  { %2174 = vmatprep.subr.bf16.mxu0 %v6561_v55  ;;  %5976 = vmatprep.subr.bf16.mxu1 %v6628_v32 }
 0x26d   :  { %2175 = vmatpush1.bf16.msra.mxu0 %v6559_v56  ;;  %5977 = vmatpush3.bf16.msra.mxu1 %v6629_v33 }
 0x26e   :  { %2176 = vmatprep.subr.bf16.mxu0 %v6564_v57  ;;  %5978 = vmatprep.subr.bf16.mxu1 %v6630_v34 }
 0x271   :  { %2177 = vmatpush1.bf16.msra.mxu0 %v6562_v58  ;;  %5979 = vmatpush3.bf16.msra.mxu1 %v6631_v35 }
 0x272   :  { %2178 = vmatprep.subr.bf16.mxu0 %v6567_v59  ;;  %5980 = vmatprep.subr.bf16.mxu1 %v6632_v36  ;;  %v6598_v36 = vld [vmem:[#allocation2 + $0x4e0] ss:$12 sps:$4 sm:$0xff]  }
 0x275   :  { %2179 = vmatpush1.bf16.msra.mxu0 %v6565_v60  ;;  %5981 = vmatpush3.bf16.msra.mxu1 %v6633_v38 }
 0x276   :  { %2180 = vmatprep.subr.bf16.mxu0 %v6570_v61 }
 0x279   :  { %2181 = vmatpush1.bf16.msra.mxu0 %v6568_v62 }
 0x27a   :  { %2182 = vmatprep.subr.bf16.mxu0 %v6573_v63 }
 0x27d   :  { %2183 = vmatpush1.bf16.msra.mxu0 %v6571_v1 }
 0x27e   :  { %2184 = vmatprep.subr.bf16.mxu0 %v6576_v2 }
 0x281   :  { %2185 = vmatpush1.bf16.msra.mxu0 %v6574_v3 }
 0x282   :  { %2186 = vmatprep.subr.bf16.mxu0 %v6579_v4 }
 0x285   :  { %2187 = vmatpush1.bf16.msra.mxu0 %v6577_v6 }
 0x286   :  { %2188 = vmatprep.subr.bf16.mxu0 %v6582_v7 }
 0x289   :  { %2189 = vmatpush1.bf16.msra.mxu0 %v6580_v8  ;;  %v1820_v8 = vld [vmem:[#allocation4 + $0x2] ss:$8 sm:$0x7] }
 0x28a   :  { %2190 = vmatprep.subr.bf16.mxu0 %v6585_v10 }
 0x28d   :  { %2191 = vmatpush1.bf16.msra.mxu0 %v6583_v12 }
 0x28e   :  { %2192 = vmatprep.subr.bf16.mxu0 %v6588_v13  ;;  %v1841_v13 = vld [vmem:[#allocation4 + $0x3] ss:$8 sm:$0x7] }
 0x28f   :  { %v1846_v27 = vrot.slane %v1841_v13, %v7225_v24  ;;  %v1850_v30 = vrot.slane %v1841_v13, %v7228_v25 }
 0x291   :  { %2193 = vmatpush1.bf16.msra.mxu0 %v6586_v15 }
 0x292   :  { %2194 = vmatprep.subr.bf16.mxu0 %v6591_v17 }
 0x295   :  { %2195 = vmatpush1.bf16.msra.mxu0 %v6589_v18 }
 0x296   :  { %2196 = vmatprep.subr.bf16.mxu0 %v6594_v19  ;;  %v1825_v19 = vrot.slane %v1820_v8, %v7225_v24 }
 0x299   :  { %2197 = vmatpush1.bf16.msra.mxu0 %v6592_v9 }
 0x29a   :  { %2198 = vmatprep.subr.bf16.mxu0 %v6597_v21 }
 0x29d   :  { %2199 = vmatpush1.bf16.msra.mxu0 %v6595_v23  ;;  %v1829_v23 = vrot.slane %v1820_v8, %v7228_v25 }
 0x29e   :  { %2209 = vmatprep.subr.bf16.mxu0 %v6600_v26 }
 0x310   :  { %v5955_v39 = vpop.f32.mrb[12].mxu0 }
 0x311   :  { %v5956_v41 = vpop.f32.mrb[13].mxu0 }
 0x312   :  { %v5957_v42 = vadd.f32 %v5956_v41, %v5955_v39  ;;  %v5958_v43 = vpop.f32.mrb[14].mxu0  ;;  %v6603_v39 = vld [vmem:[#allocation2 + $0x4fc] ss:$12 sps:$4 sm:$0xff]   ;;  %v6601_v41 = vld [vmem:[#allocation2 + $0x4f8] ss:$12 sps:$4 sm:$0xff]  }
 0x313   :  { %v5959_v44 = vpop.f32.mrb[15].mxu0  ;;  %v6604_v43 = vld [vmem:[#allocation2 + $0x510] ss:$12 sps:$4 sm:$0xff]  }
 0x314   :  { %v6609_v44 = vld [vmem:[#allocation2 + $0x52c] ss:$12 sps:$4 sm:$0xff]  }
 0x333   :  { %v1675_v45 = vpop.f32.mrb[8].mxu1  ;;  %v1756_v46 = vpop.f32.mrb[16].mxu0 }
 0x334   :  { %v1762_v47 = vmul.f32 0.020833334, %v1675_v45  ;;  %v1757_v48 = vadd.f32 %v5957_v42, %v1756_v46  ;;  %v1677_v49 = vpop.f32.mrb[9].mxu1  ;;  %v6163_v50 = vpop.f32.mrb[17].mxu0  ;;  %v6606_v42 = vld [vmem:[#allocation2 + $0x514] ss:$12 sps:$4 sm:$0xff]  }
 0x335   :  { %v1763_v51 = vmul.f32 0.020833334, %v1677_v49  ;;  %v1679_v40 = vpop.f32.mrb[10].mxu1  ;;  %v1759_v52 = vpop.f32.mrb[18].mxu0  ;;  %v6612_v49 = vld [vmem:[#allocation2 + $0x544] ss:$12 sps:$4 sm:$0xff]  }
 0x336   :  { %v1765_v53 = vmul.f32 %v1762_v47, %v1762_v47  ;;  %v1680_v54 = vpop.f32.mrb[11].mxu1  ;;  %v6164_v55 = vpop.f32.mrb[19].mxu0  ;;  %v1764_v1 = vmul.f32 0.020833334, %v1757_v48  ;;  %v1786_v6 = vrot.slane %v1762_v47, %v7225_v24  ;;  %v6615_v52 = vld [vmem:[#allocation2 + $0x55c] ss:$12 sps:$4 sm:$0xff]  }
 0x337   :  { %v1766_v56 = vmul.f32 %v1763_v51, %v1763_v51  ;;  %v1790_v7 = vrot.slane %v1763_v51, %v7225_v24  ;;  %v6613_v54 = vld [vmem:[#allocation2 + $0x558] ss:$12 sps:$4 sm:$0xff]   ;;  %v6618_v55 = vld [vmem:[#allocation2 + $0x574] ss:$12 sps:$4 sm:$0xff]  }
 0x338   :  { %v1771_v57 = vrot.slane %v1765_v53, 7  ;;  %v1767_v3 = vmul.f32 %v1764_v1, %v1764_v1  ;;  %v1795_v17 = vsub.f32 %v7254_v14, %v1786_v6  ;;  %v1794_v46 = vrot.slane %v1764_v1, %v7225_v24 }
 0x339   :  { %v1772_v58 = vrot.slane %v1766_v56, 7  ;;  %v1796_v9 = vsub.f32 %v7256_v16, %v1790_v7  ;;  %v1833_v53 = vrot.slane %v1820_v8, %v7233_v37 }
 0x33a   :  { %v1777_v59 = vsub.f32 %v1762_v47, %v1771_v57  ;;  %v1773_v4 = vrot.slane %v1767_v3, 7  ;;  %v6607_v47 = vld [vmem:[#allocation2 + $0x528] ss:$12 sps:$4 sm:$0xff]   ;;  %v1797_v50 = vsub.f32 %v7283_v20, %v1794_v46  ;;  %v1854_v57 = vrot.slane %v1841_v13, %v7233_v37  ;;  %v6651_v46 = vld [vmem:[#allocation2 + $0x858] ss:$12 sps:$4 sm:$0xff]  }
 0x33b   :  { %v1778_v60 = vsub.f32 %v1763_v51, %v1772_v58  ;;  %v6610_v51 = vld [vmem:[#allocation2 + $0x540] ss:$12 sps:$4 sm:$0xff]   ;;  %v6616_v58 = vld [vmem:[#allocation2 + $0x570] ss:$12 sps:$4 sm:$0xff]   ;;  %v6619_v20 = vld [vmem:[#allocation2 + $0x588] ss:$12 sps:$4 sm:$0xff]  }
 0x33c   :  { %v1780_v61 = vmax.f32 %v1777_v59, 0.0  ;;  %v1779_v12 = vsub.f32 %v1764_v1, %v1773_v4  ;;  %v6621_v59 = vld [vmem:[#allocation2 + $0x58c] ss:$12 sps:$4 sm:$0xff]   ;;  %v6635_v1 = vld [vmem:[#allocation2 + $0x630] ss:$12 sps:$4 sm:$0xff]  }
 0x33d   :  { %v1781_v62 = vmax.f32 %v1778_v60, 0.0  ;;  %v6637_v3 = vld [vmem:[#allocation2 + $0x648] ss:$12 sps:$4 sm:$0xff]   ;;  %v1916_v4 = vld [vmem:[#allocation4 + $0x4] ss:$8 sm:$0x3] }
 0x33e   :  { %v1798_v63 = vadd.f32 1e-05, %v1780_v61  ;;  %v1782_v28 = vmax.f32 %v1779_v12, 0.0  ;;  %v1921_v6 = vrot.slane %v1916_v4, %v7225_v24  ;;  %v1925_v7 = vrot.slane %v1916_v4, %v7228_v25 }
 0x33f   :  { %v1799_v2 = vadd.f32 1e-05, %v1781_v62 }
 0x340   :  { %7006 = vrsqrt.f32 %v1798_v63  ;;  %v1800_v32 = vadd.f32 1e-05, %v1782_v28  ;;  %v6634_v63 = vld [vmem:[#allocation2 + $0x6f0] ss:$12 sps:$4 sm:$0xff]   ;;  %v6641_v28 = vld [vmem:[#allocation2 + $0x768] ss:$12 sps:$4 sm:$0xff]  }
 0x341   :  { %7008 = vrsqrt.f32 %v1799_v2  ;;  %5982 = vmatprep.subr.bf16.mxu1 %v6634_v63  ;;  %v6636_v2 = vld [vmem:[#allocation2 + $0x708] ss:$12 sps:$4 sm:$0xff]  }
 0x342   :  { %7010 = vrsqrt.f32 %v1800_v32  ;;  %5983 = vmatpush3.bf16.msra.mxu1 %v6635_v1  ;;  %v2286_v32 = vld [vmem:[#allocation4 + $0x5] ss:$0 sm:$0xff] }
 0x343   :  { %5984 = vmatprep.subr.bf16.mxu1 %v6636_v2 }
 0x346   :  { %5985 = vmatpush3.bf16.msra.mxu1 %v6637_v3 }
 0x347   :  { %6165 = vmatprep.subr.bf16.mxu1 %v7151_v11 }
 0x34a   :  { %v7007_v10 = vpop.eup %7006 }
 0x34b   :  { %v7009_v15 = vpop.eup %7008  ;;  %v1807_v18 = vrot.slane %v7007_v10, %v7228_v25 }
 0x34c   :  { %v1811_v21 = vrot.slane %v7009_v15, %v7228_v25  ;;  %v7011_v45 = vpop.eup %7010 }
 0x34d   :  { %v1816_v26 = vmul.f32 %v1807_v18, %v1795_v17  ;;  %v1815_v48 = vrot.slane %v7011_v45, %v7228_v25  ;;  %v6650_v45 = vld [vmem:[#allocation2 + $0x840] ss:$12 sps:$4 sm:$0xff]  }
 0x34e   :  { %v1817_v29 = vmul.f32 %v1811_v21, %v1796_v9  ;;  %v6638_v21 = vld [vmem:[#allocation2 + $0x720] ss:$12 sps:$4 sm:$0xff]  }
 0x34f   :  { %v1837_v31 = vmul.f32 %v1825_v19, %v1816_v26  ;;  %v1818_v40 = vmul.f32 %v1815_v48, %v1797_v50  ;;  %v6639_v26 = vld [vmem:[#allocation2 + $0x738] ss:$12 sps:$4 sm:$0xff]   ;;  %v6653_v48 = vld [vmem:[#allocation2 + $0x888] ss:$12 sps:$4 sm:$0xff]  }
 0x350   :  { %v1838_v5 = vmul.f32 %v1829_v23, %v1817_v29  ;;  %v6642_v29 = vld [vmem:[#allocation2 + $0x780] ss:$12 sps:$4 sm:$0xff]   ;;  %v6656_v50 = vld [vmem:[#allocation2 + $0x8a4] ss:$12 sps:$4 sm:$0xff]  }
 0x351   :  { %v1858_v14 = vadd.f32 %v1846_v27, %v1837_v31  ;;  %v1839_v56 = vmul.f32 %v1833_v53, %v1818_v40  ;;  %v6640_v27 = vld [vmem:[#allocation2 + $0x750] ss:$12 sps:$4 sm:$0xff]   ;;  %v6657_v40 = vld [vmem:[#allocation2 + $0x8b8] ss:$12 sps:$4 sm:$0xff]  }
 0x352   :  { %v1859_v33 = vadd.f32 %v1850_v30, %v1838_v5  ;;  %v6643_v30 = vld [vmem:[#allocation2 + $0x798] ss:$12 sps:$4 sm:$0xff]   ;;  %v6644_v31 = vld [vmem:[#allocation2 + $0x7b0] ss:$12 sps:$4 sm:$0xff]   ;;  %v6645_v5 = vld [vmem:[#allocation2 + $0x7c8] ss:$12 sps:$4 sm:$0xff]  }
 0x353   :  { %v1861_v34 = vmax.f32 %v1858_v14, 0.0  ;;  %v1860_v60 = vadd.f32 %v1854_v57, %v1839_v56  ;;  %v6660_v53 = vld [vmem:[#allocation2 + $0x8d0] ss:$12 sps:$4 sm:$0xff]   ;;  %v6666_v57 = vld [vmem:[#allocation2 + $0x900] ss:$12 sps:$4 sm:$0xff]  }
 0x354   :  { %v1862_v35 = vmax.f32 %v1859_v33, 0.0  ;;  %v6668_v56 = vld [vmem:[#allocation2 + $0x904] ss:$12 sps:$4 sm:$0xff]  }
 0x355   :  { %v1912_v38 = vpack.c.bf16 %v1861_v34, %v1861_v34  ;;  %v1863_v61 = vmax.f32 %v1860_v60, 0.0  ;;  %v6674_v60 = vld [vmem:[#allocation2 + $0x934] ss:$12 sps:$4 sm:$0xff]  }
 0x356   :  { %v1913_v16 = vpack.c.bf16 %v1862_v35, %v1862_v35 }
 0x357   :  { %v1914_v62 = vpack.c.bf16 %v1863_v61, %v1863_v61  ;;  %v2441_v61 = vld [vmem:[#allocation4 + $0x6] ss:$0 sm:$0xff] }
 0x358   :  { %2200 = vmatprep.mubr.bf16.mxu0 %v1913_v16 }
 0x359   :  { %2201 = vmatmul.mubr.bf16.vlgmr.msra.gmra.mrb[20].mxu0 %v1912_v38 }
 0x35a   :  { %2210 = vmatpush1.bf16.msra.mxu0 %v6598_v36  ;;  %2241 = vmatprep.mubr.bf16.mxu0 %v7150_v0 }
 0x35b   :  { %2211 = vmatprep.subr.bf16.mxu0 %v6603_v39  ;;  %v6646_v39 = vld [vmem:[#allocation2 + $0x7e0] ss:$12 sps:$4 sm:$0xff]  }
 0x35e   :  { %2212 = vmatpush1.bf16.msra.mxu0 %v6601_v41 }
 0x35f   :  { %2213 = vmatprep.subr.bf16.mxu0 %v6606_v42  ;;  %v6647_v42 = vld [vmem:[#allocation2 + $0x7f8] ss:$12 sps:$4 sm:$0xff]  }
 0x362   :  { %2214 = vmatpush1.bf16.msra.mxu0 %v6604_v43  ;;  %v6648_v43 = vld [vmem:[#allocation2 + $0x810] ss:$12 sps:$4 sm:$0xff]  }
 0x363   :  { %2215 = vmatprep.subr.bf16.mxu0 %v6609_v44  ;;  %v6649_v44 = vld [vmem:[#allocation2 + $0x828] ss:$12 sps:$4 sm:$0xff]  }
 0x366   :  { %2216 = vmatpush1.bf16.msra.mxu0 %v6607_v47  ;;  %v6652_v47 = vld [vmem:[#allocation2 + $0x870] ss:$12 sps:$4 sm:$0xff]  }
 0x367   :  { %2217 = vmatprep.subr.bf16.mxu0 %v6612_v49  ;;  %v6654_v49 = vld [vmem:[#allocation2 + $0x8a0] ss:$12 sps:$4 sm:$0xff]  }
 0x36a   :  { %2218 = vmatpush1.bf16.msra.mxu0 %v6610_v51  ;;  %v6659_v51 = vld [vmem:[#allocation2 + $0x8bc] ss:$12 sps:$4 sm:$0xff]  }
 0x36b   :  { %2219 = vmatprep.subr.bf16.mxu0 %v6615_v52  ;;  %v6662_v52 = vld [vmem:[#allocation2 + $0x8d4] ss:$12 sps:$4 sm:$0xff]  }
 0x36e   :  { %2220 = vmatpush1.bf16.msra.mxu0 %v6613_v54  ;;  %v6665_v54 = vld [vmem:[#allocation2 + $0x8ec] ss:$12 sps:$4 sm:$0xff]  }
 0x36f   :  { %2221 = vmatprep.subr.bf16.mxu0 %v6618_v55  ;;  %v6663_v55 = vld [vmem:[#allocation2 + $0x8e8] ss:$12 sps:$4 sm:$0xff]  }
 0x372   :  { %2222 = vmatpush1.bf16.msra.mxu0 %v6616_v58  ;;  %v6671_v58 = vld [vmem:[#allocation2 + $0x91c] ss:$12 sps:$4 sm:$0xff]  }
 0x373   :  { %2223 = vmatprep.subr.bf16.mxu0 %v6621_v59  ;;  %v6669_v59 = vld [vmem:[#allocation2 + $0x918] ss:$12 sps:$4 sm:$0xff]  }
 0x376   :  { %2224 = vmatpush1.bf16.msra.mxu0 %v6619_v20  ;;  %v6672_v20 = vld [vmem:[#allocation2 + $0x930] ss:$12 sps:$4 sm:$0xff]  }
 0x377   :  { %2747 = vmatprep.subr.bf16.mxu0 %v6656_v50  ;;  %v6706_v50 = vld [vmem:[#allocation2 + $0x968] ss:$12 sps:$4 sm:$0xff]  }
 0x379   :  { %2242 = vmatmul.mubr.bf16.vlgmr.msra.gmra.mrb[20].mxu0 %v1914_v62 }
 0x37a   :  { %2779 = vmatprep.mubr.bf16.mxu0 %v7150_v0  ;;  %2748 = vmatpush1.bf16.msra.mxu0 %v6654_v49 }
 0x37b   :  { %2749 = vmatprep.subr.bf16.mxu0 %v6659_v51 }
 0x37e   :  { %2750 = vmatpush1.bf16.msra.mxu0 %v6657_v40  ;;  %v6710_v40 = vld [vmem:[#allocation2 + $0xa40] ss:$12 sps:$4 sm:$0xff]  }
 0x37f   :  { %2751 = vmatprep.subr.bf16.mxu0 %v6662_v52  ;;  %v6711_v52 = vld [vmem:[#allocation2 + $0x980] ss:$12 sps:$4 sm:$0xff]  }
 0x382   :  { %2752 = vmatpush1.bf16.msra.mxu0 %v6660_v53  ;;  %v6715_v53 = vld [vmem:[#allocation2 + $0xa58] ss:$12 sps:$4 sm:$0xff]  }
 0x383   :  { %2753 = vmatprep.subr.bf16.mxu0 %v6665_v54  ;;  %v6716_v54 = vld [vmem:[#allocation2 + $0x998] ss:$12 sps:$4 sm:$0xff]  }
 0x386   :  { %2754 = vmatpush1.bf16.msra.mxu0 %v6663_v55  ;;  %v6720_v55 = vld [vmem:[#allocation2 + $0xa70] ss:$12 sps:$4 sm:$0xff]  }
 0x387   :  { %2755 = vmatprep.subr.bf16.mxu0 %v6668_v56  ;;  %v6721_v56 = vld [vmem:[#allocation2 + $0x9b0] ss:$12 sps:$4 sm:$0xff]  }
 0x38a   :  { %2756 = vmatpush1.bf16.msra.mxu0 %v6666_v57  ;;  %v6725_v57 = vld [vmem:[#allocation2 + $0xa88] ss:$12 sps:$4 sm:$0xff]  }
 0x38b   :  { %2757 = vmatprep.subr.bf16.mxu0 %v6671_v58  ;;  %v6726_v58 = vld [vmem:[#allocation2 + $0x9c8] ss:$12 sps:$4 sm:$0xff]  }
 0x38e   :  { %2758 = vmatpush1.bf16.msra.mxu0 %v6669_v59  ;;  %v6730_v59 = vld [vmem:[#allocation2 + $0xaa0] ss:$12 sps:$4 sm:$0xff]  }
 0x38f   :  { %2759 = vmatprep.subr.bf16.mxu0 %v6674_v60  ;;  %v6731_v60 = vld [vmem:[#allocation2 + $0x9e0] ss:$12 sps:$4 sm:$0xff]  }
 0x392   :  { %2760 = vmatpush1.bf16.msra.mxu0 %v6672_v20  ;;  %v6734_v20 = vld [vmem:[#allocation2 + $0xab4] ss:$12 sps:$4 sm:$0xff]  }
 0x44c   :  { %v2243_v8 = vpop.f32.mrb[20].mxu0 }
 0x44d   :  { %v6267_v10 = vadd.f32 %v2243_v8, %v1921_v6  ;;  %v2245_v12 = vpop.f32.mrb[21].mxu0  ;;  %v6677_v6 = vld [vmem:[#allocation2 + $0x94c] ss:$12 sps:$4 sm:$0xff]  }
 0x44e   :  { %v6268_v13 = vadd.f32 %v2245_v12, %v1925_v7  ;;  %v2247_v15 = vpop.f32.mrb[22].mxu0  ;;  %v6675_v7 = vld [vmem:[#allocation2 + $0x948] ss:$12 sps:$4 sm:$0xff]   ;;  %2761 = vmatprep.subr.bf16.mxu0 %v6677_v6  ;;  %v6678_v8 = vld [vmem:[#allocation2 + $0x960] ss:$12 sps:$4 sm:$0xff]  }
 0x44f   :  { %v2250_v17 = vmax.f32 %v6267_v10, 0.0  ;;  %v2248_v18 = vpop.f32.mrb[23].mxu0  ;;  %2762 = vmatpush1.bf16.msra.mxu0 %v6675_v7  ;;  %v6680_v10 = vld [vmem:[#allocation2 + $0x964] ss:$12 sps:$4 sm:$0xff]   ;;  %v6683_v12 = vld [vmem:[#allocation2 + $0x97c] ss:$12 sps:$4 sm:$0xff]  }
 0x450   :  { %v2251_v19 = vmax.f32 %v6268_v13, 0.0  ;;  %v6681_v13 = vld [vmem:[#allocation2 + $0x978] ss:$12 sps:$4 sm:$0xff]   ;;  %v6686_v15 = vld [vmem:[#allocation2 + $0x994] ss:$12 sps:$4 sm:$0xff]  }
 0x451   :  { %v2284_v23 = vpack.c.bf16 %v2250_v17, %v2250_v17  ;;  %v6705_v17 = vld [vmem:[#allocation2 + $0xa28] ss:$12 sps:$4 sm:$0xff]   ;;  %v6684_v18 = vld [vmem:[#allocation2 + $0x990] ss:$12 sps:$4 sm:$0xff]  }
 0x452   :  { %v2285_v9 = vpack.c.bf16 %v2251_v19, %v2251_v19  ;;  %v6689_v19 = vld [vmem:[#allocation2 + $0x9ac] ss:$12 sps:$4 sm:$0xff]   ;;  %6010 = vmatprep.subr.bf16.mxu0 %v6705_v17  ;;  %v7024_v6 = vld [vmem:[#allocation2 + $0xf64] ss:$12 sps:$4 sm:$0xff]   ;;  %v7025_v7 = vld [vmem:[#allocation2 + $0x1028] ss:$12 sps:$4 sm:$0xff]  }
 0x454   :  { %2415 = vmatprep.mubr.bf16.mxu1 %v2285_v9  ;;  %v6687_v9 = vld [vmem:[#allocation2 + $0x9a8] ss:$12 sps:$4 sm:$0xff]  }
 0x455   :  { %2416 = vmatmul.mubr.bf16.vlgmr.msra.gmra.mrb[12].mxu1 %v2284_v23  ;;  %v6690_v23 = vld [vmem:[#allocation2 + $0x9c0] ss:$12 sps:$4 sm:$0xff]  }
 0x456   :  { %6166 = vmatpush3.bf16.msra.mxu1 %v6638_v21  ;;  %6181 = vmatprep.mubr.msk.bf16.mxu1 %vm7152_vm1, %v7151_v11  ;;  %v6692_v21 = vld [vmem:[#allocation2 + $0x9c4] ss:$12 sps:$4 sm:$0xff]  }
 0x457   :  { %6167 = vmatprep.subr.bf16.mxu1 %v7151_v11 }
 0x45a   :  { %6168 = vmatpush3.bf16.msra.mxu1 %v6639_v26  ;;  %v6695_v26 = vld [vmem:[#allocation2 + $0x9dc] ss:$12 sps:$4 sm:$0xff]  }
 0x45b   :  { %6169 = vmatprep.subr.bf16.mxu1 %v7151_v11 }
 0x45e   :  { %6170 = vmatpush3.bf16.msra.mxu1 %v6640_v27  ;;  %v6693_v27 = vld [vmem:[#allocation2 + $0x9d8] ss:$12 sps:$4 sm:$0xff]  }
 0x45f   :  { %6171 = vmatprep.subr.bf16.mxu1 %v7151_v11 }
 0x462   :  { %6172 = vmatpush3.bf16.msra.mxu1 %v6641_v28  ;;  %v6698_v28 = vld [vmem:[#allocation2 + $0x9f4] ss:$12 sps:$4 sm:$0xff]  }
 0x463   :  { %6173 = vmatprep.subr.bf16.mxu1 %v7151_v11 }
 0x466   :  { %6174 = vmatpush3.bf16.msra.mxu1 %v6642_v29  ;;  %v6696_v29 = vld [vmem:[#allocation2 + $0x9f0] ss:$12 sps:$4 sm:$0xff]  }
 0x467   :  { %6175 = vmatprep.subr.bf16.mxu1 %v7151_v11 }
 0x46a   :  { %6176 = vmatpush3.bf16.msra.mxu1 %v6643_v30  ;;  %v6701_v30 = vld [vmem:[#allocation2 + $0xa0c] ss:$12 sps:$4 sm:$0xff]  }
 0x46b   :  { %6177 = vmatprep.subr.bf16.mxu1 %v7151_v11 }
 0x46e   :  { %6178 = vmatpush3.bf16.msra.mxu1 %v6644_v31  ;;  %v6699_v31 = vld [vmem:[#allocation2 + $0xa08] ss:$12 sps:$4 sm:$0xff]  }
 0x46f   :  { %6179 = vmatprep.subr.bf16.mxu1 %v7151_v11 }
 0x472   :  { %6180 = vmatpush3.bf16.msra.mxu1 %v6645_v5  ;;  %v6704_v5 = vld [vmem:[#allocation2 + $0xa24] ss:$12 sps:$4 sm:$0xff]  }
 0x473   :  { %6185 = vmatprep.subr.bf16.mxu1 %v7151_v11 }
 0x528   :  { %v5986_v14 = vpop.f32.mrb[12].mxu1 }
 0x529   :  { %v5987_v33 = vpop.f32.mrb[13].mxu1 }
 0x52a   :  { %v5988_v34 = vadd.f32 %v5987_v33, %v5986_v14  ;;  %v5989_v35 = vpop.f32.mrb[14].mxu1  ;;  %v6702_v14 = vld [vmem:[#allocation2 + $0xa20] ss:$12 sps:$4 sm:$0xff]   ;;  %v6707_v33 = vld [vmem:[#allocation2 + $0xa38] ss:$12 sps:$4 sm:$0xff]  }
 0x52b   :  { %v5990_v16 = vpop.f32.mrb[15].mxu1  ;;  %v6712_v35 = vld [vmem:[#allocation2 + $0xa50] ss:$12 sps:$4 sm:$0xff]  }
 0x52c   :  { %v2418_v36 = vadd.f32 %v5988_v34, %v2286_v32  ;;  %v6709_v32 = vld [vmem:[#allocation2 + $0xa3c] ss:$12 sps:$4 sm:$0xff]   ;;  %v6714_v34 = vld [vmem:[#allocation2 + $0xa54] ss:$12 sps:$4 sm:$0xff]   ;;  %v6719_v16 = vld [vmem:[#allocation2 + $0xa6c] ss:$12 sps:$4 sm:$0xff]  }
 0x52e   :  { %v2423_v38 = vmax.f32 %v2418_v36, 0.0  ;;  %v6717_v36 = vld [vmem:[#allocation2 + $0xa68] ss:$12 sps:$4 sm:$0xff]  }
 0x530   :  { %v2440_v41 = vpack.c.bf16 %v2423_v38, %v2423_v38  ;;  %v6724_v38 = vld [vmem:[#allocation2 + $0xa84] ss:$12 sps:$4 sm:$0xff]  }
 0x532   :  { %6182 = vmatmul.mubr.bf16.vlgmr.msra.gmra.mrb[16].mxu1 %v2440_v41  ;;  %v6729_v41 = vld [vmem:[#allocation2 + $0xa9c] ss:$12 sps:$4 sm:$0xff]  }
 0x533   :  { %6186 = vmatpush3.bf16.msra.mxu1 %v6646_v39  ;;  %6201 = vmatprep.mubr.msk.bf16.mxu1 %vm7152_vm1, %v7151_v11  ;;  %v6722_v39 = vld [vmem:[#allocation2 + $0xa80] ss:$12 sps:$4 sm:$0xff]  }
 0x534   :  { %6187 = vmatprep.subr.bf16.mxu1 %v7151_v11 }
 0x537   :  { %6188 = vmatpush3.bf16.msra.mxu1 %v6647_v42  ;;  %v6727_v42 = vld [vmem:[#allocation2 + $0xa98] ss:$12 sps:$4 sm:$0xff]  }
 0x538   :  { %6189 = vmatprep.subr.bf16.mxu1 %v7151_v11 }
 0x53b   :  { %6190 = vmatpush3.bf16.msra.mxu1 %v6648_v43  ;;  %v2547_v43 = vld [vmem:[#allocation4 + $0x7] ss:$0 sm:$0xff] }
 0x53c   :  { %6191 = vmatprep.subr.bf16.mxu1 %v7151_v11 }
 0x53f   :  { %6192 = vmatpush3.bf16.msra.mxu1 %v6649_v44 }
 0x540   :  { %6193 = vmatprep.subr.bf16.mxu1 %v7151_v11 }
 0x543   :  { %6194 = vmatpush3.bf16.msra.mxu1 %v6650_v45 }
 0x544   :  { %6195 = vmatprep.subr.bf16.mxu1 %v7151_v11 }
 0x547   :  { %6196 = vmatpush3.bf16.msra.mxu1 %v6651_v46 }
 0x548   :  { %6197 = vmatprep.subr.bf16.mxu1 %v7151_v11 }
 0x54b   :  { %6198 = vmatpush3.bf16.msra.mxu1 %v6652_v47 }
 0x54c   :  { %6199 = vmatprep.subr.bf16.mxu1 %v7151_v11 }
 0x54f   :  { %6200 = vmatpush3.bf16.msra.mxu1 %v6653_v48 }
 0x550   :  { %3130 = vmatprep.subr.bf16.mxu1 %v6680_v10 }
 0x605   :  { %v2524_v62 = vpop.f32.mrb[16].mxu1 }
 0x606   :  { %v2525_v63 = vadd.f32 %v2524_v62, %v2441_v61  ;;  %v6183_v1 = vpop.f32.mrb[17].mxu1  ;;  %v6735_v61 = vld [vmem:[#allocation2 + $0xab8] ss:$12 sps:$4 sm:$0xff]   ;;  %v6732_v62 = vld [vmem:[#allocation2 + $0xab0] ss:$12 sps:$4 sm:$0xff]  }
 0x607   :  { %v2527_v2 = vpop.f32.mrb[18].mxu1  ;;  %v6739_v1 = vld [vmem:[#allocation2 + $0xacc] ss:$12 sps:$4 sm:$0xff]  }
 0x608   :  { %v2546_v3 = vpack.c.bf16 %v2525_v63, %v2525_v63  ;;  %v6184_v4 = vpop.f32.mrb[19].mxu1  ;;  %v6736_v63 = vld [vmem:[#allocation2 + $0x9f8] ss:$12 sps:$4 sm:$0xff]   ;;  %v6740_v2 = vld [vmem:[#allocation2 + $0xad0] ss:$12 sps:$4 sm:$0xff]  }
 0x609   :  { %v6741_v4 = vld [vmem:[#allocation2 + $0xa10] ss:$12 sps:$4 sm:$0xff]  }
 0x60a   :  { %6202 = vmatmul.mubr.bf16.vlgmr.msra.gmra.mrb[20].mxu1 %v2546_v3  ;;  %v6737_v3 = vld [vmem:[#allocation2 + $0xac8] ss:$12 sps:$4 sm:$0xff]  }
 0x60b   :  { %3131 = vmatpush1.bf16.msra.mxu1 %v6678_v8  ;;  %v2655_v8 = vld [vmem:[#allocation4 + $0x18] ss:$8 sm:$0x3] }
 0x60c   :  { %3132 = vmatprep.subr.bf16.mxu1 %v6683_v12  ;;  %v2660_v10 = vrot.slane %v2655_v8, %v7225_v24  ;;  %v2664_v12 = vrot.slane %v2655_v8, %v7228_v25  ;;  %v7071_v8 = vld [vmem:[#allocation2 + $0x10c8] ss:$12 sps:$4 sm:$0xff]  }
 0x60f   :  { %3133 = vmatpush1.bf16.msra.mxu1 %v6681_v13 }
 0x610   :  { %3134 = vmatprep.subr.bf16.mxu1 %v6686_v15 }
 0x613   :  { %3135 = vmatpush1.bf16.msra.mxu1 %v6684_v18 }
 0x614   :  { %3136 = vmatprep.subr.bf16.mxu1 %v6689_v19 }
 0x617   :  { %3137 = vmatpush1.bf16.msra.mxu1 %v6687_v9 }
 0x618   :  { %3138 = vmatprep.subr.bf16.mxu1 %v6692_v21 }
 0x61b   :  { %3139 = vmatpush1.bf16.msra.mxu1 %v6690_v23 }
 0x61c   :  { %3140 = vmatprep.subr.bf16.mxu1 %v6695_v26 }
 0x61f   :  { %3141 = vmatpush1.bf16.msra.mxu1 %v6693_v27 }
 0x620   :  { %3142 = vmatprep.subr.bf16.mxu1 %v6698_v28  ;;  %v7026_v28 = vld [vmem:[#allocation2 + $0xf60] ss:$12 sps:$4 sm:$0xff]  }
 0x623   :  { %3143 = vmatpush1.bf16.msra.mxu1 %v6696_v29  ;;  %v7027_v29 = vld [vmem:[#allocation2 + $0xf68] ss:$12 sps:$4 sm:$0xff]  }
 0x624   :  { %3144 = vmatprep.subr.bf16.mxu1 %v6701_v30  ;;  %v7028_v30 = vld [vmem:[#allocation2 + $0xf7c] ss:$12 sps:$4 sm:$0xff]  }
 0x627   :  { %3145 = vmatpush1.bf16.msra.mxu1 %v6699_v31  ;;  %v7029_v31 = vld [vmem:[#allocation2 + $0x1040] ss:$12 sps:$4 sm:$0xff]  }
 0x628   :  { %3146 = vmatprep.subr.bf16.mxu1 %v6704_v5  ;;  %v7030_v5 = vld [vmem:[#allocation2 + $0xf78] ss:$12 sps:$4 sm:$0xff]  }
 0x62b   :  { %3147 = vmatpush1.bf16.msra.mxu1 %v6702_v14  ;;  %v7031_v14 = vld [vmem:[#allocation2 + $0xf80] ss:$12 sps:$4 sm:$0xff]  }
 0x62c   :  { %3148 = vmatprep.subr.bf16.mxu1 %v6709_v32  ;;  %v7032_v32 = vld [vmem:[#allocation2 + $0xf94] ss:$12 sps:$4 sm:$0xff]  }
 0x62f   :  { %3149 = vmatpush1.bf16.msra.mxu1 %v6707_v33  ;;  %v7033_v33 = vld [vmem:[#allocation2 + $0x1058] ss:$12 sps:$4 sm:$0xff]  }
 0x630   :  { %3150 = vmatprep.subr.bf16.mxu1 %v6714_v34  ;;  %v7034_v34 = vld [vmem:[#allocation2 + $0xf90] ss:$12 sps:$4 sm:$0xff]  }
 0x633   :  { %3151 = vmatpush1.bf16.msra.mxu1 %v6712_v35  ;;  %v7035_v35 = vld [vmem:[#allocation2 + $0xf98] ss:$12 sps:$4 sm:$0xff]  }
 0x634   :  { %3152 = vmatprep.subr.bf16.mxu1 %v6719_v16  ;;  %v7036_v16 = vld [vmem:[#allocation2 + $0xfac] ss:$12 sps:$4 sm:$0xff]  }
 0x637   :  { %3153 = vmatpush1.bf16.msra.mxu1 %v6717_v36  ;;  %v7037_v36 = vld [vmem:[#allocation2 + $0x1070] ss:$12 sps:$4 sm:$0xff]  }
 0x638   :  { %3154 = vmatprep.subr.bf16.mxu1 %v6724_v38  ;;  %v7038_v38 = vld [vmem:[#allocation2 + $0xfa8] ss:$12 sps:$4 sm:$0xff]  }
 0x63b   :  { %3155 = vmatpush1.bf16.msra.mxu1 %v6722_v39  ;;  %v7039_v39 = vld [vmem:[#allocation2 + $0xfb0] ss:$12 sps:$4 sm:$0xff]  }
 0x63c   :  { %3156 = vmatprep.subr.bf16.mxu1 %v6729_v41  ;;  %v7040_v41 = vld [vmem:[#allocation2 + $0xfc4] ss:$12 sps:$4 sm:$0xff]  }
 0x63f   :  { %3157 = vmatpush1.bf16.msra.mxu1 %v6727_v42  ;;  %v7041_v42 = vld [vmem:[#allocation2 + $0x1088] ss:$12 sps:$4 sm:$0xff]  }
 0x640   :  { %3158 = vmatprep.subr.bf16.mxu1 %v6734_v20  ;;  %v7061_v20 = vld [vmem:[#allocation2 + $0x1050] ss:$12 sps:$4 sm:$0xff]  }
 0x643   :  { %3159 = vmatpush1.bf16.msra.mxu1 %v6732_v62  ;;  %v7063_v62 = vld [vmem:[#allocation2 + $0x1068] ss:$12 sps:$4 sm:$0xff]  }
 0x644   :  { %3160 = vmatprep.subr.bf16.mxu1 %v6739_v1  ;;  %v7065_v1 = vld [vmem:[#allocation2 + $0x1080] ss:$12 sps:$4 sm:$0xff]  }
 0x647   :  { %3161 = vmatpush1.bf16.msra.mxu1 %v6737_v3  ;;  %v7067_v3 = vld [vmem:[#allocation2 + $0x1098] ss:$12 sps:$4 sm:$0xff]  }
 0x648   :  { %6032 = vmatprep.subr.bf16.mxu1 %v7025_v7  ;;  %v7070_v7 = vld [vmem:[#allocation2 + $0x10cc] ss:$12 sps:$4 sm:$0xff]  }
 0x6dd   :  { %v2630_v44 = vpop.f32.mrb[20].mxu1 }
 0x6de   :  { %v2631_v45 = vadd.f32 %v2630_v44, %v2547_v43  ;;  %v6203_v46 = vpop.f32.mrb[21].mxu1  ;;  %v7042_v43 = vld [vmem:[#allocation2 + $0xfc0] ss:$12 sps:$4 sm:$0xff]   ;;  %v7043_v44 = vld [vmem:[#allocation2 + $0xfc8] ss:$12 sps:$4 sm:$0xff]  }
 0x6df   :  { %v2633_v47 = vpop.f32.mrb[22].mxu1  ;;  %v7045_v46 = vld [vmem:[#allocation2 + $0x10a0] ss:$12 sps:$4 sm:$0xff]  }
 0x6e0   :  { %v2636_v48 = vmax.f32 %v2631_v45, 0.0  ;;  %v6204_v49 = vpop.f32.mrb[23].mxu1  ;;  %v7044_v45 = vld [vmem:[#allocation2 + $0xfdc] ss:$12 sps:$4 sm:$0xff]   ;;  %v7046_v47 = vld [vmem:[#allocation2 + $0xfd8] ss:$12 sps:$4 sm:$0xff]  }
 0x6e1   :  { %v7048_v49 = vld [vmem:[#allocation2 + $0xff4] ss:$12 sps:$4 sm:$0xff]  }
 0x6e2   :  { %v2653_v51 = vpack.c.bf16 %v2636_v48, %v2636_v48  ;;  %v7047_v48 = vld [vmem:[#allocation2 + $0xfe0] ss:$12 sps:$4 sm:$0xff]  }
 0x6e4   :  { %2780 = vmatmul.mubr.bf16.vlgmr.msra.gmra.mrb[24].mxu0 %v2653_v51  ;;  %v7050_v51 = vld [vmem:[#allocation2 + $0xff0] ss:$12 sps:$4 sm:$0xff]  }
 0x6e5   :  { %6011 = vmatpush3.bf16.msra.mxu0 %v6706_v50  ;;  %v7049_v50 = vld [vmem:[#allocation2 + $0x10b8] ss:$12 sps:$4 sm:$0xff]  }
 0x6e6   :  { %6012 = vmatprep.subr.bf16.mxu0 %v6710_v40  ;;  %v7051_v40 = vld [vmem:[#allocation2 + $0xff8] ss:$12 sps:$4 sm:$0xff]  }
 0x6e9   :  { %6013 = vmatpush3.bf16.msra.mxu0 %v6711_v52  ;;  %v7052_v52 = vld [vmem:[#allocation2 + $0x100c] ss:$12 sps:$4 sm:$0xff]  }
 0x6ea   :  { %6014 = vmatprep.subr.bf16.mxu0 %v6715_v53  ;;  %v7053_v53 = vld [vmem:[#allocation2 + $0x10d0] ss:$12 sps:$4 sm:$0xff]  }
 0x6ed   :  { %6015 = vmatpush3.bf16.msra.mxu0 %v6716_v54  ;;  %v7054_v54 = vld [vmem:[#allocation2 + $0x1008] ss:$12 sps:$4 sm:$0xff]  }
 0x6ee   :  { %6016 = vmatprep.subr.bf16.mxu0 %v6720_v55  ;;  %v7055_v55 = vld [vmem:[#allocation2 + $0x1010] ss:$12 sps:$4 sm:$0xff]  }
 0x6f1   :  { %6017 = vmatpush3.bf16.msra.mxu0 %v6721_v56  ;;  %v7056_v56 = vld [vmem:[#allocation2 + $0x1024] ss:$12 sps:$4 sm:$0xff]  }
 0x6f2   :  { %6018 = vmatprep.subr.bf16.mxu0 %v6725_v57  ;;  %v7057_v57 = vld [vmem:[#allocation2 + $0x1020] ss:$12 sps:$4 sm:$0xff]  }
 0x6f5   :  { %6019 = vmatpush3.bf16.msra.mxu0 %v6726_v58  ;;  %v7058_v58 = vld [vmem:[#allocation2 + $0x103c] ss:$12 sps:$4 sm:$0xff]  }
 0x6f6   :  { %6020 = vmatprep.subr.bf16.mxu0 %v6730_v59  ;;  %v7059_v59 = vld [vmem:[#allocation2 + $0x1038] ss:$12 sps:$4 sm:$0xff]  }
 0x6f9   :  { %6021 = vmatpush3.bf16.msra.mxu0 %v6731_v60  ;;  %v7060_v60 = vld [vmem:[#allocation2 + $0x1054] ss:$12 sps:$4 sm:$0xff]  }
 0x6fa   :  { %6022 = vmatprep.subr.bf16.mxu0 %v6735_v61  ;;  %v7062_v61 = vld [vmem:[#allocation2 + $0x106c] ss:$12 sps:$4 sm:$0xff]  }
 0x6fd   :  { %6023 = vmatpush3.bf16.msra.mxu0 %v6736_v63  ;;  %v7064_v63 = vld [vmem:[#allocation2 + $0x1084] ss:$12 sps:$4 sm:$0xff]  }
 0x6fe   :  { %6024 = vmatprep.subr.bf16.mxu0 %v6740_v2  ;;  %v7066_v2 = vld [vmem:[#allocation2 + $0x109c] ss:$12 sps:$4 sm:$0xff]  }
 0x701   :  { %6025 = vmatpush3.bf16.msra.mxu0 %v6741_v4  ;;  %v7068_v4 = vld [vmem:[#allocation2 + $0x10b4] ss:$12 sps:$4 sm:$0xff]  }
 0x702   :  { %3262 = vmatprep.subr.bf16.mxu0 %v7024_v6  ;;  %v7069_v6 = vld [vmem:[#allocation2 + $0x10b0] ss:$12 sps:$4 sm:$0xff]  }
 0x7b7   :  { %v2781_v13 = vpop.f32.mrb[24].mxu0 }
 0x7b8   :  { %v2782_v15 = vadd.f32 %v2781_v13, %v2660_v10  ;;  %v2783_v17 = vpop.f32.mrb[25].mxu0  ;;  %v7072_v10 = vld [vmem:[#allocation2 + $0x10e4] ss:$12 sps:$4 sm:$0xff]  }
 0x7b9   :  { %v2784_v18 = vadd.f32 %v2783_v17, %v2664_v12  ;;  %v2785_v19 = vpop.f32.mrb[26].mxu0  ;;  %v2857_v12 = vld [vmem:[#allocation4 + $0x19] ss:$8 sm:$0x7] }
 0x7ba   :  { %v2788_v9 = vmax.f32 %v2782_v15, 0.0  ;;  %v2786_v21 = vpop.f32.mrb[27].mxu0  ;;  %v2862_v13 = vrot.slane %v2857_v12, %v7225_v24  ;;  %v2866_v15 = vrot.slane %v2857_v12, %v7228_v25 }
 0x7bb   :  { %v2789_v23 = vmax.f32 %v2784_v18, 0.0 }
 0x7bc   :  { %v2854_v27 = vpack.c.bf16 %v2788_v9, %v2788_v9 }
 0x7bd   :  { %v2855_v26 = vpack.c.bf16 %v2789_v23, %v2789_v23 }
 0x7bf   :  { %3162 = vmatprep.mubr.bf16.mxu1 %v2855_v26  ;;  %3203 = vmatprep.mubr.bf16.mxu0 %v2855_v26 }
 0x7c0   :  { %3163 = vmatmul.mubr.bf16.vlgmr.msra.gmra.mrb[24].mxu1 %v2854_v27  ;;  %3204 = vmatmul.mubr.bf16.vlgmr.msra.gmra.mrb[28].mxu0 %v2854_v27 }
 0x7c1   :  { %3263 = vmatpush1.bf16.msra.mxu0 %v7026_v28  ;;  %6033 = vmatpush3.bf16.msra.mxu1 %v7027_v29 }
 0x7c2   :  { %3264 = vmatprep.subr.bf16.mxu0 %v7028_v30  ;;  %6034 = vmatprep.subr.bf16.mxu1 %v7029_v31 }
 0x7c5   :  { %3265 = vmatpush1.bf16.msra.mxu0 %v7030_v5  ;;  %6035 = vmatpush3.bf16.msra.mxu1 %v7031_v14 }
 0x7c6   :  { %3266 = vmatprep.subr.bf16.mxu0 %v7032_v32  ;;  %6036 = vmatprep.subr.bf16.mxu1 %v7033_v33 }
 0x7c9   :  { %3267 = vmatpush1.bf16.msra.mxu0 %v7034_v34  ;;  %6037 = vmatpush3.bf16.msra.mxu1 %v7035_v35 }
 0x7ca   :  { %3268 = vmatprep.subr.bf16.mxu0 %v7036_v16  ;;  %6038 = vmatprep.subr.bf16.mxu1 %v7037_v36 }
 0x7cd   :  { %3269 = vmatpush1.bf16.msra.mxu0 %v7038_v38  ;;  %6039 = vmatpush3.bf16.msra.mxu1 %v7039_v39 }
 0x7ce   :  { %3270 = vmatprep.subr.bf16.mxu0 %v7040_v41  ;;  %6040 = vmatprep.subr.bf16.mxu1 %v7041_v42 }
 0x7d1   :  { %3271 = vmatpush1.bf16.msra.mxu0 %v7042_v43  ;;  %6041 = vmatpush3.bf16.msra.mxu1 %v7043_v44 }
 0x7d2   :  { %3272 = vmatprep.subr.bf16.mxu0 %v7044_v45  ;;  %6042 = vmatprep.subr.bf16.mxu1 %v7045_v46 }
 0x7d5   :  { %3273 = vmatpush1.bf16.msra.mxu0 %v7046_v47  ;;  %6043 = vmatpush3.bf16.msra.mxu1 %v7047_v48 }
 0x7d6   :  { %3274 = vmatprep.subr.bf16.mxu0 %v7048_v49  ;;  %6044 = vmatprep.subr.bf16.mxu1 %v7049_v50  ;;  %v2870_v50 = vrot.slane %v2857_v12, %v7233_v37  ;;  %v7076_v12 = vld [vmem:[#allocation2 + $0x10f8] ss:$12 sps:$4 sm:$0xff]  }
 0x7d9   :  { %3275 = vmatpush1.bf16.msra.mxu0 %v7050_v51  ;;  %6045 = vmatpush3.bf16.msra.mxu1 %v7051_v40 }
 0x7da   :  { %3276 = vmatprep.subr.bf16.mxu0 %v7052_v52  ;;  %6046 = vmatprep.subr.bf16.mxu1 %v7053_v53 }
 0x7dd   :  { %3277 = vmatpush1.bf16.msra.mxu0 %v7054_v54  ;;  %6047 = vmatpush3.bf16.msra.mxu1 %v7055_v55 }
 0x7de   :  { %3278 = vmatprep.subr.bf16.mxu0 %v7056_v56  ;;  %6205 = vmatprep.subr.bf16.mxu1 %v7151_v11 }
 0x7e1   :  { %3279 = vmatpush1.bf16.msra.mxu0 %v7057_v57 }
 0x7e2   :  { %3280 = vmatprep.subr.bf16.mxu0 %v7058_v58 }
 0x7e5   :  { %3281 = vmatpush1.bf16.msra.mxu0 %v7059_v59 }
 0x7e6   :  { %3282 = vmatprep.subr.bf16.mxu0 %v7060_v60 }
 0x7e9   :  { %3283 = vmatpush1.bf16.msra.mxu0 %v7061_v20 }
 0x7ea   :  { %3284 = vmatprep.subr.bf16.mxu0 %v7062_v61 }
 0x7ed   :  { %3285 = vmatpush1.bf16.msra.mxu0 %v7063_v62 }
 0x7ee   :  { %3286 = vmatprep.subr.bf16.mxu0 %v7064_v63 }
 0x7f1   :  { %3287 = vmatpush1.bf16.msra.mxu0 %v7065_v1 }
 0x7f2   :  { %3288 = vmatprep.subr.bf16.mxu0 %v7066_v2 }
 0x7f5   :  { %3289 = vmatpush1.bf16.msra.mxu0 %v7067_v3  ;;  %v7073_v3 = vld [vmem:[#allocation2 + $0x10e0] ss:$12 sps:$4 sm:$0xff]  }
 0x7f6   :  { %3290 = vmatprep.subr.bf16.mxu0 %v7068_v4  ;;  %v7074_v4 = vld [vmem:[#allocation2 + $0x10e8] ss:$12 sps:$4 sm:$0xff]  }
 0x7f9   :  { %3291 = vmatpush1.bf16.msra.mxu0 %v7069_v6 }
 0x7fa   :  { %3292 = vmatprep.subr.bf16.mxu0 %v7070_v7  ;;  %v7075_v7 = vld [vmem:[#allocation2 + $0x10fc] ss:$12 sps:$4 sm:$0xff]  }
 0x7fd   :  { %3293 = vmatpush1.bf16.msra.mxu0 %v7071_v8 }
 0x7fe   :  { %3303 = vmatprep.subr.bf16.mxu0 %v7072_v10 }
 0x893   :  { %v3164_v17 = vpop.f32.mrb[24].mxu1  ;;  %v6026_v18 = vpop.f32.mrb[28].mxu0 }
 0x894   :  { %v7339_v19 = vadd.f32 %v3164_v17, %v2862_v13  ;;  %v3166_v9 = vpop.f32.mrb[25].mxu1  ;;  %v6027_v21 = vpop.f32.mrb[29].mxu0  ;;  %v7077_v13 = vld [vmem:[#allocation2 + $0x1100] ss:$12 sps:$4 sm:$0xff]  }
 0x895   :  { %v7341_v23 = vadd.f32 %v3166_v9, %v2866_v15  ;;  %v6028_v26 = vadd.f32 %v6027_v21, %v6026_v18  ;;  %v3168_v27 = vpop.f32.mrb[26].mxu1  ;;  %v6029_v28 = vpop.f32.mrb[30].mxu0  ;;  %v7078_v15 = vld [vmem:[#allocation2 + $0x1114] ss:$12 sps:$4 sm:$0xff]   ;;  %v7079_v9 = vld [vmem:[#allocation2 + $0x1110] ss:$12 sps:$4 sm:$0xff]  }
 0x896   :  { %v3211_v29 = vsel %vm1065_vm2, %v7339_v19, 0.0  ;;  %v3232_v30 = vmul.f32 %v7339_v19, %v7339_v19  ;;  %v3169_v31 = vpop.f32.mrb[27].mxu1  ;;  %v6030_v5 = vpop.f32.mrb[31].mxu0  ;;  %v7080_v21 = vld [vmem:[#allocation2 + $0x1118] ss:$12 sps:$4 sm:$0xff]  }
 0x897   :  { %v3212_v14 = vrot.slane %v3211_v29, 4  ;;  %v3218_v32 = vsel %vm1065_vm2, %v7341_v23, 0.0  ;;  %v3233_v33 = vmul.f32 %v7341_v23, %v7341_v23  ;;  %v7354_v55 = vadd.f32 %v6028_v26, %v2870_v50  ;;  %v7081_v26 = vld [vmem:[#allocation2 + $0x112c] ss:$12 sps:$4 sm:$0xff]   ;;  %v7084_v31 = vld [vmem:[#allocation2 + $0x1144] ss:$12 sps:$4 sm:$0xff]  }
 0x898   :  { %v3235_v34 = vsel %vm1065_vm2, %v3232_v30, 0.0  ;;  %v3219_v35 = vrot.slane %v3218_v32, 4  ;;  %v7083_v30 = vld [vmem:[#allocation2 + $0x1130] ss:$12 sps:$4 sm:$0xff]   ;;  %v6742_v50 = vld [vmem:[#allocation2 + $0xae0] ss:$12 sps:$4 sm:$0xff]  }
 0x899   :  { %v3213_v16 = vadd.f32 %v3212_v14, %v3211_v29  ;;  %v3236_v36 = vrot.slane %v3235_v34, 4  ;;  %v3242_v38 = vsel %vm1065_vm2, %v3233_v33, 0.0  ;;  %v3234_v61 = vmul.f32 %v7354_v55, %v7354_v55  ;;  %v7082_v29 = vld [vmem:[#allocation2 + $0x1128] ss:$12 sps:$4 sm:$0xff]  }
 0x89a   :  { %v3220_v39 = vadd.f32 %v3219_v35, %v3218_v32  ;;  %v3243_v41 = vrot.slane %v3242_v38, 4  ;;  %v3225_v6 = vsel %vm1065_vm2, %v7354_v55, 0.0  ;;  %v7085_v32 = vld [vmem:[#allocation2 + $0x1140] ss:$12 sps:$4 sm:$0xff]   ;;  %v7086_v33 = vld [vmem:[#allocation2 + $0x1148] ss:$12 sps:$4 sm:$0xff]  }
 0x89b   :  { %v3214_v42 = vrot.slane %v3213_v16, 2  ;;  %v3237_v43 = vadd.f32 %v3236_v36, %v3235_v34  ;;  %v3249_v2 = vsel %vm1065_vm2, %v3234_v61, 0.0  ;;  %v3226_v10 = vrot.slane %v3225_v6, 4  ;;  %v7087_v34 = vld [vmem:[#allocation2 + $0x115c] ss:$12 sps:$4 sm:$0xff]  }
 0x89c   :  { %v3221_v44 = vrot.slane %v3220_v39, 2  ;;  %v3244_v45 = vadd.f32 %v3243_v41, %v3242_v38  ;;  %v3250_v8 = vrot.slane %v3249_v2, 4  ;;  %v7088_v36 = vld [vmem:[#allocation2 + $0x1158] ss:$12 sps:$4 sm:$0xff]   ;;  %v7089_v38 = vld [vmem:[#allocation2 + $0x1160] ss:$12 sps:$4 sm:$0xff]  }
 0x89d   :  { %v3215_v46 = vadd.f32 %v3214_v42, %v3213_v16  ;;  %v3238_v47 = vrot.slane %v3237_v43, 2  ;;  %v3227_v18 = vadd.f32 %v3226_v10, %v3225_v6  ;;  %v6762_v61 = vld [vmem:[#allocation2 + $0xb74] ss:$12 sps:$4 sm:$0xff]   ;;  %v6771_v10 = vld [vmem:[#allocation2 + $0xbb8] ss:$12 sps:$4 sm:$0xff]  }
 0x89e   :  { %v3222_v48 = vadd.f32 %v3221_v44, %v3220_v39  ;;  %v3245_v49 = vrot.slane %v3244_v45, 2  ;;  %v3251_v17 = vadd.f32 %v3250_v8, %v3249_v2  ;;  %v7090_v39 = vld [vmem:[#allocation2 + $0x1174] ss:$12 sps:$4 sm:$0xff]   ;;  %v7092_v44 = vld [vmem:[#allocation2 + $0x1178] ss:$12 sps:$4 sm:$0xff]  }
 0x89f   :  { %v3216_v51 = vrot.slane %v3215_v46, 1  ;;  %v3239_v40 = vadd.f32 %v3238_v47, %v3237_v43  ;;  %v3228_v28 = vrot.slane %v3227_v18, 2  ;;  %v7091_v43 = vld [vmem:[#allocation2 + $0x1170] ss:$12 sps:$4 sm:$0xff]   ;;  %v7094_v47 = vld [vmem:[#allocation2 + $0x1188] ss:$12 sps:$4 sm:$0xff]  }
 0x8a0   :  { %v3223_v52 = vrot.slane %v3222_v48, 1  ;;  %v3246_v53 = vadd.f32 %v3245_v49, %v3244_v45  ;;  %v3252_v27 = vrot.slane %v3251_v17, 2  ;;  %v7093_v45 = vld [vmem:[#allocation2 + $0x118c] ss:$12 sps:$4 sm:$0xff]   ;;  %v6768_v2 = vld [vmem:[#allocation2 + $0xba4] ss:$12 sps:$4 sm:$0xff]  }
 0x8a1   :  { %v3240_v54 = vrot.slane %v3239_v40, 1  ;;  %v3217_v57 = vadd.f32 %v3216_v51, %v3215_v46  ;;  %v3229_v14 = vadd.f32 %v3228_v28, %v3227_v18  ;;  %v6744_v51 = vld [vmem:[#allocation2 + $0xae4] ss:$12 sps:$4 sm:$0xff]   ;;  %v6770_v6 = vld [vmem:[#allocation2 + $0xae8] ss:$12 sps:$4 sm:$0xff]  }
 0x8a2   :  { %v3247_v56 = vrot.slane %v3246_v53, 1  ;;  %v3224_v59 = vadd.f32 %v3223_v52, %v3222_v48  ;;  %v3253_v5 = vadd.f32 %v3252_v27, %v3251_v17  ;;  %v7095_v48 = vld [vmem:[#allocation2 + $0x1190] ss:$12 sps:$4 sm:$0xff]   ;;  %v6745_v52 = vld [vmem:[#allocation2 + $0xaf8] ss:$12 sps:$4 sm:$0xff]  }
 0x8a3   :  { %v3241_v58 = vadd.f32 %v3240_v54, %v3239_v40  ;;  %v3230_v16 = vrot.slane %v3229_v14, 1  ;;  %v6747_v40 = vld [vmem:[#allocation2 + $0xafc] ss:$12 sps:$4 sm:$0xff]   ;;  %v6774_v8 = vld [vmem:[#allocation2 + $0xbc0] ss:$12 sps:$4 sm:$0xff]  }
 0x8a4   :  { %v3248_v60 = vadd.f32 %v3247_v56, %v3246_v53  ;;  %v3254_v35 = vrot.slane %v3253_v5, 1  ;;  %v6750_v53 = vld [vmem:[#allocation2 + $0xb14] ss:$12 sps:$4 sm:$0xff]   ;;  %v6748_v54 = vld [vmem:[#allocation2 + $0xb10] ss:$12 sps:$4 sm:$0xff]  }
 0x8a5   :  { %v3256_v20 = vsel %vm1113_vm3, %v3217_v57, %v3241_v58  ;;  %v3231_v42 = vadd.f32 %v3230_v16, %v3229_v14  ;;  %v6753_v56 = vld [vmem:[#allocation2 + $0xb2c] ss:$12 sps:$4 sm:$0xff]   ;;  %v6751_v57 = vld [vmem:[#allocation2 + $0xb28] ss:$12 sps:$4 sm:$0xff]   ;;  %v6756_v58 = vld [vmem:[#allocation2 + $0xb44] ss:$12 sps:$4 sm:$0xff]  }
 0x8a6   :  { %v3257_v62 = vsel %vm1113_vm3, %v3224_v59, %v3248_v60  ;;  %v3259_v1 = vpack.c.bf16 %v3256_v20, %v3256_v20  ;;  %v3255_v41 = vadd.f32 %v3254_v35, %v3253_v5  ;;  %v6754_v59 = vld [vmem:[#allocation2 + $0xb40] ss:$12 sps:$4 sm:$0xff]   ;;  %v6759_v60 = vld [vmem:[#allocation2 + $0xb5c] ss:$12 sps:$4 sm:$0xff]   ;;  %v6757_v20 = vld [vmem:[#allocation2 + $0xb58] ss:$12 sps:$4 sm:$0xff]  }
 0x8a7   :  { %v3260_v63 = vpack.c.bf16 %v3257_v62, %v3257_v62  ;;  %v6760_v62 = vld [vmem:[#allocation2 + $0xb70] ss:$12 sps:$4 sm:$0xff]   ;;  %v6780_v18 = vld [vmem:[#allocation2 + $0xb18] ss:$12 sps:$4 sm:$0xff]   ;;  %v6794_v14 = vld [vmem:[#allocation2 + $0xc20] ss:$12 sps:$4 sm:$0xff]  }
 0x8a8   :  { %v3258_v46 = vsel %vm1113_vm3, %v3231_v42, %v3255_v41  ;;  %v6776_v17 = vld [vmem:[#allocation2 + $0xbd0] ss:$12 sps:$4 sm:$0xff]   ;;  %v6799_v35 = vld [vmem:[#allocation2 + $0xc38] ss:$12 sps:$4 sm:$0xff]   ;;  %v6801_v41 = vld [vmem:[#allocation2 + $0xc48] ss:$12 sps:$4 sm:$0xff]  }
 0x8a9   :  { %3294 = vmatprep.mubr.bf16.mxu0 %v3260_v63  ;;  %3376 = vmatprep.mubr.bf16.mxu1 %v3260_v63  ;;  %v3261_v49 = vpack.c.bf16 %v3258_v46, %v3258_v46  ;;  %v6765_v63 = vld [vmem:[#allocation2 + $0xb8c] ss:$12 sps:$4 sm:$0xff]   ;;  %v6785_v27 = vld [vmem:[#allocation2 + $0xb30] ss:$12 sps:$4 sm:$0xff]  }
 0x8aa   :  { %3295 = vmatmul.mubr.bf16.vlgmr.msra.gmra.mrb[32].mxu0 %v3259_v1  ;;  %3377 = vmatmul.mubr.bf16.vlgmr.msra.gmra.mrb[28].mxu1 %v3259_v1  ;;  %v6763_v1 = vld [vmem:[#allocation2 + $0xb88] ss:$12 sps:$4 sm:$0xff]   ;;  %v6788_v28 = vld [vmem:[#allocation2 + $0xc04] ss:$12 sps:$4 sm:$0xff]  }
 0x8ab   :  { %3304 = vmatpush1.bf16.msra.mxu0 %v7073_v3  ;;  %6206 = vmatpush3.bf16.msra.mxu1 %v7074_v4  ;;  %v6769_v3 = vld [vmem:[#allocation2 + $0xba8] ss:$12 sps:$4 sm:$0xff]   ;;  %v6766_v4 = vld [vmem:[#allocation2 + $0xba0] ss:$12 sps:$4 sm:$0xff]   ;;  %v6796_v16 = vld [vmem:[#allocation2 + $0xc30] ss:$12 sps:$4 sm:$0xff]  }
 0x8ac   :  { %3305 = vmatprep.subr.bf16.mxu0 %v7075_v7  ;;  %6207 = vmatprep.subr.bf16.mxu1 %v7151_v11  ;;  %v6773_v7 = vld [vmem:[#allocation2 + $0xbbc] ss:$12 sps:$4 sm:$0xff]  }
 0x8ad   :  { %3335 = vmatprep.mubr.bf16.mxu0 %v7150_v0  ;;  %6221 = vmatprep.mubr.msk.bf16.mxu1 %vm7152_vm1, %v7151_v11  ;;  %v6793_v5 = vld [vmem:[#allocation2 + $0xc1c] ss:$12 sps:$4 sm:$0xff]  }
 0x8ae   :  { %v6805_v42 = vld [vmem:[#allocation2 + $0xb90] ss:$12 sps:$4 sm:$0xff]  }
 0x8af   :  { %3306 = vmatpush1.bf16.msra.mxu0 %v7076_v12  ;;  %6208 = vmatpush3.bf16.msra.mxu1 %v7077_v13  ;;  %v6775_v12 = vld [vmem:[#allocation2 + $0xb00] ss:$12 sps:$4 sm:$0xff]  }
 0x8b0   :  { %3307 = vmatprep.subr.bf16.mxu0 %v7078_v15  ;;  %6209 = vmatprep.subr.bf16.mxu1 %v7151_v11  ;;  %v6778_v13 = vld [vmem:[#allocation2 + $0xbd4] ss:$12 sps:$4 sm:$0xff]   ;;  %v6779_v15 = vld [vmem:[#allocation2 + $0xbd8] ss:$12 sps:$4 sm:$0xff]  }
 0x8b3   :  { %3308 = vmatpush1.bf16.msra.mxu0 %v7079_v9  ;;  %6210 = vmatpush3.bf16.msra.mxu1 %v7080_v21  ;;  %v6783_v9 = vld [vmem:[#allocation2 + $0xbec] ss:$12 sps:$4 sm:$0xff]   ;;  %v6784_v21 = vld [vmem:[#allocation2 + $0xbf0] ss:$12 sps:$4 sm:$0xff]  }
 0x8b4   :  { %3309 = vmatprep.subr.bf16.mxu0 %v7081_v26  ;;  %6211 = vmatprep.subr.bf16.mxu1 %v7151_v11  ;;  %v6781_v26 = vld [vmem:[#allocation2 + $0xbe8] ss:$12 sps:$4 sm:$0xff]  }
 0x8b7   :  { %3310 = vmatpush1.bf16.msra.mxu0 %v7082_v29  ;;  %6212 = vmatpush3.bf16.msra.mxu1 %v7083_v30  ;;  %v6789_v29 = vld [vmem:[#allocation2 + $0xc08] ss:$12 sps:$4 sm:$0xff]   ;;  %v6786_v30 = vld [vmem:[#allocation2 + $0xc00] ss:$12 sps:$4 sm:$0xff]  }
 0x8b8   :  { %3311 = vmatprep.subr.bf16.mxu0 %v7084_v31  ;;  %6213 = vmatprep.subr.bf16.mxu1 %v7151_v11  ;;  %v6790_v31 = vld [vmem:[#allocation2 + $0xb48] ss:$12 sps:$4 sm:$0xff]  }
 0x8bb   :  { %3312 = vmatpush1.bf16.msra.mxu0 %v7085_v32  ;;  %6214 = vmatpush3.bf16.msra.mxu1 %v7086_v33  ;;  %v6791_v32 = vld [vmem:[#allocation2 + $0xc18] ss:$12 sps:$4 sm:$0xff]   ;;  %v6795_v33 = vld [vmem:[#allocation2 + $0xb60] ss:$12 sps:$4 sm:$0xff]  }
 0x8bc   :  { %3313 = vmatprep.subr.bf16.mxu0 %v7087_v34  ;;  %6215 = vmatprep.subr.bf16.mxu1 %v7151_v11  ;;  %v6798_v34 = vld [vmem:[#allocation2 + $0xc34] ss:$12 sps:$4 sm:$0xff]  }
 0x8bf   :  { %3314 = vmatpush1.bf16.msra.mxu0 %v7088_v36  ;;  %6216 = vmatpush3.bf16.msra.mxu1 %v7089_v38  ;;  %v6800_v36 = vld [vmem:[#allocation2 + $0xb78] ss:$12 sps:$4 sm:$0xff]  }
 0x8c0   :  { %3315 = vmatprep.subr.bf16.mxu0 %v7090_v39  ;;  %6217 = vmatprep.subr.bf16.mxu1 %v7151_v11  ;;  %v6803_v38 = vld [vmem:[#allocation2 + $0xc4c] ss:$12 sps:$4 sm:$0xff]   ;;  %v6804_v39 = vld [vmem:[#allocation2 + $0xc50] ss:$12 sps:$4 sm:$0xff]  }
 0x8c3   :  { %3316 = vmatpush1.bf16.msra.mxu0 %v7091_v43  ;;  %6218 = vmatpush3.bf16.msra.mxu1 %v7092_v44  ;;  %v6808_v43 = vld [vmem:[#allocation2 + $0xc64] ss:$12 sps:$4 sm:$0xff]  }
 0x8c4   :  { %3317 = vmatprep.subr.bf16.mxu0 %v7093_v45  ;;  %6219 = vmatprep.subr.bf16.mxu1 %v7151_v11 }
 0x8c7   :  { %3318 = vmatpush1.bf16.msra.mxu0 %v7094_v47  ;;  %6220 = vmatpush3.bf16.msra.mxu1 %v7095_v48 }
 0x8c8   :  { %4027 = vmatprep.subr.bf16.mxu1 %v6744_v51  ;;  %6063 = vmatprep.subr.bf16.mxu0 %v6769_v3 }
 0x8ca   :  { %3336 = vmatmul.mubr.bf16.vlgmr.msra.gmra.mrb[32].mxu0 %v3261_v49  ;;  %6222 = vmatmul.mubr.bf16.vlgmr.msra.gmra.mrb[32].mxu1 %v3261_v49 }
 0x8cb   :  { %4028 = vmatpush1.bf16.msra.mxu1 %v6742_v50  ;;  %6064 = vmatpush3.bf16.msra.mxu0 %v6770_v6 }
 0x8cc   :  { %4029 = vmatprep.subr.bf16.mxu1 %v6747_v40  ;;  %6065 = vmatprep.subr.bf16.mxu0 %v6774_v8 }
 0x8cf   :  { %4030 = vmatpush1.bf16.msra.mxu1 %v6745_v52  ;;  %6066 = vmatpush3.bf16.msra.mxu0 %v6775_v12 }
 0x8d0   :  { %4031 = vmatprep.subr.bf16.mxu1 %v6750_v53  ;;  %6067 = vmatprep.subr.bf16.mxu0 %v6779_v15  ;;  %v7384_v15 = vld [vmem:[#allocation4 + $0x1a] ss:$8 sm:$0x7] }
 0x8d3   :  { %4032 = vmatpush1.bf16.msra.mxu1 %v6748_v54  ;;  %6068 = vmatpush3.bf16.msra.mxu0 %v6780_v18 }
 0x8d4   :  { %4033 = vmatprep.subr.bf16.mxu1 %v6753_v56  ;;  %6069 = vmatprep.subr.bf16.mxu0 %v6784_v21 }
 0x8d7   :  { %4034 = vmatpush1.bf16.msra.mxu1 %v6751_v57  ;;  %6070 = vmatpush3.bf16.msra.mxu0 %v6785_v27 }
 0x8d8   :  { %4035 = vmatprep.subr.bf16.mxu1 %v6756_v58  ;;  %6071 = vmatprep.subr.bf16.mxu0 %v6789_v29 }
 0x8db   :  { %4036 = vmatpush1.bf16.msra.mxu1 %v6754_v59  ;;  %6072 = vmatpush3.bf16.msra.mxu0 %v6790_v31  ;;  %v3491_v31 = vrot.slane %v7384_v15, %v7228_v25 }
 0x8dc   :  { %4037 = vmatprep.subr.bf16.mxu1 %v6759_v60  ;;  %6073 = vmatprep.subr.bf16.mxu0 %v6794_v14 }
 0x8df   :  { %4038 = vmatpush1.bf16.msra.mxu1 %v6757_v20  ;;  %6074 = vmatpush3.bf16.msra.mxu0 %v6795_v33 }
 0x8e0   :  { %4039 = vmatprep.subr.bf16.mxu1 %v6762_v61  ;;  %6075 = vmatprep.subr.bf16.mxu0 %v6799_v35 }
 0x8e3   :  { %4040 = vmatpush1.bf16.msra.mxu1 %v6760_v62  ;;  %6076 = vmatpush3.bf16.msra.mxu0 %v6800_v36 }
 0x8e4   :  { %4041 = vmatprep.subr.bf16.mxu1 %v6765_v63  ;;  %6077 = vmatprep.subr.bf16.mxu0 %v6804_v39 }
 0x8e7   :  { %4042 = vmatpush1.bf16.msra.mxu1 %v6763_v1  ;;  %6078 = vmatpush3.bf16.msra.mxu0 %v6805_v42  ;;  %v6806_v42 = vld [vmem:[#allocation2 + $0xc60] ss:$12 sps:$4 sm:$0xff]  }
 0x8e8   :  { %4043 = vmatprep.subr.bf16.mxu1 %v6768_v2  ;;  %6225 = vmatprep.subr.bf16.mxu0 %v7151_v11 }
 0x8eb   :  { %4044 = vmatpush1.bf16.msra.mxu1 %v6766_v4 }
 0x8ec   :  { %4045 = vmatprep.subr.bf16.mxu1 %v6773_v7 }
 0x8ef   :  { %4046 = vmatpush1.bf16.msra.mxu1 %v6771_v10 }
 0x8f0   :  { %4047 = vmatprep.subr.bf16.mxu1 %v6778_v13 }
 0x8f3   :  { %4048 = vmatpush1.bf16.msra.mxu1 %v6776_v17 }
 0x8f4   :  { %4049 = vmatprep.subr.bf16.mxu1 %v6783_v9  ;;  %v7387_v9 = vld [vmem:[#allocation4 + $0x1b] ss:$8 sm:$0x7] }
 0x8f5   :  { %v3508_v14 = vrot.slane %v7387_v9, %v7225_v24 }
 0x8f7   :  { %4050 = vmatpush1.bf16.msra.mxu1 %v6781_v26 }
 0x8f8   :  { %4051 = vmatprep.subr.bf16.mxu1 %v6788_v28  ;;  %v3487_v28 = vrot.slane %v7384_v15, %v7225_v24 }
 0x8fb   :  { %4052 = vmatpush1.bf16.msra.mxu1 %v6786_v30 }
 0x8fc   :  { %4053 = vmatprep.subr.bf16.mxu1 %v6793_v5 }
 0x8ff   :  { %4054 = vmatpush1.bf16.msra.mxu1 %v6791_v32 }
 0x900   :  { %4055 = vmatprep.subr.bf16.mxu1 %v6798_v34 }
 0x903   :  { %4056 = vmatpush1.bf16.msra.mxu1 %v6796_v16 }
 0x904   :  { %4057 = vmatprep.subr.bf16.mxu1 %v6803_v38 }
 0x907   :  { %4058 = vmatpush1.bf16.msra.mxu1 %v6801_v41 }
 0x908   :  { %4068 = vmatprep.subr.bf16.mxu1 %v6808_v43  ;;  %v6809_v43 = vld [vmem:[#allocation2 + $0xc68] ss:$12 sps:$4 sm:$0xff]  }
 0x97d   :  { %v6048_v44 = vpop.f32.mrb[28].mxu1 }
 0x97e   :  { %v6049_v45 = vpop.f32.mrb[29].mxu1 }
 0x97f   :  { %v6050_v46 = vadd.f32 %v6049_v45, %v6048_v44  ;;  %v6051_v47 = vpop.f32.mrb[30].mxu1  ;;  %v6812_v45 = vld [vmem:[#allocation2 + $0xc7c] ss:$12 sps:$4 sm:$0xff]  }
 0x980   :  { %v6052_v48 = vpop.f32.mrb[31].mxu1  ;;  %v6813_v47 = vld [vmem:[#allocation2 + $0xc80] ss:$12 sps:$4 sm:$0xff]  }
 0x981   :  { %v6816_v48 = vld [vmem:[#allocation2 + $0xc94] ss:$12 sps:$4 sm:$0xff]  }
 0x99d   :  { %v3337_v49 = vpop.f32.mrb[32].mxu0  ;;  %v3418_v50 = vpop.f32.mrb[32].mxu1 }
 0x99e   :  { %v3424_v51 = vmul.f32 0.020833334, %v3337_v49  ;;  %v3419_v40 = vadd.f32 %v6050_v46, %v3418_v50  ;;  %v3339_v52 = vpop.f32.mrb[33].mxu0  ;;  %v6223_v53 = vpop.f32.mrb[33].mxu1  ;;  %v6810_v46 = vld [vmem:[#allocation2 + $0xc78] ss:$12 sps:$4 sm:$0xff]  }
 0x99f   :  { %v3425_v54 = vmul.f32 0.020833334, %v3339_v52  ;;  %v3341_v56 = vpop.f32.mrb[34].mxu0  ;;  %v3421_v57 = vpop.f32.mrb[34].mxu1  ;;  %v6814_v49 = vld [vmem:[#allocation2 + $0xc90] ss:$12 sps:$4 sm:$0xff]  }
 0x9a0   :  { %v3427_v58 = vmul.f32 %v3424_v51, %v3424_v51  ;;  %v3342_v59 = vpop.f32.mrb[35].mxu0  ;;  %v6224_v60 = vpop.f32.mrb[35].mxu1  ;;  %v7378_v6 = vmul.f32 0.020833334, %v3419_v40  ;;  %v3448_v12 = vrot.slane %v3424_v51, %v7225_v24  ;;  %v6817_v50 = vld [vmem:[#allocation2 + $0xc98] ss:$12 sps:$4 sm:$0xff]  }
 0x9a1   :  { %v3428_v20 = vmul.f32 %v3425_v54, %v3425_v54  ;;  %v3452_v13 = vrot.slane %v3425_v54, %v7225_v24  ;;  %v6818_v53 = vld [vmem:[#allocation2 + $0xca8] ss:$12 sps:$4 sm:$0xff]   ;;  %v6824_v57 = vld [vmem:[#allocation2 + $0xcc4] ss:$12 sps:$4 sm:$0xff]   ;;  %v6822_v59 = vld [vmem:[#allocation2 + $0xcc0] ss:$12 sps:$4 sm:$0xff]  }
 0x9a2   :  { %v3433_v61 = vrot.slane %v3427_v58, 7  ;;  %v3429_v8 = vmul.f32 %v7378_v6, %v7378_v6  ;;  %v3457_v26 = vsub.f32 %v7339_v19, %v3448_v12  ;;  %v3512_v19 = vrot.slane %v7387_v9, %v7228_v25  ;;  %v6825_v60 = vld [vmem:[#allocation2 + $0xcc8] ss:$12 sps:$4 sm:$0xff]   ;;  %v6837_v12 = vld [vmem:[#allocation2 + $0xd10] ss:$12 sps:$4 sm:$0xff]  }
 0x9a3   :  { %v3434_v62 = vrot.slane %v3428_v20, 7  ;;  %v3458_v29 = vsub.f32 %v7341_v23, %v3452_v13  ;;  %v3456_v52 = vrot.slane %v7378_v6, %v7225_v24 }
 0x9a4   :  { %v3439_v63 = vsub.f32 %v3424_v51, %v3433_v61  ;;  %v3435_v10 = vrot.slane %v3429_v8, 7  ;;  %v6820_v51 = vld [vmem:[#allocation2 + $0xcac] ss:$12 sps:$4 sm:$0xff]   ;;  %v6828_v61 = vld [vmem:[#allocation2 + $0xcdc] ss:$12 sps:$4 sm:$0xff]  }
 0x9a5   :  { %v3440_v1 = vsub.f32 %v3425_v54, %v3434_v62  ;;  %v6821_v54 = vld [vmem:[#allocation2 + $0xcb0] ss:$12 sps:$4 sm:$0xff]   ;;  %v3459_v58 = vsub.f32 %v7354_v55, %v3456_v52  ;;  %v3495_v62 = vrot.slane %v7384_v15, %v7233_v37  ;;  %v6832_v55 = vld [vmem:[#allocation2 + $0xcf4] ss:$12 sps:$4 sm:$0xff]  }
 0x9a6   :  { %v3442_v2 = vmax.f32 %v3439_v63, 0.0  ;;  %v3441_v18 = vsub.f32 %v7378_v6, %v3435_v10  ;;  %v6826_v63 = vld [vmem:[#allocation2 + $0xcd8] ss:$12 sps:$4 sm:$0xff]   ;;  %v6834_v10 = vld [vmem:[#allocation2 + $0xd08] ss:$12 sps:$4 sm:$0xff]  }
 0x9a7   :  { %v3443_v3 = vmax.f32 %v3440_v1, 0.0  ;;  %v6829_v1 = vld [vmem:[#allocation2 + $0xce0] ss:$12 sps:$4 sm:$0xff]   ;;  %v6833_v6 = vld [vmem:[#allocation2 + $0xcf8] ss:$12 sps:$4 sm:$0xff]  }
 0x9a8   :  { %v3460_v4 = vadd.f32 1e-05, %v3442_v2  ;;  %v3444_v32 = vmax.f32 %v3441_v18, 0.0  ;;  %v6840_v15 = vld [vmem:[#allocation2 + $0x11a4] ss:$12 sps:$4 sm:$0xff]  }
 0x9a9   :  { %v3461_v7 = vadd.f32 1e-05, %v3443_v3  ;;  %v3516_v3 = vrot.slane %v7387_v9, %v7233_v37  ;;  %v6843_v9 = vld [vmem:[#allocation2 + $0x11bc] ss:$12 sps:$4 sm:$0xff]   ;;  %v6882_v52 = vld [vmem:[#allocation2 + $0x12c0] ss:$12 sps:$4 sm:$0xff]  }
 0x9aa   :  { %7012 = vrsqrt.f32 %v3460_v4  ;;  %v3462_v36 = vadd.f32 1e-05, %v3444_v32  ;;  %v6830_v4 = vld [vmem:[#allocation2 + $0xcf0] ss:$12 sps:$4 sm:$0xff]   ;;  %v6866_v32 = vld [vmem:[#allocation2 + $0x11a8] ss:$12 sps:$4 sm:$0xff]  }
 0x9ab   :  { %7014 = vrsqrt.f32 %v3461_v7  ;;  %v6836_v7 = vld [vmem:[#allocation2 + $0xd0c] ss:$12 sps:$4 sm:$0xff]  }
 0x9ac   :  { %7016 = vrsqrt.f32 %v3462_v36  ;;  %v6856_v36 = vld [vmem:[#allocation2 + $0x1230] ss:$12 sps:$4 sm:$0xff]  }
 0x9b4   :  { %v7013_v17 = vpop.eup %7012 }
 0x9b5   :  { %v7015_v21 = vpop.eup %7014  ;;  %v3469_v27 = vrot.slane %v7013_v17, %v7228_v25  ;;  %v6838_v17 = vld [vmem:[#allocation2 + $0x11a0] ss:$12 sps:$4 sm:$0xff]  }
 0x9b6   :  { %v3473_v30 = vrot.slane %v7015_v21, %v7228_v25  ;;  %v7017_v40 = vpop.eup %7016  ;;  %v6841_v21 = vld [vmem:[#allocation2 + $0x11b8] ss:$12 sps:$4 sm:$0xff]  }
 0x9b7   :  { %v3478_v5 = vmul.f32 %v3469_v27, %v3457_v26  ;;  %v3477_v56 = vrot.slane %v7017_v40, %v7228_v25  ;;  %v6846_v26 = vld [vmem:[#allocation2 + $0x11d4] ss:$12 sps:$4 sm:$0xff]   ;;  %v6844_v27 = vld [vmem:[#allocation2 + $0x11d0] ss:$12 sps:$4 sm:$0xff]  }
 0x9b8   :  { %v3479_v33 = vmul.f32 %v3473_v30, %v3458_v29  ;;  %v6847_v29 = vld [vmem:[#allocation2 + $0x11e8] ss:$12 sps:$4 sm:$0xff]   ;;  %v6850_v30 = vld [vmem:[#allocation2 + $0x1200] ss:$12 sps:$4 sm:$0xff]  }
 0x9b9   :  { %v3499_v34 = vmul.f32 %v3487_v28, %v3478_v5  ;;  %v3480_v20 = vmul.f32 %v3477_v56, %v3459_v58  ;;  %v6849_v28 = vld [vmem:[#allocation2 + $0x11ec] ss:$12 sps:$4 sm:$0xff]   ;;  %v6855_v5 = vld [vmem:[#allocation2 + $0x121c] ss:$12 sps:$4 sm:$0xff]  }
 0x9ba   :  { %v3500_v35 = vmul.f32 %v3491_v31, %v3479_v33  ;;  %v6852_v31 = vld [vmem:[#allocation2 + $0x1204] ss:$12 sps:$4 sm:$0xff]   ;;  %v6885_v40 = vld [vmem:[#allocation2 + $0x12c8] ss:$12 sps:$4 sm:$0xff]   ;;  %v6890_v56 = vld [vmem:[#allocation2 + $0x12e0] ss:$12 sps:$4 sm:$0xff]  }
 0x9bb   :  { %v3520_v16 = vadd.f32 %v3508_v14, %v3499_v34  ;;  %v3501_v2 = vmul.f32 %v3495_v62, %v3480_v20  ;;  %v6865_v14 = vld [vmem:[#allocation2 + $0x1268] ss:$12 sps:$4 sm:$0xff]   ;;  %v6853_v33 = vld [vmem:[#allocation2 + $0x1218] ss:$12 sps:$4 sm:$0xff]   ;;  %v6891_v58 = vld [vmem:[#allocation2 + $0x1220] ss:$12 sps:$4 sm:$0xff]  }
 0x9bc   :  { %v3521_v38 = vadd.f32 %v3512_v19, %v3500_v35  ;;  %v6870_v19 = vld [vmem:[#allocation2 + $0x1280] ss:$12 sps:$4 sm:$0xff]   ;;  %v6892_v20 = vld [vmem:[#allocation2 + $0x12f0] ss:$12 sps:$4 sm:$0xff]  }
 0x9bd   :  { %v3523_v23 = vmax.f32 %v3520_v16, 0.0  ;;  %v3522_v8 = vadd.f32 %v3516_v3, %v3501_v2  ;;  %v6858_v34 = vld [vmem:[#allocation2 + $0x1234] ss:$12 sps:$4 sm:$0xff]   ;;  %v6875_v16 = vld [vmem:[#allocation2 + $0x1298] ss:$12 sps:$4 sm:$0xff]  }
 0x9be   :  { %v3524_v39 = vmax.f32 %v3521_v38, 0.0  ;;  %v6871_v35 = vld [vmem:[#allocation2 + $0x11c0] ss:$12 sps:$4 sm:$0xff]   ;;  %v6904_v2 = vld [vmem:[#allocation2 + $0x1324] ss:$12 sps:$4 sm:$0xff]  }
 0x9bf   :  { %v3622_v44 = vpack.c.bf16 %v3523_v23, %v3523_v23  ;;  %v3525_v13 = vmax.f32 %v3522_v8, 0.0  ;;  %v6861_v38 = vld [vmem:[#allocation2 + $0x124c] ss:$12 sps:$4 sm:$0xff]  }
 0x9c0   :  { %v3623_v41 = vpack.c.bf16 %v3524_v39, %v3524_v39  ;;  %v6876_v23 = vld [vmem:[#allocation2 + $0x11d8] ss:$12 sps:$4 sm:$0xff]   ;;  %v6859_v39 = vld [vmem:[#allocation2 + $0x1248] ss:$12 sps:$4 sm:$0xff]  }
 0x9c1   :  { %v3624_v18 = vpack.c.bf16 %v3525_v13, %v3525_v13  ;;  %v6899_v62 = vld [vmem:[#allocation2 + $0x130c] ss:$12 sps:$4 sm:$0xff]  }
 0x9c2   :  { %4059 = vmatprep.mubr.bf16.mxu1 %v3623_v41  ;;  %4141 = vmatprep.mubr.bf16.mxu0 %v3623_v41  ;;  %v6864_v41 = vld [vmem:[#allocation2 + $0x1264] ss:$12 sps:$4 sm:$0xff]  }
 0x9c3   :  { %4060 = vmatmul.mubr.bf16.vlgmr.msra.gmra.mrb[36].mxu1 %v3622_v44  ;;  %4142 = vmatmul.mubr.bf16.vlgmr.msra.gmra.mrb[36].mxu0 %v3622_v44  ;;  %v6867_v44 = vld [vmem:[#allocation2 + $0x1278] ss:$12 sps:$4 sm:$0xff]  }
 0x9c4   :  { %4069 = vmatpush1.bf16.msra.mxu1 %v6806_v42  ;;  %6226 = vmatpush3.bf16.msra.mxu0 %v6809_v43  ;;  %v6862_v42 = vld [vmem:[#allocation2 + $0x1260] ss:$12 sps:$4 sm:$0xff]   ;;  %v6869_v43 = vld [vmem:[#allocation2 + $0x127c] ss:$12 sps:$4 sm:$0xff]  }
 0x9c5   :  { %4070 = vmatprep.subr.bf16.mxu1 %v6812_v45  ;;  %6227 = vmatprep.subr.bf16.mxu0 %v7151_v11  ;;  %v6874_v45 = vld [vmem:[#allocation2 + $0x1294] ss:$12 sps:$4 sm:$0xff]  }
 0x9c6   :  { %4100 = vmatprep.mubr.bf16.mxu1 %v7150_v0  ;;  %6241 = vmatprep.mubr.msk.bf16.mxu0 %vm7152_vm1, %v7151_v11 }
 0x9c8   :  { %4071 = vmatpush1.bf16.msra.mxu1 %v6810_v46  ;;  %6228 = vmatpush3.bf16.msra.mxu0 %v6813_v47  ;;  %v6872_v46 = vld [vmem:[#allocation2 + $0x1290] ss:$12 sps:$4 sm:$0xff]   ;;  %v6879_v47 = vld [vmem:[#allocation2 + $0x12ac] ss:$12 sps:$4 sm:$0xff]  }
 0x9c9   :  { %4072 = vmatprep.subr.bf16.mxu1 %v6816_v48  ;;  %6229 = vmatprep.subr.bf16.mxu0 %v7151_v11  ;;  %v6880_v48 = vld [vmem:[#allocation2 + $0x12b0] ss:$12 sps:$4 sm:$0xff]  }
 0x9cc   :  { %4073 = vmatpush1.bf16.msra.mxu1 %v6814_v49  ;;  %6230 = vmatpush3.bf16.msra.mxu0 %v6817_v50  ;;  %v6877_v49 = vld [vmem:[#allocation2 + $0x12a8] ss:$12 sps:$4 sm:$0xff]   ;;  %v6881_v50 = vld [vmem:[#allocation2 + $0x11f0] ss:$12 sps:$4 sm:$0xff]  }
 0x9cd   :  { %4074 = vmatprep.subr.bf16.mxu1 %v6820_v51  ;;  %6231 = vmatprep.subr.bf16.mxu0 %v7151_v11  ;;  %v6884_v51 = vld [vmem:[#allocation2 + $0x12c4] ss:$12 sps:$4 sm:$0xff]  }
 0x9d0   :  { %4075 = vmatpush1.bf16.msra.mxu1 %v6818_v53  ;;  %6232 = vmatpush3.bf16.msra.mxu0 %v6821_v54  ;;  %v6886_v53 = vld [vmem:[#allocation2 + $0x1208] ss:$12 sps:$4 sm:$0xff]  }
 0x9d1   :  { %4076 = vmatprep.subr.bf16.mxu1 %v6824_v57  ;;  %6233 = vmatprep.subr.bf16.mxu0 %v7151_v11  ;;  %v6889_v54 = vld [vmem:[#allocation2 + $0x12dc] ss:$12 sps:$4 sm:$0xff]   ;;  %v6887_v57 = vld [vmem:[#allocation2 + $0x12d8] ss:$12 sps:$4 sm:$0xff]  }
 0x9d4   :  { %4077 = vmatpush1.bf16.msra.mxu1 %v6822_v59  ;;  %6234 = vmatpush3.bf16.msra.mxu0 %v6825_v60  ;;  %v6894_v59 = vld [vmem:[#allocation2 + $0x12f4] ss:$12 sps:$4 sm:$0xff]   ;;  %v6895_v60 = vld [vmem:[#allocation2 + $0x12f8] ss:$12 sps:$4 sm:$0xff]  }
 0x9d5   :  { %4078 = vmatprep.subr.bf16.mxu1 %v6828_v61  ;;  %6235 = vmatprep.subr.bf16.mxu0 %v7151_v11  ;;  %v6896_v61 = vld [vmem:[#allocation2 + $0x1238] ss:$12 sps:$4 sm:$0xff]  }
 0x9d8   :  { %4079 = vmatpush1.bf16.msra.mxu1 %v6826_v63  ;;  %6236 = vmatpush3.bf16.msra.mxu0 %v6829_v1  ;;  %v6900_v63 = vld [vmem:[#allocation2 + $0x1310] ss:$12 sps:$4 sm:$0xff]   ;;  %v6897_v1 = vld [vmem:[#allocation2 + $0x1308] ss:$12 sps:$4 sm:$0xff]  }
 0x9d9   :  { %4080 = vmatprep.subr.bf16.mxu1 %v6832_v55  ;;  %6237 = vmatprep.subr.bf16.mxu0 %v7151_v11  ;;  %v6901_v55 = vld [vmem:[#allocation2 + $0x1250] ss:$12 sps:$4 sm:$0xff]  }
 0x9dc   :  { %4081 = vmatpush1.bf16.msra.mxu1 %v6830_v4  ;;  %6238 = vmatpush3.bf16.msra.mxu0 %v6833_v6 }
 0x9dd   :  { %4082 = vmatprep.subr.bf16.mxu1 %v6836_v7  ;;  %6239 = vmatprep.subr.bf16.mxu0 %v7151_v11 }
 0x9e0   :  { %4083 = vmatpush1.bf16.msra.mxu1 %v6834_v10  ;;  %6240 = vmatpush3.bf16.msra.mxu0 %v6837_v12  ;;  %v3626_v10 = vld [vmem:[#allocation4 + $0x1c] ss:$8 sm:$0x7] }
 0x9e1   :  { %4720 = vmatprep.subr.bf16.mxu0 %v6840_v15  ;;  %6094 = vmatprep.subr.bf16.mxu1 %v6865_v14  ;;  %v3639_v12 = vrot.slane %v3626_v10, %v7233_v37  ;;  %v3631_v13 = vrot.slane %v3626_v10, %v7225_v24  ;;  %v3635_v15 = vrot.slane %v3626_v10, %v7228_v25  ;;  %v6912_v10 = vld [vmem:[#allocation2 + $0x1354] ss:$12 sps:$4 sm:$0xff]  }
 0x9e3   :  { %4101 = vmatmul.mubr.bf16.vlgmr.msra.gmra.mrb[36].mxu1 %v3624_v18  ;;  %6242 = vmatmul.mubr.bf16.vlgmr.msra.gmra.mrb[40].mxu0 %v3624_v18 }
 0x9e4   :  { %4721 = vmatpush1.bf16.msra.mxu0 %v6838_v17  ;;  %6095 = vmatpush3.bf16.msra.mxu1 %v6866_v32 }
 0x9e5   :  { %4722 = vmatprep.subr.bf16.mxu0 %v6843_v9  ;;  %6096 = vmatprep.subr.bf16.mxu1 %v6870_v19 }
 0x9e8   :  { %4723 = vmatpush1.bf16.msra.mxu0 %v6841_v21  ;;  %6097 = vmatpush3.bf16.msra.mxu1 %v6871_v35 }
 0x9e9   :  { %4724 = vmatprep.subr.bf16.mxu0 %v6846_v26  ;;  %6098 = vmatprep.subr.bf16.mxu1 %v6875_v16 }
 0x9ec   :  { %4725 = vmatpush1.bf16.msra.mxu0 %v6844_v27  ;;  %6099 = vmatpush3.bf16.msra.mxu1 %v6876_v23 }
 0x9ed   :  { %4726 = vmatprep.subr.bf16.mxu0 %v6849_v28  ;;  %6100 = vmatprep.subr.bf16.mxu1 %v6880_v48 }
 0x9f0   :  { %4727 = vmatpush1.bf16.msra.mxu0 %v6847_v29  ;;  %6101 = vmatpush3.bf16.msra.mxu1 %v6881_v50 }
 0x9f1   :  { %4728 = vmatprep.subr.bf16.mxu0 %v6852_v31  ;;  %6102 = vmatprep.subr.bf16.mxu1 %v6885_v40 }
 0x9f4   :  { %4729 = vmatpush1.bf16.msra.mxu0 %v6850_v30  ;;  %6103 = vmatpush3.bf16.msra.mxu1 %v6886_v53 }
 0x9f5   :  { %4730 = vmatprep.subr.bf16.mxu0 %v6855_v5  ;;  %6104 = vmatprep.subr.bf16.mxu1 %v6890_v56 }
 0x9f8   :  { %4731 = vmatpush1.bf16.msra.mxu0 %v6853_v33  ;;  %6105 = vmatpush3.bf16.msra.mxu1 %v6891_v58 }
 0x9f9   :  { %4732 = vmatprep.subr.bf16.mxu0 %v6858_v34  ;;  %6106 = vmatprep.subr.bf16.mxu1 %v6895_v60 }
 0x9fc   :  { %4733 = vmatpush1.bf16.msra.mxu0 %v6856_v36  ;;  %6107 = vmatpush3.bf16.msra.mxu1 %v6896_v61 }
 0x9fd   :  { %4734 = vmatprep.subr.bf16.mxu0 %v6861_v38  ;;  %6108 = vmatprep.subr.bf16.mxu1 %v6900_v63 }
 0xa00   :  { %4735 = vmatpush1.bf16.msra.mxu0 %v6859_v39  ;;  %6109 = vmatpush3.bf16.msra.mxu1 %v6901_v55  ;;  %v6905_v55 = vld [vmem:[#allocation2 + $0x1328] ss:$12 sps:$4 sm:$0xff]  }
 0xa01   :  { %4736 = vmatprep.subr.bf16.mxu0 %v6864_v41  ;;  %6245 = vmatprep.subr.bf16.mxu1 %v7151_v11 }
 0xa04   :  { %4737 = vmatpush1.bf16.msra.mxu0 %v6862_v42 }
 0xa05   :  { %4738 = vmatprep.subr.bf16.mxu0 %v6869_v43 }
 0xa08   :  { %4739 = vmatpush1.bf16.msra.mxu0 %v6867_v44 }
 0xa09   :  { %4740 = vmatprep.subr.bf16.mxu0 %v6874_v45 }
 0xa0c   :  { %4741 = vmatpush1.bf16.msra.mxu0 %v6872_v46 }
 0xa0d   :  { %4742 = vmatprep.subr.bf16.mxu0 %v6879_v47 }
 0xa10   :  { %4743 = vmatpush1.bf16.msra.mxu0 %v6877_v49 }
 0xa11   :  { %4744 = vmatprep.subr.bf16.mxu0 %v6884_v51 }
 0xa14   :  { %4745 = vmatpush1.bf16.msra.mxu0 %v6882_v52 }
 0xa15   :  { %4746 = vmatprep.subr.bf16.mxu0 %v6889_v54 }
 0xa18   :  { %4747 = vmatpush1.bf16.msra.mxu0 %v6887_v57 }
 0xa19   :  { %4748 = vmatprep.subr.bf16.mxu0 %v6894_v59 }
 0xa1c   :  { %4749 = vmatpush1.bf16.msra.mxu0 %v6892_v20 }
 0xa1d   :  { %4750 = vmatprep.subr.bf16.mxu0 %v6899_v62 }
 0xa20   :  { %4751 = vmatpush1.bf16.msra.mxu0 %v6897_v1  ;;  %v6902_v1 = vld [vmem:[#allocation2 + $0x1320] ss:$12 sps:$4 sm:$0xff]  }
 0xa21   :  { %4761 = vmatprep.subr.bf16.mxu0 %v6904_v2 }
 0xa96   :  { %v6079_v3 = vpop.f32.mrb[36].mxu0 }
 0xa97   :  { %v6080_v4 = vpop.f32.mrb[37].mxu0 }
 0xa98   :  { %v6081_v6 = vadd.f32 %v6080_v4, %v6079_v3  ;;  %v6082_v7 = vpop.f32.mrb[38].mxu0  ;;  %v6908_v3 = vld [vmem:[#allocation2 + $0x133c] ss:$12 sps:$4 sm:$0xff]  }
 0xa99   :  { %v6083_v8 = vpop.f32.mrb[39].mxu0  ;;  %v6909_v7 = vld [vmem:[#allocation2 + $0x1340] ss:$12 sps:$4 sm:$0xff]  }
 0xa9a   :  { %v4144_v17 = vadd.f32 %v6081_v6, %v3639_v12  ;;  %v6906_v6 = vld [vmem:[#allocation2 + $0x1338] ss:$12 sps:$4 sm:$0xff]  }
 0xab6   :  { %v4102_v18 = vpop.f32.mrb[36].mxu1  ;;  %v4183_v9 = vpop.f32.mrb[40].mxu0 }
 0xab7   :  { %v7423_v21 = vadd.f32 %v4102_v18, %v3631_v13  ;;  %v7425_v26 = vadd.f32 %v4183_v9, %v4144_v17  ;;  %v4104_v27 = vpop.f32.mrb[37].mxu1  ;;  %v6243_v28 = vpop.f32.mrb[41].mxu0  ;;  %v6913_v17 = vld [vmem:[#allocation2 + $0x1358] ss:$12 sps:$4 sm:$0xff]  }
 0xab8   :  { %v7427_v29 = vadd.f32 %v4104_v27, %v3635_v15  ;;  %v4106_v30 = vpop.f32.mrb[38].mxu1  ;;  %v4186_v31 = vpop.f32.mrb[42].mxu0  ;;  %v6910_v15 = vld [vmem:[#allocation2 + $0x1350] ss:$12 sps:$4 sm:$0xff]   ;;  %v6916_v18 = vld [vmem:[#allocation2 + $0x136c] ss:$12 sps:$4 sm:$0xff]  }
 0xab9   :  { %v4189_v5 = vsel %vm1065_vm2, %v7423_v21, 0.0  ;;  %v4210_v14 = vmul.f32 %v7423_v21, %v7423_v21  ;;  %v4107_v32 = vpop.f32.mrb[39].mxu1  ;;  %v6244_v33 = vpop.f32.mrb[43].mxu0  ;;  %v4212_v61 = vmul.f32 %v7425_v26, %v7425_v26  ;;  %v4203_v8 = vsel %vm1065_vm2, %v7425_v26, 0.0  ;;  %v6914_v28 = vld [vmem:[#allocation2 + $0x1368] ss:$12 sps:$4 sm:$0xff]  }
 0xaba   :  { %v4190_v19 = vrot.slane %v4189_v5, 4  ;;  %v4196_v34 = vsel %vm1065_vm2, %v7427_v29, 0.0  ;;  %v4211_v35 = vmul.f32 %v7427_v29, %v7427_v29  ;;  %v4204_v13 = vrot.slane %v4203_v8, 4  ;;  %v6917_v30 = vld [vmem:[#allocation2 + $0x1370] ss:$12 sps:$4 sm:$0xff]  }
 0xabb   :  { %v4213_v16 = vsel %vm1065_vm2, %v4210_v14, 0.0  ;;  %v4197_v36 = vrot.slane %v4196_v34, 4  ;;  %v4227_v4 = vsel %vm1065_vm2, %v4212_v61, 0.0  ;;  %v6920_v31 = vld [vmem:[#allocation2 + $0x1384] ss:$12 sps:$4 sm:$0xff]  }
 0xabc   :  { %v4191_v38 = vadd.f32 %v4190_v19, %v4189_v5  ;;  %v4214_v23 = vrot.slane %v4213_v16, 4  ;;  %v4220_v41 = vsel %vm1065_vm2, %v4211_v35, 0.0  ;;  %v4228_v12 = vrot.slane %v4227_v4, 4  ;;  %v6918_v32 = vld [vmem:[#allocation2 + $0x1380] ss:$12 sps:$4 sm:$0xff]  }
 0xabd   :  { %v4198_v39 = vadd.f32 %v4197_v36, %v4196_v34  ;;  %v4221_v45 = vrot.slane %v4220_v41, 4  ;;  %v4205_v27 = vadd.f32 %v4204_v13, %v4203_v8  ;;  %v6921_v33 = vld [vmem:[#allocation2 + $0x1388] ss:$12 sps:$4 sm:$0xff]   ;;  %v6925_v36 = vld [vmem:[#allocation2 + $0x13a0] ss:$12 sps:$4 sm:$0xff]  }
 0xabe   :  { %v4192_v42 = vrot.slane %v4191_v38, 2  ;;  %v4215_v43 = vadd.f32 %v4214_v23, %v4213_v16  ;;  %v4229_v9 = vadd.f32 %v4228_v12, %v4227_v4  ;;  %v6924_v19 = vld [vmem:[#allocation2 + $0x139c] ss:$12 sps:$4 sm:$0xff]   ;;  %v6922_v16 = vld [vmem:[#allocation2 + $0x1398] ss:$12 sps:$4 sm:$0xff]  }
 0xabf   :  { %v4199_v44 = vrot.slane %v4198_v39, 2  ;;  %v4222_v49 = vadd.f32 %v4221_v45, %v4220_v41  ;;  %v4206_v14 = vrot.slane %v4205_v27, 2  ;;  %v6926_v41 = vld [vmem:[#allocation2 + $0x13b0] ss:$12 sps:$4 sm:$0xff]   ;;  %v6957_v61 = vld [vmem:[#allocation2 + $0xdcc] ss:$12 sps:$4 sm:$0xff]  }
 0xac0   :  { %v4193_v46 = vadd.f32 %v4192_v42, %v4191_v38  ;;  %v4216_v47 = vrot.slane %v4215_v43, 2  ;;  %v4230_v5 = vrot.slane %v4229_v9, 2  ;;  %v6928_v38 = vld [vmem:[#allocation2 + $0x13b4] ss:$12 sps:$4 sm:$0xff]   ;;  %v6929_v42 = vld [vmem:[#allocation2 + $0x13b8] ss:$12 sps:$4 sm:$0xff]  }
 0xac1   :  { %v4200_v48 = vadd.f32 %v4199_v44, %v4198_v39  ;;  %v4223_v51 = vrot.slane %v4222_v49, 2  ;;  %v4207_v35 = vadd.f32 %v4206_v14, %v4205_v27  ;;  %v6964_v4 = vld [vmem:[#allocation2 + $0xe10] ss:$12 sps:$4 sm:$0xff]   ;;  %v6973_v13 = vld [vmem:[#allocation2 + $0xe58] ss:$12 sps:$4 sm:$0xff]  }
 0xac2   :  { %v4217_v50 = vadd.f32 %v4216_v47, %v4215_v43  ;;  %v4194_v40 = vrot.slane %v4193_v46, 1  ;;  %v4231_v34 = vadd.f32 %v4230_v5, %v4229_v9  ;;  %v6932_v43 = vld [vmem:[#allocation2 + $0x13cc] ss:$12 sps:$4 sm:$0xff]   ;;  %v6933_v47 = vld [vmem:[#allocation2 + $0x13d0] ss:$12 sps:$4 sm:$0xff]  }
 0xac3   :  { %v4201_v53 = vrot.slane %v4200_v48, 1  ;;  %v4224_v54 = vadd.f32 %v4223_v51, %v4222_v49  ;;  %v4208_v39 = vrot.slane %v4207_v35, 1  ;;  %v6936_v51 = vld [vmem:[#allocation2 + $0xd24] ss:$12 sps:$4 sm:$0xff]   ;;  %v6975_v12 = vld [vmem:[#allocation2 + $0xe5c] ss:$12 sps:$4 sm:$0xff]  }
 0xac4   :  { %v4218_v52 = vrot.slane %v4217_v50, 1  ;;  %v4195_v58 = vadd.f32 %v4194_v40, %v4193_v46  ;;  %v4232_v23 = vrot.slane %v4231_v34, 1  ;;  %v6930_v46 = vld [vmem:[#allocation2 + $0x13c8] ss:$12 sps:$4 sm:$0xff]   ;;  %v6972_v8 = vld [vmem:[#allocation2 + $0xe44] ss:$12 sps:$4 sm:$0xff]  }
 0xac5   :  { %v4225_v57 = vrot.slane %v4224_v54, 1  ;;  %v4202_v59 = vadd.f32 %v4201_v53, %v4200_v48  ;;  %v4209_v45 = vadd.f32 %v4208_v39, %v4207_v35  ;;  %v6939_v40 = vld [vmem:[#allocation2 + $0xd3c] ss:$12 sps:$4 sm:$0xff]   ;;  %v6942_v53 = vld [vmem:[#allocation2 + $0xd54] ss:$12 sps:$4 sm:$0xff]  }
 0xac6   :  { %v4219_v56 = vadd.f32 %v4218_v52, %v4217_v50  ;;  %v4233_v44 = vadd.f32 %v4232_v23, %v4231_v34  ;;  %v6934_v50 = vld [vmem:[#allocation2 + $0xd20] ss:$12 sps:$4 sm:$0xff]   ;;  %v6937_v52 = vld [vmem:[#allocation2 + $0xd38] ss:$12 sps:$4 sm:$0xff]   ;;  %v6979_v9 = vld [vmem:[#allocation2 + $0xe88] ss:$12 sps:$4 sm:$0xff]  }
 0xac7   :  { %v4226_v60 = vadd.f32 %v4225_v57, %v4224_v54  ;;  %v6940_v54 = vld [vmem:[#allocation2 + $0xd50] ss:$12 sps:$4 sm:$0xff]   ;;  %v6946_v57 = vld [vmem:[#allocation2 + $0xd80] ss:$12 sps:$4 sm:$0xff]  }
 0xac8   :  { %v4234_v20 = vsel %vm1113_vm3, %v4195_v58, %v4219_v56  ;;  %v4236_v48 = vsel %vm1113_vm3, %v4209_v45, %v4233_v44  ;;  %v6948_v56 = vld [vmem:[#allocation2 + $0xd84] ss:$12 sps:$4 sm:$0xff]   ;;  %v6951_v58 = vld [vmem:[#allocation2 + $0xd9c] ss:$12 sps:$4 sm:$0xff]  }
 0xac9   :  { %v4235_v62 = vsel %vm1113_vm3, %v4202_v59, %v4226_v60  ;;  %v4333_v2 = vpack.c.bf16 %v4234_v20, %v4234_v20  ;;  %v4335_v49 = vpack.c.bf16 %v4236_v48, %v4236_v48  ;;  %v6949_v59 = vld [vmem:[#allocation2 + $0xd98] ss:$12 sps:$4 sm:$0xff]   ;;  %v6954_v60 = vld [vmem:[#allocation2 + $0xdb4] ss:$12 sps:$4 sm:$0xff]   ;;  %v6952_v20 = vld [vmem:[#allocation2 + $0xdb0] ss:$12 sps:$4 sm:$0xff]  }
 0xaca   :  { %v4334_v63 = vpack.c.bf16 %v4235_v62, %v4235_v62  ;;  %v6955_v62 = vld [vmem:[#allocation2 + $0xdc8] ss:$12 sps:$4 sm:$0xff]   ;;  %v6984_v27 = vld [vmem:[#allocation2 + $0xea4] ss:$12 sps:$4 sm:$0xff]  }
 0xacc   :  { %4752 = vmatprep.mubr.bf16.mxu0 %v4334_v63  ;;  %4834 = vmatprep.mubr.bf16.mxu1 %v4334_v63  ;;  %v6960_v63 = vld [vmem:[#allocation2 + $0xde4] ss:$12 sps:$4 sm:$0xff]  }
 0xacd   :  { %4753 = vmatmul.mubr.bf16.vlgmr.msra.gmra.mrb[44].mxu0 %v4333_v2  ;;  %4835 = vmatmul.mubr.bf16.vlgmr.msra.gmra.mrb[40].mxu1 %v4333_v2  ;;  %v6961_v2 = vld [vmem:[#allocation2 + $0xdf8] ss:$12 sps:$4 sm:$0xff]  }
 0xace   :  { %4762 = vmatpush1.bf16.msra.mxu0 %v6902_v1  ;;  %6246 = vmatpush3.bf16.msra.mxu1 %v6905_v55  ;;  %v6958_v1 = vld [vmem:[#allocation2 + $0xde0] ss:$12 sps:$4 sm:$0xff]   ;;  %v6963_v55 = vld [vmem:[#allocation2 + $0xdfc] ss:$12 sps:$4 sm:$0xff]  }
 0xacf   :  { %4763 = vmatprep.subr.bf16.mxu0 %v6908_v3  ;;  %6247 = vmatprep.subr.bf16.mxu1 %v7151_v11  ;;  %v6966_v3 = vld [vmem:[#allocation2 + $0xe14] ss:$12 sps:$4 sm:$0xff]  }
 0xad0   :  { %4793 = vmatprep.mubr.bf16.mxu0 %v7150_v0  ;;  %6261 = vmatprep.mubr.msk.bf16.mxu1 %vm7152_vm1, %v7151_v11 }
 0xad2   :  { %4764 = vmatpush1.bf16.msra.mxu0 %v6906_v6  ;;  %6248 = vmatpush3.bf16.msra.mxu1 %v6909_v7  ;;  %v6969_v6 = vld [vmem:[#allocation2 + $0xe2c] ss:$12 sps:$4 sm:$0xff]   ;;  %v6967_v7 = vld [vmem:[#allocation2 + $0xe28] ss:$12 sps:$4 sm:$0xff]  }
 0xad3   :  { %4765 = vmatprep.subr.bf16.mxu0 %v6912_v10  ;;  %6249 = vmatprep.subr.bf16.mxu1 %v7151_v11  ;;  %v6970_v10 = vld [vmem:[#allocation2 + $0xe40] ss:$12 sps:$4 sm:$0xff]  }
 0xad6   :  { %4766 = vmatpush1.bf16.msra.mxu0 %v6910_v15  ;;  %6250 = vmatpush3.bf16.msra.mxu1 %v6913_v17  ;;  %v6978_v15 = vld [vmem:[#allocation2 + $0xe74] ss:$12 sps:$4 sm:$0xff]   ;;  %v6976_v17 = vld [vmem:[#allocation2 + $0xe70] ss:$12 sps:$4 sm:$0xff]  }
 0xad7   :  { %4767 = vmatprep.subr.bf16.mxu0 %v6916_v18  ;;  %6251 = vmatprep.subr.bf16.mxu1 %v7151_v11  ;;  %v6981_v18 = vld [vmem:[#allocation2 + $0xe8c] ss:$12 sps:$4 sm:$0xff]  }
 0xada   :  { %4768 = vmatpush1.bf16.msra.mxu0 %v6914_v28  ;;  %6252 = vmatpush3.bf16.msra.mxu1 %v6917_v30 }
 0xadb   :  { %4769 = vmatprep.subr.bf16.mxu0 %v6920_v31  ;;  %6253 = vmatprep.subr.bf16.mxu1 %v7151_v11 }
 0xade   :  { %4770 = vmatpush1.bf16.msra.mxu0 %v6918_v32  ;;  %6254 = vmatpush3.bf16.msra.mxu1 %v6921_v33 }
 0xadf   :  { %4771 = vmatprep.subr.bf16.mxu0 %v6924_v19  ;;  %6255 = vmatprep.subr.bf16.mxu1 %v7151_v11 }
 0xae2   :  { %4772 = vmatpush1.bf16.msra.mxu0 %v6922_v16  ;;  %6256 = vmatpush3.bf16.msra.mxu1 %v6925_v36 }
 0xae3   :  { %4773 = vmatprep.subr.bf16.mxu0 %v6928_v38  ;;  %6257 = vmatprep.subr.bf16.mxu1 %v7151_v11 }
 0xae6   :  { %4774 = vmatpush1.bf16.msra.mxu0 %v6926_v41  ;;  %6258 = vmatpush3.bf16.msra.mxu1 %v6929_v42 }
 0xae7   :  { %4775 = vmatprep.subr.bf16.mxu0 %v6932_v43  ;;  %6259 = vmatprep.subr.bf16.mxu1 %v7151_v11  ;;  %v6945_v11 = vld [vmem:[#allocation2 + $0xd6c] ss:$12 sps:$4 sm:$0xff]  }
 0xaea   :  { %4776 = vmatpush1.bf16.msra.mxu0 %v6930_v46  ;;  %6260 = vmatpush3.bf16.msra.mxu1 %v6933_v47 }
 0xaeb   :  { %5288 = vmatprep.subr.bf16.mxu1 %v6936_v51 }
 0xaed   :  { %4794 = vmatmul.mubr.bf16.vlgmr.msra.gmra.mrb[44].mxu0 %v4335_v49  ;;  %6262 = vmatmul.mubr.bf16.vlgmr.msra.gmra.mrb[44].mxu1 %v4335_v49 }
 0xaee   :  { %5289 = vmatpush1.bf16.msra.mxu1 %v6934_v50 }
 0xaef   :  { %5290 = vmatprep.subr.bf16.mxu1 %v6939_v40 }
 0xaf2   :  { %5291 = vmatpush1.bf16.msra.mxu1 %v6937_v52 }
 0xaf3   :  { %5292 = vmatprep.subr.bf16.mxu1 %v6942_v53 }
 0xaf6   :  { %5293 = vmatpush1.bf16.msra.mxu1 %v6940_v54 }
 0xaf7   :  { %5294 = vmatprep.subr.bf16.mxu1 %v6945_v11 }
 0xafa   :  { %5295 = vmatpush1.bf16.msra.mxu1 %v6943_v22  ;;  %v4940_v22 = vld [vmem:[#allocation4 + $0x1d] ss:$8 sm:$0x7] }
 0xafb   :  { %5296 = vmatprep.subr.bf16.mxu1 %v6948_v56 }
 0xafe   :  { %5297 = vmatpush1.bf16.msra.mxu1 %v6946_v57 }
 0xaff   :  { %5298 = vmatprep.subr.bf16.mxu1 %v6951_v58  ;;  %v4961_v58 = vld [vmem:[#allocation4 + $0x1e] ss:$8 sm:$0x7] }
 0xb02   :  { %5299 = vmatpush1.bf16.msra.mxu1 %v6949_v59 }
 0xb03   :  { %5300 = vmatprep.subr.bf16.mxu1 %v6954_v60 }
 0xb06   :  { %5301 = vmatpush1.bf16.msra.mxu1 %v6952_v20 }
 0xb07   :  { %5302 = vmatprep.subr.bf16.mxu1 %v6957_v61  ;;  %v4945_v61 = vrot.slane %v4940_v22, %v7225_v24 }
 0xb0a   :  { %5303 = vmatpush1.bf16.msra.mxu1 %v6955_v62 }
 0xb0b   :  { %5304 = vmatprep.subr.bf16.mxu1 %v6960_v63 }
 0xb0e   :  { %5305 = vmatpush1.bf16.msra.mxu1 %v6958_v1  ;;  %v4949_v1 = vrot.slane %v4940_v22, %v7228_v25 }
 0xb0f   :  { %5306 = vmatprep.subr.bf16.mxu1 %v6963_v55 }
 0xb12   :  { %5307 = vmatpush1.bf16.msra.mxu1 %v6961_v2  ;;  %v4966_v2 = vrot.slane %v4961_v58, %v7225_v24 }
 0xb13   :  { %5308 = vmatprep.subr.bf16.mxu1 %v6966_v3 }
 0xb16   :  { %5309 = vmatpush1.bf16.msra.mxu1 %v6964_v4 }
 0xb17   :  { %5310 = vmatprep.subr.bf16.mxu1 %v6969_v6  ;;  %v4970_v6 = vrot.slane %v4961_v58, %v7228_v25 }
 0xb1a   :  { %5311 = vmatpush1.bf16.msra.mxu1 %v6967_v7 }
 0xb1b   :  { %5312 = vmatprep.subr.bf16.mxu1 %v6972_v8 }
 0xb1e   :  { %5313 = vmatpush1.bf16.msra.mxu1 %v6970_v10 }
 0xb1f   :  { %5314 = vmatprep.subr.bf16.mxu1 %v6975_v12 }
 0xb22   :  { %5315 = vmatpush1.bf16.msra.mxu1 %v6973_v13 }
 0xb23   :  { %5316 = vmatprep.subr.bf16.mxu1 %v6978_v15 }
 0xb26   :  { %5317 = vmatpush1.bf16.msra.mxu1 %v6976_v17  ;;  %v6982_v17 = vld [vmem:[#allocation2 + $0xea0] ss:$12 sps:$4 sm:$0xff]  }
 0xb27   :  { %5318 = vmatprep.subr.bf16.mxu1 %v6981_v18 }
 0xb2a   :  { %5319 = vmatpush1.bf16.msra.mxu1 %v6979_v9  ;;  %v6987_v9 = vld [vmem:[#allocation2 + $0xebc] ss:$12 sps:$4 sm:$0xff]  }
 0xb2b   :  { %5329 = vmatprep.subr.bf16.mxu1 %v6984_v27  ;;  %v6985_v27 = vld [vmem:[#allocation2 + $0xeb8] ss:$12 sps:$4 sm:$0xff]  }
 0xba0   :  { %v6110_v28 = vpop.f32.mrb[40].mxu1 }
 0xba1   :  { %v6111_v30 = vpop.f32.mrb[41].mxu1 }
 0xba2   :  { %v6112_v31 = vadd.f32 %v6111_v30, %v6110_v28  ;;  %v6113_v5 = vpop.f32.mrb[42].mxu1  ;;  %v6990_v28 = vld [vmem:[#allocation2 + $0xed4] ss:$12 sps:$4 sm:$0xff]   ;;  %v6988_v30 = vld [vmem:[#allocation2 + $0xed0] ss:$12 sps:$4 sm:$0xff]  }
 0xba3   :  { %v6114_v14 = vpop.f32.mrb[43].mxu1 }
 0xbc0   :  { %v4795_v32 = vpop.f32.mrb[44].mxu0  ;;  %v4876_v33 = vpop.f32.mrb[44].mxu1 }
 0xbc1   :  { %v4882_v19 = vmul.f32 0.010416667, %v4795_v32  ;;  %v4877_v34 = vadd.f32 %v6112_v31, %v4876_v33  ;;  %v4797_v35 = vpop.f32.mrb[45].mxu0  ;;  %v6263_v16 = vpop.f32.mrb[45].mxu1  ;;  %v6993_v31 = vld [vmem:[#allocation2 + $0xeec] ss:$12 sps:$4 sm:$0xff]  }
 0xbc2   :  { %v4883_v36 = vmul.f32 0.010416667, %v4797_v35  ;;  %v4799_v38 = vpop.f32.mrb[46].mxu0  ;;  %v4879_v23 = vpop.f32.mrb[46].mxu1  ;;  %v6991_v32 = vld [vmem:[#allocation2 + $0xee8] ss:$12 sps:$4 sm:$0xff]  }
 0xbc3   :  { %v4885_v39 = vmul.f32 %v4882_v19, %v4882_v19  ;;  %v4800_v41 = vpop.f32.mrb[47].mxu0  ;;  %v6264_v42 = vpop.f32.mrb[47].mxu1  ;;  %v4884_v51 = vmul.f32 0.010416667, %v4877_v34  ;;  %v4906_v54 = vrot.slane %v4882_v19, %v7225_v24  ;;  %v6994_v35 = vld [vmem:[#allocation2 + $0xf00] ss:$12 sps:$4 sm:$0xff]  }
 0xbc4   :  { %v4886_v43 = vmul.f32 %v4883_v36, %v4883_v36  ;;  %v4910_v11 = vrot.slane %v4883_v36, %v7225_v24  ;;  %v6999_v16 = vld [vmem:[#allocation2 + $0xf1c] ss:$12 sps:$4 sm:$0xff]   ;;  %v6997_v38 = vld [vmem:[#allocation2 + $0xf18] ss:$12 sps:$4 sm:$0xff]   ;;  %v7002_v23 = vld [vmem:[#allocation2 + $0xf34] ss:$12 sps:$4 sm:$0xff]   ;;  %v4974_v41 = vrot.slane %v4961_v58, %v7233_v37 }
 0xbc5   :  { %v4891_v44 = vrot.slane %v4885_v39, 7  ;;  %v4887_v52 = vmul.f32 %v4884_v51, %v4884_v51  ;;  %v4915_v60 = vsub.f32 %v7423_v21, %v4906_v54  ;;  %v4914_v14 = vrot.slane %v4884_v51, %v7225_v24  ;;  %v7000_v42 = vld [vmem:[#allocation2 + $0xf30] ss:$12 sps:$4 sm:$0xff]  }
 0xbc6   :  { %v4892_v45 = vrot.slane %v4886_v43, 7  ;;  %v4916_v62 = vsub.f32 %v7427_v29, %v4910_v11  ;;  %v7005_v43 = vld [vmem:[#allocation2 + $0xf4c] ss:$12 sps:$4 sm:$0xff]  }
 0xbc7   :  { %v4897_v46 = vsub.f32 %v4882_v19, %v4891_v44  ;;  %v4893_v53 = vrot.slane %v4887_v52, 7  ;;  %v6996_v19 = vld [vmem:[#allocation2 + $0xf04] ss:$12 sps:$4 sm:$0xff]   ;;  %v4917_v34 = vsub.f32 %v7425_v26, %v4914_v14  ;;  %v7003_v26 = vld [vmem:[#allocation2 + $0xf48] ss:$12 sps:$4 sm:$0xff]  }
 0xbc8   :  { %v4898_v47 = vsub.f32 %v4883_v36, %v4892_v45  ;;  %v4953_v36 = vrot.slane %v4940_v22, %v7233_v37 }
 0xbc9   :  { %v4900_v48 = vmax.f32 %v4897_v46, 0.0  ;;  %v4899_v57 = vsub.f32 %v4884_v51, %v4893_v53 }
 0xbca   :  { %v4901_v49 = vmax.f32 %v4898_v47, 0.0  ;;  %v5036_v47 = vld [vmem:[#allocation4 + $0x1f] ss:$8 sm:$0x3] }
 0xbcb   :  { %v4918_v50 = vadd.f32 1e-05, %v4900_v48  ;;  %v4902_v3 = vmax.f32 %v4899_v57, 0.0  ;;  %v5041_v48 = vrot.slane %v5036_v47, %v7225_v24 }
 0xbcc   :  { %v4919_v40 = vadd.f32 1e-05, %v4901_v49  ;;  %v5045_v49 = vrot.slane %v5036_v47, %v7228_v25 }
 0xbcd   :  { %7018 = vrsqrt.f32 %v4918_v50  ;;  %v4920_v10 = vadd.f32 1e-05, %v4902_v3 }
 0xbce   :  { %7020 = vrsqrt.f32 %v4919_v40 }
 0xbcf   :  { %7022 = vrsqrt.f32 %v4920_v10 }
 0xbd7   :  { %v7019_v56 = vpop.eup %7018 }
 0xbd8   :  { %v7021_v59 = vpop.eup %7020  ;;  %v4927_v20 = vrot.slane %v7019_v56, %v7228_v25 }
 0xbd9   :  { %v4931_v63 = vrot.slane %v7021_v59, %v7228_v25  ;;  %v7023_v5 = vpop.eup %7022 }
 0xbda   :  { %v4936_v55 = vmul.f32 %v4927_v20, %v4915_v60  ;;  %v4935_v33 = vrot.slane %v7023_v5, %v7228_v25 }
 0xbdb   :  { %v4937_v4 = vmul.f32 %v4931_v63, %v4916_v62 }
 0xbdc   :  { %v4957_v7 = vmul.f32 %v4945_v61, %v4936_v55 }
 0xbdd   :  { %v4958_v8 = vmul.f32 %v4949_v1, %v4937_v4 }
 0xbde   :  { %v4978_v21 = vadd.f32 %v4966_v2, %v4957_v7 }
 0xbdf   :  { %v4979_v12 = vadd.f32 %v4970_v6, %v4958_v8 }
 0xbe0   :  { %v4981_v13 = vmax.f32 %v4978_v21, 0.0 }
 0xbe1   :  { %v4982_v15 = vmax.f32 %v4979_v12, 0.0 }
 0xbe2   :  { %v5032_v18 = vpack.c.bf16 %v4981_v13, %v4981_v13 }
 0xbe3   :  { %v5033_v29 = vpack.c.bf16 %v4982_v15, %v4982_v15 }
 0xbe5   :  { %5320 = vmatprep.mubr.bf16.mxu1 %v5033_v29 }
 0xbe6   :  { %5321 = vmatmul.mubr.bf16.vlgmr.msra.gmra.mrb[48].mxu1 %v5032_v18 }
 0xbe7   :  { %5330 = vmatpush1.bf16.msra.mxu1 %v6982_v17  ;;  %5361 = vmatprep.mubr.bf16.mxu1 %v7150_v0  ;;  %v4938_v0 = vmul.f32 %v4935_v33, %v4917_v34 }
 0xbe8   :  { %5331 = vmatprep.subr.bf16.mxu1 %v6987_v9 }
 0xbe9   :  { %v4959_v39 = vmul.f32 %v4953_v36, %v4938_v0 }
 0xbeb   :  { %5332 = vmatpush1.bf16.msra.mxu1 %v6985_v27  ;;  %v4980_v44 = vadd.f32 %v4974_v41, %v4959_v39 }
 0xbec   :  { %5333 = vmatprep.subr.bf16.mxu1 %v6990_v28 }
 0xbed   :  { %v4983_v45 = vmax.f32 %v4980_v44, 0.0 }
 0xbef   :  { %5334 = vmatpush1.bf16.msra.mxu1 %v6988_v30  ;;  %v5034_v46 = vpack.c.bf16 %v4983_v45, %v4983_v45 }
 0xbf0   :  { %5335 = vmatprep.subr.bf16.mxu1 %v6993_v31 }
 0xbf3   :  { %5336 = vmatpush1.bf16.msra.mxu1 %v6991_v32 }
 0xbf4   :  { %5337 = vmatprep.subr.bf16.mxu1 %v6996_v19 }
 0xbf7   :  { %5338 = vmatpush1.bf16.msra.mxu1 %v6994_v35 }
 0xbf8   :  { %5339 = vmatprep.subr.bf16.mxu1 %v6999_v16 }
 0xbfb   :  { %5340 = vmatpush1.bf16.msra.mxu1 %v6997_v38 }
 0xbfc   :  { %5341 = vmatprep.subr.bf16.mxu1 %v7002_v23 }
 0xbff   :  { %5342 = vmatpush1.bf16.msra.mxu1 %v7000_v42 }
 0xc00   :  { %5343 = vmatprep.subr.bf16.mxu1 %v7005_v43 }
 0xc03   :  { %5344 = vmatpush1.bf16.msra.mxu1 %v7003_v26 }
 0xc06   :  { %5362 = vmatmul.mubr.bf16.vlgmr.msra.gmra.mrb[48].mxu1 %v5034_v46 }
 0xcd9   :  { %v5363_v50 = vpop.f32.mrb[48].mxu1 }
 0xcda   :  { %v6271_v51 = vadd.f32 %v5363_v50, %v5041_v48  ;;  %v5365_v37 = vpop.f32.mrb[49].mxu1 }
 0xcdb   :  { %v6272_v40 = vadd.f32 %v5365_v37, %v5045_v49  ;;  %v5367_v52 = vpop.f32.mrb[50].mxu1 }
 0xcdc   :  { %v5368_v53 = vpop.f32.mrb[51].mxu1 }
 0xcdd   :  { %v5372_v54 = vcombine.low %v6271_v51, %v6272_v40 }
 0xcdf   :  { %5907 = vst.sshfl [vmem:[%s7484_s3] sm:$0x33 pattern:$0x76325410] %v5372_v54 }
 0xce0   :  { %5386 = vsyncpa [#allocation3], 1 }
 0xce1   :  { %5387 = vsyncpa [#allocation5], 1 }

</bundles_post_ra>
